<compile_context>
chip_gen: v7x
topology: tpu7x:2x2x1
jax: 0.10.0
libtpu: 0.0.40
codegen_flags: <defaults>
</compile_context>

<pallas_src>
import functools

import jax
import jax.numpy as jnp
from jax.experimental import pallas as pl
from jax.experimental.pallas import tpu as pltpu


_LANE = 128    # lane width (class-axis padding)
_ACC_W = 128   # lane width of the running spatial-sum accumulator


def _round_up(x, m):
    return ((x + m - 1) // m) * m


def classifier_kernel(x_ref, wcomb_ref, bfc_ref, logits_ref, acc_ref, *,
                      inv_hw, n_sub):
    # x_ref:      (tile_n, C_in, tile_hw)   input block, HW on the lane axis
    # wcomb_ref:  (C_in, NCLS_PAD)          folded (frozen backbone @ fc) weight
    # bfc_ref:    (1, NCLS_PAD)             fc bias (lane-padded)
    # logits_ref: (tile_n, NCLS_PAD)        output block (lane-dense)
    # acc_ref:    (tile_n, C_in, _ACC_W)    fp32 lane-wise partial-sum accumulator
    k = pl.program_id(1)

    # Fold this HW chunk down to _ACC_W lanes with pure VPU adds (static,
    # 128-aligned lane slices of the ref => plain offset vector loads, no
    # relayout).  The expensive cross-lane reduce is deferred to the end.
    partial = x_ref[:, :, 0:_ACC_W].astype(jnp.float32)
    for j in range(1, n_sub):
        partial = partial + x_ref[:, :, j * _ACC_W:(j + 1) * _ACC_W].astype(
            jnp.float32)

    @pl.when(k == 0)
    def _():
        acc_ref[...] = partial          # first chunk: overwrite (no zero-init pass)

    @pl.when(k != 0)
    def _():
        acc_ref[...] += partial

    @pl.when(k == pl.num_programs(1) - 1)
    def _():
        # Single cross-lane (XLU) reduce per output tile.
        pooled = jnp.sum(acc_ref[...], axis=-1) * inv_hw        # (tile_n, C_in)
        # Tiny C_in-wide contraction as VPU broadcast FMAs (not an MXU matmul).
        out = jnp.zeros(logits_ref.shape, dtype=jnp.float32)
        for c_idx in range(pooled.shape[1]):
            out = out + pooled[:, c_idx:c_idx + 1] * wcomb_ref[c_idx:c_idx + 1, :]
        logits_ref[...] = out + bfc_ref[...]


def linear_classifier_forward(x_nchw, w_conv, w_fc, b_fc, *, tile_n=None,
                              tile_hw=None):
    """x_nchw: (N, C_in, H, W) float32 -> logits (N, num_classes) float32."""
    n, c, h, w = x_nchw.shape
    hw = h * w
    num_classes = w_fc.shape[1]

    # Fold the frozen linear backbone into the classifier head (exact for the
    # linear surrogate; see TODO above) and pad the class axis to a lane-dense
    # 128 so the output store is unmasked.
    ncls_pad = _round_up(num_classes, _LANE)
    wcomb = jnp.dot(w_conv, w_fc)                                    # (C_in, NCLS)
    wcomb = jnp.pad(wcomb, ((0, 0), (0, ncls_pad - num_classes)))
    bfc = jnp.pad(b_fc.reshape(1, -1), ((0, 0), (0, ncls_pad - num_classes)))

    # NCHW -> (N, C_in, H*W): pure reshape of the contiguous layout (no HBM
    # transpose pass).  HW lands on the lane axis.
    x = x_nchw.reshape(n, c, hw)

    # Tile sizes: lane-dense HW chunks (multiples of 128); N tile chosen so the
    # double-buffered input block (with the C_in sublane axis padded to 8 in
    # VMEM) stays within ~8 MiB -> fits v5e/v6e/v7x default scoped VMEM.
    if tile_hw is None:
        tile_hw = min(2048, _round_up(hw, _ACC_W))
    tile_hw = _round_up(tile_hw, _ACC_W)
    hw_pad = _round_up(hw, tile_hw)

    if tile_n is None:
        c_pad = _round_up(c, 8)
        budget = 4 << 20                                    # per input buffer
        cap = max(8, (budget // (c_pad * tile_hw * 4)) // 8 * 8)
        tile_n = min(_round_up(n, 8), 128, cap)
    tile_n = max(8, _round_up(tile_n, 8))
    n_pad = _round_up(n, tile_n)

    # Zero padding: extra HW columns add 0 to the sum (we divide by the true
    # HW); extra batch rows are sliced away below.
    if (n_pad, hw_pad) != (n, hw):
        x = jnp.pad(x, ((0, n_pad - n), (0, 0), (0, hw_pad - hw)))

    grid = (n_pad // tile_n, hw_pad // tile_hw)
    kernel = functools.partial(classifier_kernel, inv_hw=float(1.0 / hw),
                               n_sub=tile_hw // _ACC_W)

    logits_pad = pl.pallas_call(
        kernel,
        out_shape=jax.ShapeDtypeStruct((n_pad, ncls_pad), jnp.float32),
        grid_spec=pltpu.PrefetchScalarGridSpec(
            num_scalar_prefetch=0,
            grid=grid,
            in_specs=[
                pl.BlockSpec((tile_n, c, tile_hw), lambda i, k: (i, 0, k)),
                pl.BlockSpec((c, ncls_pad), lambda i, k: (0, 0)),
                pl.BlockSpec((1, ncls_pad), lambda i, k: (0, 0)),
            ],
            out_specs=pl.BlockSpec((tile_n, ncls_pad), lambda i, k: (i, 0)),
            scratch_shapes=[pltpu.VMEM((tile_n, c, _ACC_W), jnp.float32)],
        ),
        compiler_params=pltpu.CompilerParams(
            dimension_semantics=("parallel", "arbitrary")),
    )(x, wcomb, bfc)

    return logits_pad[:n, :num_classes]


if __name__ == "__main__":
    # Small shapes consistent with the module's forward (PyTorch uses 3xHxW
    # images).  H=W=32 with tile_hw=512 exercises both the multi-step HW
    # accumulation path (2 grid steps) and the in-step lane folding (4 chunks).
    N, C_IN, H, W = 2, 3, 32, 32
    FEAT = 64                              # backbone "last_conv_output_dim"
    NUM_CLASSES = 10

    key = jax.random.PRNGKey(0)
    k_x, k_conv, k_w, k_b = jax.random.split(key, 4)

    x = jax.random.normal(k_x, (N, C_IN, H, W), dtype=jnp.float32)

    # frozen backbone surrogate weight (deterministic)
    w_conv = jax.random.normal(k_conv, (C_IN, FEAT), dtype=jnp.float32) * 0.1

    # nn.Linear(FEAT, NUM_CLASSES) init: U(-1/sqrt(FEAT), 1/sqrt(FEAT))
    bound = 1.0 / (FEAT ** 0.5)
    w_fc = jax.random.uniform(k_w, (FEAT, NUM_CLASSES), jnp.float32, -bound, bound)
    b_fc = jax.random.uniform(k_b, (1, NUM_CLASSES), jnp.float32, -bound, bound)

    logits = linear_classifier_forward(x, w_conv, w_fc, b_fc, tile_hw=512)
    jax.block_until_ready(logits)

    # sanity check against pure-JAX reference (original conv-then-pool order)
    pooled_ref = jnp.mean(jnp.einsum("nchw,cf->nfhw", x, w_conv), axis=(2, 3))
    logits_ref = pooled_ref @ w_fc + b_fc
    assert logits.shape == (N, NUM_CLASSES)
    assert jnp.allclose(logits, logits_ref, atol=1e-4, rtol=1e-4)

    print("KERNEL_OK")
</pallas_src>

<mosaic_0001>
module attributes {stable_mosaic.version = 11 : i64} {
  func.func @classifier_kernel(%arg0: i32, %arg1: i32, %arg2: memref<8x3x512xf32, #tpu.memory_space<vmem>>, %arg3: memref<3x128xf32, #tpu.memory_space<vmem>>, %arg4: memref<1x128xf32, #tpu.memory_space<vmem>>, %arg5: memref<8x128xf32, #tpu.memory_space<vmem>>, %arg6: memref<8x3x128xf32, #tpu.memory_space<vmem>>) attributes {dimension_semantics = [#tpu.dimension_semantics<parallel>, #tpu.dimension_semantics<arbitrary>], iteration_bounds = array<i64: 1, 2>, scalar_prefetch = 0 : i64, scratch_operands = 1 : i64, tpu.core_type = #tpu.core_type<tc>, window_params = [{transform_indices = @transform_0, window_bounds = array<i64: 8, 3, 512>}, {pipeline_mode = #tpu.pipeline_mode<synchronous>, transform_indices = @transform_1, window_bounds = array<i64: 3, 128>}, {pipeline_mode = #tpu.pipeline_mode<synchronous>, transform_indices = @transform_2, window_bounds = array<i64: 1, 128>}, {transform_indices = @transform_3, window_bounds = array<i64: 8, 128>}]} {
    %c0 = arith.constant 0 : index
    %c0_0 = arith.constant 0 : index
    %c0_1 = arith.constant 0 : index
    %0 = vector.load %arg2[%c0, %c0_0, %c0_1] : memref<8x3x512xf32, #tpu.memory_space<vmem>>, vector<8x3x128xf32>
    %c0_2 = arith.constant 0 : index
    %c0_3 = arith.constant 0 : index
    %c128 = arith.constant 128 : index
    %1 = vector.load %arg2[%c0_2, %c0_3, %c128] : memref<8x3x512xf32, #tpu.memory_space<vmem>>, vector<8x3x128xf32>
    %2 = arith.addf %0, %1 : vector<8x3x128xf32>
    %c0_4 = arith.constant 0 : index
    %c0_5 = arith.constant 0 : index
    %c256 = arith.constant 256 : index
    %3 = vector.load %arg2[%c0_4, %c0_5, %c256] : memref<8x3x512xf32, #tpu.memory_space<vmem>>, vector<8x3x128xf32>
    %4 = arith.addf %2, %3 : vector<8x3x128xf32>
    %c0_6 = arith.constant 0 : index
    %c0_7 = arith.constant 0 : index
    %c384 = arith.constant 384 : index
    %5 = vector.load %arg2[%c0_6, %c0_7, %c384] : memref<8x3x512xf32, #tpu.memory_space<vmem>>, vector<8x3x128xf32>
    %6 = arith.addf %4, %5 : vector<8x3x128xf32>
    %c0_i32 = arith.constant 0 : i32
    %7 = arith.cmpi eq, %arg1, %c0_i32 : i32
    %8 = arith.extui %7 : i1 to i32
    %c0_i32_8 = arith.constant 0 : i32
    %9 = arith.cmpi ne, %8, %c0_i32_8 : i32
    scf.if %9 {
      %c0_12 = arith.constant 0 : index
      %c0_13 = arith.constant 0 : index
      %c0_14 = arith.constant 0 : index
      %16 = vector.load %arg6[%c0_12, %c0_13, %c0_14] : memref<8x3x128xf32, #tpu.memory_space<vmem>>, vector<8x3x128xf32>
      tpu.vector_store %arg6[%c0_12, %c0_13, %c0_14], %6 {strides = array<i32>} : memref<8x3x128xf32, #tpu.memory_space<vmem>>, vector<8x3x128xf32>,
    } else {
    }
    %c0_i32_9 = arith.constant 0 : i32
    %10 = arith.cmpi ne, %arg1, %c0_i32_9 : i32
    %11 = arith.extui %10 : i1 to i32
    %c0_i32_10 = arith.constant 0 : i32
    %12 = arith.cmpi ne, %11, %c0_i32_10 : i32
    scf.if %12 {
      %c0_12 = arith.constant 0 : index
      %c0_13 = arith.constant 0 : index
      %c0_14 = arith.constant 0 : index
      %16 = vector.load %arg6[%c0_12, %c0_13, %c0_14] : memref<8x3x128xf32, #tpu.memory_space<vmem>>, vector<8x3x128xf32>
      %17 = arith.addf %16, %6 : vector<8x3x128xf32>
      %c0_15 = arith.constant 0 : index
      %c0_16 = arith.constant 0 : index
      %c0_17 = arith.constant 0 : index
      %18 = vector.load %arg6[%c0_15, %c0_16, %c0_17] : memref<8x3x128xf32, #tpu.memory_space<vmem>>, vector<8x3x128xf32>
      tpu.vector_store %arg6[%c0_15, %c0_16, %c0_17], %17 {strides = array<i32>} : memref<8x3x128xf32, #tpu.memory_space<vmem>>, vector<8x3x128xf32>,
    } else {
    }
    %c1_i32 = arith.constant 1 : i32
    %13 = arith.cmpi eq, %arg1, %c1_i32 : i32
    %14 = arith.extui %13 : i1 to i32
    %c0_i32_11 = arith.constant 0 : i32
    %15 = arith.cmpi ne, %14, %c0_i32_11 : i32
    scf.if %15 {
      %c0_12 = arith.constant 0 : index
      %c0_13 = arith.constant 0 : index
      %c0_14 = arith.constant 0 : index
      %16 = vector.load %arg6[%c0_12, %c0_13, %c0_14] : memref<8x3x128xf32, #tpu.memory_space<vmem>>, vector<8x3x128xf32>
      %cst = arith.constant dense<0.000000e+00> : vector<8x3xf32>
      %17 = vector.multi_reduction <add>, %16, %cst [2] : vector<8x3x128xf32> to vector<8x3xf32>
      %cst_15 = arith.constant 9.765625E-4 : f32
      %18 = vector.broadcast %cst_15 : f32 to vector<8x3xf32>
      %19 = arith.mulf %17, %18 : vector<8x3xf32>
      %cst_16 = arith.constant 0.000000e+00 : f32
      %20 = vector.broadcast %cst_16 : f32 to vector<8x128xf32>
      %21 = vector.extract_strided_slice %19 {offsets = [0, 0], sizes = [8, 1], strides = [1, 1]} : vector<8x3xf32> to vector<8x1xf32>
      %c0_17 = arith.constant 0 : index
      %c0_18 = arith.constant 0 : index
      %22 = vector.load %arg3[%c0_17, %c0_18] : memref<3x128xf32, #tpu.memory_space<vmem>>, vector<1x128xf32>
      %23 = vector.broadcast %21 : vector<8x1xf32> to vector<8x128xf32>
      %24 = vector.broadcast %22 : vector<1x128xf32> to vector<8x128xf32>
      %25 = arith.mulf %23, %24 : vector<8x128xf32>
      %26 = arith.addf %20, %25 : vector<8x128xf32>
      %27 = vector.extract_strided_slice %19 {offsets = [0, 1], sizes = [8, 1], strides = [1, 1]} : vector<8x3xf32> to vector<8x1xf32>
      %c1 = arith.constant 1 : index
      %c0_19 = arith.constant 0 : index
      %28 = vector.load %arg3[%c1, %c0_19] : memref<3x128xf32, #tpu.memory_space<vmem>>, vector<1x128xf32>
      %29 = vector.broadcast %27 : vector<8x1xf32> to vector<8x128xf32>
      %30 = vector.broadcast %28 : vector<1x128xf32> to vector<8x128xf32>
      %31 = arith.mulf %29, %30 : vector<8x128xf32>
      %32 = arith.addf %26, %31 : vector<8x128xf32>
      %33 = vector.extract_strided_slice %19 {offsets = [0, 2], sizes = [8, 1], strides = [1, 1]} : vector<8x3xf32> to vector<8x1xf32>
      %c2 = arith.constant 2 : index
      %c0_20 = arith.constant 0 : index
      %34 = vector.load %arg3[%c2, %c0_20] : memref<3x128xf32, #tpu.memory_space<vmem>>, vector<1x128xf32>
      %35 = vector.broadcast %33 : vector<8x1xf32> to vector<8x128xf32>
      %36 = vector.broadcast %34 : vector<1x128xf32> to vector<8x128xf32>
      %37 = arith.mulf %35, %36 : vector<8x128xf32>
      %38 = arith.addf %32, %37 : vector<8x128xf32>
      %c0_21 = arith.constant 0 : index
      %c0_22 = arith.constant 0 : index
      %39 = vector.load %arg4[%c0_21, %c0_22] : memref<1x128xf32, #tpu.memory_space<vmem>>, vector<1x128xf32>
      %40 = vector.broadcast %39 : vector<1x128xf32> to vector<8x128xf32>
      %41 = arith.addf %38, %40 : vector<8x128xf32>
      %c0_23 = arith.constant 0 : index
      %c0_24 = arith.constant 0 : index
      %42 = vector.load %arg5[%c0_23, %c0_24] : memref<8x128xf32, #tpu.memory_space<vmem>>, vector<8x128xf32>
      tpu.vector_store %arg5[%c0_23, %c0_24], %41 {strides = array<i32>} : memref<8x128xf32, #tpu.memory_space<vmem>>, vector<8x128xf32>,
    } else {
    }
    return
  }
  func.func @transform_0(%arg0: i32, %arg1: i32) -> (i32, i32, i32) {
    %c0_i32 = arith.constant 0 : i32
    %c0_i32_0 = arith.constant 0 : i32
    return %arg0, %c0_i32, %arg1 : i32, i32, i32
  }
  func.func @transform_1(%arg0: i32, %arg1: i32) -> (i32, i32) {
    %c0_i32 = arith.constant 0 : i32
    %c0_i32_0 = arith.constant 0 : i32
    %c0_i32_1 = arith.constant 0 : i32
    return %c0_i32, %c0_i32_0 : i32, i32
  }
  func.func @transform_2(%arg0: i32, %arg1: i32) -> (i32, i32) {
    %c0_i32 = arith.constant 0 : i32
    %c0_i32_0 = arith.constant 0 : i32
    %c0_i32_1 = arith.constant 0 : i32
    return %c0_i32, %c0_i32_0 : i32, i32
  }
  func.func @transform_3(%arg0: i32, %arg1: i32) -> (i32, i32) {
    %c0_i32 = arith.constant 0 : i32
    %c0_i32_0 = arith.constant 0 : i32
    return %arg0, %c0_i32 : i32, i32
  }
}

</mosaic_0001>

<bundles_post_ra>
// kernel: tpu_custom_call.1
= control target key start
LH: loop header
LB: loop body
LE: loop exit
PB: predicated region body
PF: predicated region fallthrough
CT: control target
= control target key end

     0   :  { %8 = vsyncpa [#allocation5], 0  ;;  %s3126_s12 = smov 0   ;;  %s3128_s13 = smov 0   ;;  %s5419_s0 = inlined_call_operand.vmem [shape: f32[8,3,1024], index: 0, kind: input, shape index: {}]   ;;  %s5420_s1 = inlined_call_operand.vmem [shape: f32[3,128], index: 1, kind: input, shape index: {}]   ;;  %s5421_s2 = inlined_call_operand.vmem [shape: f32[1,128], index: 2, kind: input, shape index: {}]   ;;  %s5422_s3 = inlined_call_operand.hbm [shape: f32[8,128], index: 3, kind: output, shape index: {}]  }
   0x1   :  { %s3130_s14 = smov 0   ;;  %s3132_s15 = smov 0  }
   0x2   :  { %s3134_s16 = smov 0  }
   0x3 LB: > { %s2964_s17 = sadd.s32 4294967295, %s3102_s16   ;;  %s23_s18 = sadd.s32 1, %s3098_s15  ;;  %s3102_s16 = sphi %s3134_s16, %s14_s16   ;;  %s3098_s15 = sphi %s3132_s15, %s6077_s15   ;;  %s3094_s14 = sphi %s3130_s14, %s6076_s14   ;;  %s3090_s13 = sphi %s3128_s13, %s6075_s13   ;;  %s3086_s12 = sphi %s3126_s12, %s6074_s12  }
   0x4   : > { %p24_p0 = scmp.ge.s32.totalorder %s23_s18, 2  ;;  %p42_p1 = scmp.ne.s32.totalorder %s3090_s13, %s3086_s12 }
   0x5   : > { %p43_p2 = scmp.eq.s32.totalorder %s3102_s16, 0  ;;  %s35_s20 = sadd.s32 1, %s3090_s13 }
   0x6   : > { %s6079_s18 = smov (%p24_p0, %s23_s18), 0  ;;  %p2966_p5 = scmp.ge.s32.totalorder %s3102_s16, 2 }
   0x7   : > { %p44_p3 = por %p43_p2, %p42_p1  ;;  %s31_s19 = ssub.s32 %s3098_s15, %s6079_s18 }
   0x8   : > { %p33_p4 = scmp.eq.s32.totalorder %s31_s19, 0  ;;  %142 = sbr.rel (%p2966_p5) target bundleno = 27 (0x1b), region = 24 }
   0xa   : > { %s3162_s21 = scalar_select %p33_p4, %s3090_s13, %s35_s20  }
   0xf   : > { %145 = sbr.rel (!%p44_p3) target bundleno = 27 (0x1b), region = 28  ;;  %s147_s22 = sand.u32 (%p44_p3), 1, %s3090_s13  }
  0x10   : > { %s2983_s23 = sshll.u32 (%p44_p3), %s3098_s15, 4  ;;  %s2967_s24 = sshll.u32 (%p44_p3), %s147_s22, 7 }
  0x11   : > { %s3170_s27 = scalar_lea.vmem (%p44_p3), %s5419_s0, %s2983_s23  ;;  %s149_s28 = scalar_lea.vmem (%p44_p3), [#allocation3], %s2967_s24 }
  0x12   : > { %v168_v0 = vld [vmem:[%s3170_s27] sm:$0xff] (%p44_p3)  ;;  %v170_v1 = vld [vmem:[%s3170_s27 + $0x8] sm:$0xff] (%p44_p3) }
  0x13   : > { %v172_v2 = vld [vmem:[%s3170_s27 + $0x20] sm:$0xff] (%p44_p3)  ;;  %169 = vst [vmem:[%s149_s28] sm:$0xff] (%p44_p3), %v168_v0  ;;  %171 = vst [vmem:[%s149_s28 + $0x8] sm:$0xff] (%p44_p3), %v170_v1  ;;  %v174_v3 = vld [vmem:[%s3170_s27 + $0x28] sm:$0xff] (%p44_p3) }
  0x14   : > { %173 = vst [vmem:[%s149_s28 + $0x10] sm:$0xff] (%p44_p3), %v172_v2  ;;  %v176_v4 = vld [vmem:[%s3170_s27 + $0x40] sm:$0xff] (%p44_p3)  ;;  %v178_v5 = vld [vmem:[%s3170_s27 + $0x48] sm:$0xff] (%p44_p3)  ;;  %175 = vst [vmem:[%s149_s28 + $0x18] sm:$0xff] (%p44_p3), %v174_v3 }
  0x15   : > { %177 = vst [vmem:[%s149_s28 + $0x20] sm:$0xff] (%p44_p3), %v176_v4  ;;  %179 = vst [vmem:[%s149_s28 + $0x28] sm:$0xff] (%p44_p3), %v178_v5  ;;  %v180_v6 = vld [vmem:[%s3170_s27 + $0x60] sm:$0xff] (%p44_p3)  ;;  %v182_v7 = vld [vmem:[%s3170_s27 + $0x68] sm:$0xff] (%p44_p3) }
  0x16   : > { %v184_v8 = vld [vmem:[%s3170_s27 + $0x80] sm:$0xff]  ;;  %181 = vst [vmem:[%s149_s28 + $0x30] sm:$0xff] %v180_v6  ;;  %183 = vst [vmem:[%s149_s28 + $0x38] sm:$0xff] %v182_v7  ;;  %v186_v9 = vld [vmem:[%s3170_s27 + $0x88] sm:$0xff] }
  0x17   : > { %185 = vst [vmem:[%s149_s28 + $0x40] sm:$0xff] %v184_v8  ;;  %v188_v10 = vld [vmem:[%s3170_s27 + $0xa0] sm:$0xff]  ;;  %v190_v11 = vld [vmem:[%s3170_s27 + $0xa8] sm:$0xff]  ;;  %187 = vst [vmem:[%s149_s28 + $0x48] sm:$0xff] %v186_v9 }
  0x18   : > { %189 = vst [vmem:[%s149_s28 + $0x50] sm:$0xff] %v188_v10  ;;  %191 = vst [vmem:[%s149_s28 + $0x58] sm:$0xff] %v190_v11  ;;  %v192_v12 = vld [vmem:[%s3170_s27 + $0xc0] sm:$0xff]  ;;  %v194_v13 = vld [vmem:[%s3170_s27 + $0xc8] sm:$0xff] }
  0x19   : > { %v196_v14 = vld [vmem:[%s3170_s27 + $0xe0] sm:$0xff]  ;;  %193 = vst [vmem:[%s149_s28 + $0x60] sm:$0xff] %v192_v12  ;;  %195 = vst [vmem:[%s149_s28 + $0x68] sm:$0xff] %v194_v13  ;;  %v198_v15 = vld [vmem:[%s3170_s27 + $0xe8] sm:$0xff] }
  0x1a   : > { %197 = vst [vmem:[%s149_s28 + $0x70] sm:$0xff] %v196_v14  ;;  %199 = vst [vmem:[%s149_s28 + $0x78] sm:$0xff] %v198_v15 }
  0x1b PF: > { %p2970_p6 = scmp.ge.s32.totalorder %s3102_s16, 1  ;;  %p204_p7 = scmp.lt.s32.totalorder %s3102_s16, 3 }
  0x1d   : > { %p205_p8 = pnand %p2970_p6, %p204_p7 }
  0x1e   : > { %s211_s29 = sand.u32 (!%p205_p8), 1, %s3086_s12   ;;  %p2972_p9 = scmp.ne.s32.totalorder (!%p205_p8), %s3094_s14, 0 }
  0x1f   : > { %208 = sbr.rel (%p205_p8) target bundleno = 754 (0x2f2), region = 51  ;;  %s2971_s30 = sshll.u32 (!%p205_p8), %s211_s29, 7 }
  0x20   : > { %s3191_s4 = scalar_lea.vmem (!%p205_p8), [#allocation3], %s2971_s30 }
  0x21   : > { %v231_v16 = vld [vmem:[%s3191_s4] sm:$0x7] (!%p205_p8)  ;;  %v232_v17 = vld [vmem:[%s3191_s4 + $0x10] sm:$0x7] (!%p205_p8)  ;;  %v239_v24 = vld [vmem:[%s3191_s4 + $0x4] sm:$0x7] (!%p205_p8) }
  0x22   : > { %v233_v18 = vld [vmem:[%s3191_s4 + $0x20] sm:$0x7] (!%p205_p8)  ;;  %v234_v19 = vld [vmem:[%s3191_s4 + $0x30] sm:$0x7] (!%p205_p8)  ;;  %v240_v25 = vld [vmem:[%s3191_s4 + $0x14] sm:$0x7] (!%p205_p8)  ;;  %v247_v28 = vadd.f32 (!%p205_p8), %v239_v24, %v231_v16 }
  0x23   : > { %v235_v20 = vld [vmem:[%s3191_s4 + $0x40] sm:$0x7] (!%p205_p8)  ;;  %v236_v21 = vld [vmem:[%s3191_s4 + $0x50] sm:$0x7] (!%p205_p8)  ;;  %v241_v26 = vld [vmem:[%s3191_s4 + $0x24] sm:$0x7] (!%p205_p8)  ;;  %v248_v32 = vadd.f32 (!%p205_p8), %v240_v25, %v232_v17 }
  0x24   : > { %v237_v22 = vld [vmem:[%s3191_s4 + $0x60] sm:$0x7] (!%p205_p8)  ;;  %v238_v23 = vld [vmem:[%s3191_s4 + $0x70] sm:$0x7] (!%p205_p8)  ;;  %v242_v27 = vld [vmem:[%s3191_s4 + $0x34] sm:$0x7] (!%p205_p8)  ;;  %v249_v33 = vadd.f32 (!%p205_p8), %v241_v26, %v233_v18 }
  0x25   : > { %v243_v29 = vld [vmem:[%s3191_s4 + $0x44] sm:$0x7] (!%p205_p8)  ;;  %v244_v30 = vld [vmem:[%s3191_s4 + $0x54] sm:$0x7] (!%p205_p8)  ;;  %v250_v34 = vadd.f32 (!%p205_p8), %v242_v27, %v234_v19  ;;  %v255_v39 = vld [vmem:[%s3191_s4 + $0x8] sm:$0x7] (!%p205_p8) }
  0x26   : > { %v245_v31 = vld [vmem:[%s3191_s4 + $0x64] sm:$0x7]  ;;  %v246_v35 = vld [vmem:[%s3191_s4 + $0x74] sm:$0x7]  ;;  %v251_v36 = vadd.f32 %v243_v29, %v235_v20  ;;  %v252_v37 = vadd.f32 %v244_v30, %v236_v21  ;;  %v256_v40 = vld [vmem:[%s3191_s4 + $0x18] sm:$0x7]  ;;  %v263_v45 = vadd.f32 %v255_v39, %v247_v28 }
  0x27   : > { %v253_v38 = vadd.f32 %v245_v31, %v237_v22  ;;  %v254_v41 = vadd.f32 %v246_v35, %v238_v23  ;;  %v257_v42 = vld [vmem:[%s3191_s4 + $0x28] sm:$0x7]  ;;  %v258_v43 = vld [vmem:[%s3191_s4 + $0x38] sm:$0x7]  ;;  %v264_v46 = vadd.f32 %v256_v40, %v248_v32  ;;  %v271_v56 = vld [vmem:[%s3191_s4 + $0xc] sm:$0x7] }
  0x28   : > { %v259_v44 = vld [vmem:[%s3191_s4 + $0x48] sm:$0x7]  ;;  %v260_v47 = vld [vmem:[%s3191_s4 + $0x58] sm:$0x7]  ;;  %v265_v50 = vadd.f32 %v257_v42, %v249_v33  ;;  %v266_v51 = vadd.f32 %v258_v43, %v250_v34  ;;  %v272_v57 = vld [vmem:[%s3191_s4 + $0x1c] sm:$0x7]  ;;  %v279_v62 = vadd.f32 %v271_v56, %v263_v45 }
  0x29   : > { %v261_v48 = vld [vmem:[%s3191_s4 + $0x68] sm:$0x7]  ;;  %v262_v49 = vld [vmem:[%s3191_s4 + $0x78] sm:$0x7]  ;;  %v267_v52 = vadd.f32 %v259_v44, %v251_v36  ;;  %v268_v53 = vadd.f32 %v260_v47, %v252_v37  ;;  %v273_v58 = vld [vmem:[%s3191_s4 + $0x2c] sm:$0x7]  ;;  %v280_v63 = vadd.f32 %v272_v57, %v264_v46 }
  0x2a   : > { %v269_v54 = vadd.f32 %v261_v48, %v253_v38  ;;  %v270_v55 = vadd.f32 %v262_v49, %v254_v41  ;;  %v274_v59 = vld [vmem:[%s3191_s4 + $0x3c] sm:$0x7]  ;;  %v275_v60 = vld [vmem:[%s3191_s4 + $0x4c] sm:$0x7]  ;;  %v281_v0 = vadd.f32 %v273_v58, %v265_v50  ;;  %290 = sbr.rel (%p2972_p9) target bundleno = 49 (0x31), region = 59 }
  0x2b   : > { %v276_v61 = vld [vmem:[%s3191_s4 + $0x5c] sm:$0x7]  ;;  %v277_v1 = vld [vmem:[%s3191_s4 + $0x6c] sm:$0x7]  ;;  %v282_v3 = vadd.f32 %v274_v59, %v266_v51  ;;  %v283_v4 = vadd.f32 %v275_v60, %v267_v52  ;;  %291 = vst [vmem:[#allocation2] sm:$0x7] (!%p2972_p9), %v279_v62 }
  0x2c   : > { %v278_v2 = vld [vmem:[%s3191_s4 + $0x7c] sm:$0x7]  ;;  %v284_v5 = vadd.f32 %v276_v61, %v268_v53  ;;  %v285_v6 = vadd.f32 %v277_v1, %v269_v54  ;;  %292 = vst [vmem:[#allocation2 + $0x4] sm:$0x7] (!%p2972_p9), %v280_v63  ;;  %293 = vst [vmem:[#allocation2 + $0x8] sm:$0x7] (!%p2972_p9), %v281_v0 }
  0x2d   : > { %v286_v7 = vadd.f32 %v278_v2, %v270_v55  ;;  %294 = vst [vmem:[#allocation2 + $0xc] sm:$0x7] (!%p2972_p9), %v282_v3  ;;  %295 = vst [vmem:[#allocation2 + $0x10] sm:$0x7] (!%p2972_p9), %v283_v4 }
  0x2e   : > { %296 = vst [vmem:[#allocation2 + $0x14] sm:$0x7] (!%p2972_p9), %v284_v5  ;;  %297 = vst [vmem:[#allocation2 + $0x18] sm:$0x7] (!%p2972_p9), %v285_v6 }
  0x2f   : > { %298 = vst [vmem:[#allocation2 + $0x1c] sm:$0x7] (!%p2972_p9), %v286_v7 }
  0x31 PF: > { %p2973_p10 = scmp.eq.s32.totalorder %s3094_s14, 0 }
  0x32   : > { %v303_v8 = vld [vmem:[#allocation2] sm:$0x7] (!%p2973_p10) }
  0x33   : > { %302 = sbr.rel (%p2973_p10) target bundleno = 58 (0x3a), region = 63  ;;  %v304_v9 = vld [vmem:[#allocation2 + $0x4] sm:$0x7] (!%p2973_p10)  ;;  %v305_v10 = vld [vmem:[#allocation2 + $0x8] sm:$0x7] (!%p2973_p10)  ;;  %v311_v11 = vadd.f32 (!%p2973_p10), %v303_v8, %v279_v62 }
  0x34   : > { %v312_v12 = vadd.f32 (!%p2973_p10), %v304_v9, %v280_v63  ;;  %v313_v13 = vadd.f32 (!%p2973_p10), %v305_v10, %v281_v0  ;;  %v306_v14 = vld [vmem:[#allocation2 + $0xc] sm:$0x7] (!%p2973_p10)  ;;  %v307_v15 = vld [vmem:[#allocation2 + $0x10] sm:$0x7] (!%p2973_p10) }
  0x35   : > { %v308_v16 = vld [vmem:[#allocation2 + $0x14] sm:$0x7] (!%p2973_p10)  ;;  %v314_v17 = vadd.f32 (!%p2973_p10), %v306_v14, %v282_v3  ;;  %v315_v18 = vadd.f32 (!%p2973_p10), %v307_v15, %v283_v4  ;;  %v309_v20 = vld [vmem:[#allocation2 + $0x18] sm:$0x7] (!%p2973_p10)  ;;  %319 = vst [vmem:[#allocation2] sm:$0x7] (!%p2973_p10), %v311_v11 }
  0x36   : > { %v316_v19 = vadd.f32 (!%p2973_p10), %v308_v16, %v284_v5  ;;  %v310_v21 = vld [vmem:[#allocation2 + $0x1c] sm:$0x7] (!%p2973_p10)  ;;  %320 = vst [vmem:[#allocation2 + $0x4] sm:$0x7] (!%p2973_p10), %v312_v12  ;;  %321 = vst [vmem:[#allocation2 + $0x8] sm:$0x7] (!%p2973_p10), %v313_v13  ;;  %v317_v22 = vadd.f32 (!%p2973_p10), %v309_v20, %v285_v6 }
  0x37   : > { %v318_v23 = vadd.f32 (!%p2973_p10), %v310_v21, %v286_v7  ;;  %322 = vst [vmem:[#allocation2 + $0xc] sm:$0x7] (!%p2973_p10), %v314_v17  ;;  %323 = vst [vmem:[#allocation2 + $0x10] sm:$0x7] (!%p2973_p10), %v315_v18 }
  0x38   : > { %324 = vst [vmem:[#allocation2 + $0x14] sm:$0x7] (!%p2973_p10), %v316_v19  ;;  %325 = vst [vmem:[#allocation2 + $0x18] sm:$0x7] (!%p2973_p10), %v317_v22 }
  0x39   : > { %326 = vst [vmem:[#allocation2 + $0x1c] sm:$0x7] (!%p2973_p10), %v318_v23 }
  0x3a PF: > { %p2974_p11 = scmp.ne.s32.totalorder %s3094_s14, 1 }
  0x3c   : > { %330 = sbr.rel (%p2974_p11) target bundleno = 729 (0x2d9), region = 67 }
  0x43   : > { %v333_v24 = vld [vmem:[#allocation2 + $0x8] sm:$0x7]  ;;  %vm339_vm0 = vcmask 1042432   ;;  %v331_v25 = vld [vmem:[#allocation2] sm:$0x7]  ;;  %v3104_v43 = vmov 0   ;;  %v5423_v59 = vlaneseq }
  0x44   : > { %v346_v26 = vsel %vm339_vm0, %v333_v24, 0.0  ;;  %v340_v27 = vsel %vm339_vm0, %v331_v25, 0.0  ;;  %v334_v28 = vld [vmem:[#allocation2 + $0xc] sm:$0x7]  ;;  %v332_v29 = vld [vmem:[#allocation2 + $0x4] sm:$0x7]  ;;  %3033 = vset.pattern.permute.xlu1 %v3104_v43  ;;  %3032 = vset.pattern.permute.xlu0 %v3104_v43 }
  0x45   : > { %347 = vadd.xlane.f32.xlu1 %v346_v26  ;;  %341 = vadd.xlane.f32.xlu0 %v340_v27  ;;  %v349_v30 = vsel %vm339_vm0, %v334_v28, 0.0  ;;  %v343_v31 = vsel %vm339_vm0, %v332_v29, 0.0  ;;  %v336_v32 = vld [vmem:[#allocation2 + $0x14] sm:$0x7]  ;;  %v335_v33 = vld [vmem:[#allocation2 + $0x10] sm:$0x7] }
  0x46   : > { %v355_v34 = vsel %vm339_vm0, %v336_v32, 0.0  ;;  %v352_v35 = vsel %vm339_vm0, %v335_v33, 0.0  ;;  %v338_v36 = vld [vmem:[#allocation2 + $0x1c] sm:$0x7]  ;;  %v337_v37 = vld [vmem:[#allocation2 + $0x18] sm:$0x7] }
  0x47   : > { %v361_v38 = vsel %vm339_vm0, %v338_v36, 0.0  ;;  %v358_v39 = vsel %vm339_vm0, %v337_v37, 0.0  ;;  %v2975_v40 = vld [vmem:[%s5420_s1] ss:$0 sm:$0xff]  ;;  %v2976_v41 = vld [vmem:[%s5420_s1 + $0x1] ss:$0 sm:$0xff] }
  0x48   : > { %v2977_v42 = vld [vmem:[%s5420_s1 + $0x2] ss:$0 sm:$0xff]  ;;  %v2978_v44 = vld [vmem:[%s5421_s2] ss:$0 sm:$0xff]  ;;  %v3265_v62 = vshrl.u32 %v5423_v59, 7  ;;  %vm2227_vm1 = vcmask 130112  }
  0x49   : > { %350 = vadd.xlane.f32.xlu1 %v349_v30  ;;  %344 = vadd.xlane.f32.xlu0 %v343_v31  ;;  %vm2234_vm2 = vcmask 195712   ;;  %vm2241_vm3 = vcmask 261312   ;;  %vm2248_vm4 = vcmask 326912   ;;  %vm2255_vm5 = vcmask 392512  }
  0x4a   : > { %5567 = vst [vmem:[#allocation15_spill] sm:$0xff] %v3265_v62  ;;  %v375_v1 = vsub.s32 0, %v3265_v62  ;;  %v748_v3 = vsub.s32 1, %v3265_v62  ;;  %v1121_v4 = vsub.s32 2, %v3265_v62  ;;  %vm2262_vm6 = vcmask 458112  }
  0x4b   : > { %vm2269_vm7 = vcmask 523712   ;;  %vm2276_vm8 = vcmask 589312   ;;  %vm2283_vm9 = vcmask 654912   ;;  %vm2290_vm10 = vcmask 720512  }
  0x4c   : > { %vm5558_vm11 = vcmask 786112   ;;  %vm2304_vm12 = vcmask 851712   ;;  %vm2311_vm13 = vcmask 917312   ;;  %vm2318_vm14 = vcmask 982912  }
  0x4d   : > { %356 = vadd.xlane.f32.xlu1 %v355_v34  ;;  %353 = vadd.xlane.f32.xlu0 %v352_v35  ;;  %vm2325_vm15 = vcmask 1048512   ;;  %vm2880_vm0 = vcmask 1041409  }
  0x51   : > { %362 = vadd.xlane.f32.xlu1 %v361_v38  ;;  %359 = vadd.xlane.f32.xlu0 %v358_v39 }
  0x62   : > { %415 = vbcast.lane.b32.xlu1 %v2975_v40, 264 }
  0x66   : > { %419 = vbcast.lane.b32.xlu1 %v2975_v40, 272 }
  0x67   : > { %411 = vbcast.lane.b32.xlu0 %v2975_v40, 256 }
  0x6a   : > { %423 = vbcast.lane.b32.xlu1 %v2975_v40, 280 }
  0x6b   : > { %427 = vbcast.lane.b32.xlu0 %v2975_v40, 288 }
  0x6e   : > { %431 = vbcast.lane.b32.xlu1 %v2975_v40, 296 }
  0x6f   : > { %435 = vbcast.lane.b32.xlu0 %v2975_v40, 304 }
  0x72   : > { %439 = vbcast.lane.b32.xlu1 %v2975_v40, 312 }
  0x73   : > { %443 = vbcast.lane.b32.xlu0 %v2975_v40, 320 }
  0x76   : > { %447 = vbcast.lane.b32.xlu1 %v2975_v40, 328 }
  0x77   : > { %451 = vbcast.lane.b32.xlu0 %v2975_v40, 336 }
  0x7a   : > { %455 = vbcast.lane.b32.xlu1 %v2975_v40, 344 }
  0x7b   : > { %459 = vbcast.lane.b32.xlu0 %v2975_v40, 352 }
  0x7e   : > { %463 = vbcast.lane.b32.xlu1 %v2975_v40, 360 }
  0x7f   : > { %467 = vbcast.lane.b32.xlu0 %v2975_v40, 368 }
  0x82   : > { %471 = vbcast.lane.b32.xlu1 %v2975_v40, 376 }
  0x83   : > { %784 = vbcast.lane.b32.xlu0 %v2976_v41, 256 }
  0x86   : > { %788 = vbcast.lane.b32.xlu1 %v2976_v41, 264 }
  0x87   : > { %792 = vbcast.lane.b32.xlu0 %v2976_v41, 272 }
  0x8a   : > { %796 = vbcast.lane.b32.xlu1 %v2976_v41, 280 }
  0x8b   : > { %800 = vbcast.lane.b32.xlu0 %v2976_v41, 288 }
  0x8e   : > { %804 = vbcast.lane.b32.xlu1 %v2976_v41, 296 }
  0x8f   : > { %808 = vbcast.lane.b32.xlu0 %v2976_v41, 304 }
  0x92   : > { %812 = vbcast.lane.b32.xlu1 %v2976_v41, 312 }
  0x93   : > { %816 = vbcast.lane.b32.xlu0 %v2976_v41, 320 }
  0x96   : > { %820 = vbcast.lane.b32.xlu1 %v2976_v41, 328 }
  0x97   : > { %824 = vbcast.lane.b32.xlu0 %v2976_v41, 336 }
  0x9a   : > { %828 = vbcast.lane.b32.xlu1 %v2976_v41, 344 }
  0x9b   : > { %832 = vbcast.lane.b32.xlu0 %v2976_v41, 352 }
  0x9e   : > { %836 = vbcast.lane.b32.xlu1 %v2976_v41, 360 }
  0x9f   : > { %840 = vbcast.lane.b32.xlu0 %v2976_v41, 368 }
  0xa2   : > { %844 = vbcast.lane.b32.xlu1 %v2976_v41, 376 }
  0xa3   : > { %1157 = vbcast.lane.b32.xlu0 %v2977_v42, 256 }
  0xa6   : > { %1161 = vbcast.lane.b32.xlu1 %v2977_v42, 264 }
  0xa7   : > { %1165 = vbcast.lane.b32.xlu0 %v2977_v42, 272 }
  0xaa   : > { %1169 = vbcast.lane.b32.xlu1 %v2977_v42, 280 }
  0xab   : > { %1173 = vbcast.lane.b32.xlu0 %v2977_v42, 288 }
  0xae   : > { %1177 = vbcast.lane.b32.xlu1 %v2977_v42, 296 }
  0xaf   : > { %1181 = vbcast.lane.b32.xlu0 %v2977_v42, 304 }
  0xb2   : > { %1185 = vbcast.lane.b32.xlu1 %v2977_v42, 312 }
  0xb3   : > { %1189 = vbcast.lane.b32.xlu0 %v2977_v42, 320 }
  0xb6   : > { %1193 = vbcast.lane.b32.xlu1 %v2977_v42, 328 }
  0xb7   : > { %1197 = vbcast.lane.b32.xlu0 %v2977_v42, 336 }
  0xba   : > { %1201 = vbcast.lane.b32.xlu1 %v2977_v42, 344 }
  0xbb   : > { %1205 = vbcast.lane.b32.xlu0 %v2977_v42, 352 }
  0xbe   : > { %1209 = vbcast.lane.b32.xlu1 %v2977_v42, 360 }
  0xbf   : > { %1213 = vbcast.lane.b32.xlu0 %v2977_v42, 368 }
  0xc2   : > { %1217 = vbcast.lane.b32.xlu1 %v2977_v42, 376 }
  0xc3   : > { %1498 = vbcast.lane.b32.xlu0 %v2978_v44, 256 }
  0xc6   : > { %1502 = vbcast.lane.b32.xlu1 %v2978_v44, 264 }
  0xc7   : > { %1506 = vbcast.lane.b32.xlu0 %v2978_v44, 272 }
  0xca   : > { %1510 = vbcast.lane.b32.xlu1 %v2978_v44, 280 }
  0xcb   : > { %1514 = vbcast.lane.b32.xlu0 %v2978_v44, 288 }
  0xce   : > { %1518 = vbcast.lane.b32.xlu1 %v2978_v44, 296 }
  0xcf   : > { %1522 = vbcast.lane.b32.xlu0 %v2978_v44, 304 }
  0xd2   : > { %v348_v45 = vpop.xlane.xlu1 %347  ;;  %v342_v46 = vpop.xlane.xlu0 %341  ;;  %1526 = vbcast.lane.b32.xlu1 %v2978_v44, 312 }
  0xd3   : > { %1530 = vbcast.lane.b32.xlu0 %v2978_v44, 320  ;;  %v366_v2 = vmul.f32 0.0009765625, %v348_v45  ;;  %v364_v5 = vmul.f32 0.0009765625, %v342_v46 }
  0xd5   : > { %v3278_v10 = vrot.slane %v366_v2, %v375_v1  ;;  %v3280_v12 = vrot.slane %v366_v2, %v748_v3  ;;  %v3282_v13 = vrot.slane %v366_v2, %v1121_v4  ;;  %v3284_v14 = vrot.slane %v364_v5, %v375_v1 }
  0xd6   : > { %v351_v47 = vpop.xlane.xlu1 %350  ;;  %v345_v48 = vpop.xlane.xlu0 %344  ;;  %1534 = vbcast.lane.b32.xlu1 %v2978_v44, 328  ;;  %v3290_v18 = vrot.slane %v364_v5, %v748_v3  ;;  %v3292_v19 = vrot.slane %v364_v5, %v1121_v4 }
  0xd7   : > { %1538 = vbcast.lane.b32.xlu0 %v2978_v44, 336  ;;  %v367_v8 = vmul.f32 0.0009765625, %v351_v47  ;;  %v365_v9 = vmul.f32 0.0009765625, %v345_v48 }
  0xd8   : > { %5574 = vst [vmem:[#allocation22_spill] sm:$0xff] %v3292_v19 }
  0xd9   : > { %v3294_v22 = vrot.slane %v367_v8, %v375_v1  ;;  %v3296_v23 = vrot.slane %v367_v8, %v748_v3  ;;  %v3298_v24 = vrot.slane %v367_v8, %v1121_v4  ;;  %v3300_v25 = vrot.slane %v365_v9, %v375_v1 }
  0xda   : > { %v357_v49 = vpop.xlane.xlu1 %356  ;;  %v354_v50 = vpop.xlane.xlu0 %353  ;;  %1542 = vbcast.lane.b32.xlu1 %v2978_v44, 344  ;;  %v3302_v26 = vrot.slane %v365_v9, %v748_v3  ;;  %v3304_v27 = vrot.slane %v365_v9, %v1121_v4 }
  0xdb   : > { %1546 = vbcast.lane.b32.xlu0 %v2978_v44, 352  ;;  %v369_v11 = vmul.f32 0.0009765625, %v357_v49  ;;  %v368_v15 = vmul.f32 0.0009765625, %v354_v50 }
  0xdc   : > { %5575 = vst [vmem:[#allocation23_spill] sm:$0xff] %v3304_v27 }
  0xdd   : > { %v3306_v28 = vrot.slane %v369_v11, %v375_v1  ;;  %v3308_v29 = vrot.slane %v369_v11, %v748_v3  ;;  %v3310_v30 = vrot.slane %v369_v11, %v1121_v4  ;;  %v3312_v31 = vrot.slane %v368_v15, %v375_v1 }
  0xde   : > { %v363_v51 = vpop.xlane.xlu1 %362  ;;  %v360_v52 = vpop.xlane.xlu0 %359  ;;  %1550 = vbcast.lane.b32.xlu1 %v2978_v44, 360  ;;  %v3314_v32 = vrot.slane %v368_v15, %v748_v3  ;;  %v3316_v33 = vrot.slane %v368_v15, %v1121_v4 }
  0xdf   : > { %1554 = vbcast.lane.b32.xlu0 %v2978_v44, 368  ;;  %v371_v20 = vmul.f32 0.0009765625, %v363_v51  ;;  %v370_v21 = vmul.f32 0.0009765625, %v360_v52  ;;  %5576 = vst [vmem:[#allocation24_spill] sm:$0xff] %v3306_v28  ;;  %5577 = vst [vmem:[#allocation25_spill] sm:$0xff] %v3308_v29 }
  0xe0   : > { %5578 = vst [vmem:[#allocation26_spill] sm:$0xff] %v3310_v30  ;;  %5579 = vst [vmem:[#allocation27_spill] sm:$0xff] %v3314_v32 }
  0xe1   : > { %5580 = vst [vmem:[#allocation28_spill] sm:$0xff] %v3316_v33  ;;  %v3322_v36 = vrot.slane %v371_v20, %v375_v1  ;;  %v3324_v37 = vrot.slane %v371_v20, %v748_v3  ;;  %v3326_v38 = vrot.slane %v371_v20, %v1121_v4  ;;  %v3328_v39 = vrot.slane %v370_v21, %v375_v1 }
  0xe2   : > { %v3248_v53 = vpop.permute.xlu1 %415  ;;  %v3250_v54 = vpop.permute.xlu0 %411  ;;  %1558 = vbcast.lane.b32.xlu1 %v2978_v44, 376  ;;  %v3338_v44 = vrot.slane %v370_v21, %v748_v3  ;;  %v3340_v45 = vrot.slane %v370_v21, %v1121_v4 }
  0xe3   : > { %5559 = vst [vmem:[#allocation7_spill] sm:$0xff] %v3248_v53  ;;  %5560 = vst [vmem:[#allocation8_spill] sm:$0xff] %v3250_v54  ;;  %v521_v40 = vmul.f32 %v3250_v54, %v3278_v10  ;;  %v537_v42 = vmul.f32 %v3250_v54, %v3294_v22  ;;  %v3344_v46 = vmul.f32 %v3250_v54, %v3284_v14 }
  0xe4   : > { %5583 = vst [vmem:[#allocation31_spill] sm:$0xff] %v3322_v36  ;;  %5584 = vst [vmem:[#allocation32_spill] sm:$0xff] %v3324_v37  ;;  %v3354_v50 = vmul.f32 %v3248_v53, %v3284_v14  ;;  %v3364_v2 = vmul.f32 %v3248_v53, %v3300_v25  ;;  %v3368_v3 = vmul.f32 %v3250_v54, %v3300_v25 }
  0xe5   : > { %5585 = vst [vmem:[#allocation33_spill] sm:$0xff] %v3326_v38  ;;  %5586 = vst [vmem:[#allocation34_spill] sm:$0xff] %v3328_v39  ;;  %v553_v4 = vmul.f32 %v3250_v54, %v3312_v31  ;;  %v569_v5 = vmul.f32 %v3250_v54, %v3306_v28  ;;  %v522_v20 = vmul.f32 %v3248_v53, %v3278_v10 }
  0xe6   : > { %v3252_v55 = vpop.permute.xlu1 %419  ;;  %v3254_v56 = vpop.permute.xlu0 %427  ;;  %5587 = vst [vmem:[#allocation35_spill] sm:$0xff] %v3338_v44  ;;  %5588 = vst [vmem:[#allocation36_spill] sm:$0xff] %v3340_v45  ;;  %v538_v21 = vmul.f32 %v3248_v53, %v3294_v22  ;;  %v3402_v38 = vmul.f32 %v3248_v53, %v3306_v28 }
  0xe7   : > { %5561 = vst [vmem:[#allocation9_spill] sm:$0xff] %v3252_v55  ;;  %5562 = vst [vmem:[#allocation10_spill] sm:$0xff] %v3254_v56  ;;  %v523_v8 = vmul.f32 %v3252_v55, %v3278_v10  ;;  %v539_v11 = vmul.f32 %v3252_v55, %v3294_v22  ;;  %v3408_v36 = vmul.f32 %v3252_v55, %v3284_v14 }
  0xe8   : > { %5591 = vst [vmem:[#allocation39_spill] sm:$0xff] %v3354_v50  ;;  %5592 = vst [vmem:[#allocation40_spill] sm:$0xff] %v3364_v2  ;;  %v3432_v45 = vmul.f32 %v3254_v56, %v3300_v25  ;;  %v3436_v44 = vmul.f32 %v3252_v55, %v3312_v31 }
  0xe9   : > { %5597 = vst [vmem:[#allocation45_spill] sm:$0xff] %v3402_v38  ;;  %5599 = vst [vmem:[#allocation47_spill] sm:$0xff] %v3408_v36 }
  0xea   : > { %v3256_v57 = vpop.permute.xlu1 %423  ;;  %v3258_v58 = vpop.permute.xlu0 %435  ;;  %5602 = vst [vmem:[#allocation50_spill] sm:$0xff] %v3432_v45  ;;  %5603 = vst [vmem:[#allocation51_spill] sm:$0xff] %v3436_v44 }
  0xeb   : > { %5563 = vst [vmem:[#allocation11_spill] sm:$0xff] %v3256_v57  ;;  %5564 = vst [vmem:[#allocation12_spill] sm:$0xff] %v3258_v58  ;;  %v524_v33 = vmul.f32 %v3256_v57, %v3278_v10  ;;  %v527_v44 = vmul.f32 %v3258_v58, %v3278_v10  ;;  %v543_v45 = vmul.f32 %v3258_v58, %v3294_v22 }
  0xee   : > { %v3260_v60 = vpop.permute.xlu1 %431  ;;  %v3262_v61 = vpop.permute.xlu0 %443 }
  0xef   : > { %5565 = vst [vmem:[#allocation13_spill] sm:$0xff] %v3260_v60  ;;  %5566 = vst [vmem:[#allocation14_spill] sm:$0xff] %v3262_v61 }
  0xf2   : > { %v3267_v63 = vpop.permute.xlu1 %439  ;;  %v3269_v0 = vpop.permute.xlu0 %451 }
  0xf3   : > { %5568 = vst [vmem:[#allocation16_spill] sm:$0xff] %v3267_v63  ;;  %5569 = vst [vmem:[#allocation17_spill] sm:$0xff] %v3269_v0 }
  0xf6   : > { %v3274_v6 = vpop.permute.xlu1 %447  ;;  %v3276_v7 = vpop.permute.xlu0 %459 }
  0xf7   : > { %5570 = vst [vmem:[#allocation18_spill] sm:$0xff] %v3274_v6  ;;  %5571 = vst [vmem:[#allocation19_spill] sm:$0xff] %v3276_v7 }
  0xfa   : > { %v3286_v16 = vpop.permute.xlu1 %455  ;;  %v3288_v17 = vpop.permute.xlu0 %467 }
  0xfb   : > { %5572 = vst [vmem:[#allocation20_spill] sm:$0xff] %v3286_v16  ;;  %5573 = vst [vmem:[#allocation21_spill] sm:$0xff] %v3288_v17 }
  0xfe   : > { %v3318_v34 = vpop.permute.xlu1 %463  ;;  %v3320_v35 = vpop.permute.xlu0 %784 }
  0xff   : > { %5581 = vst [vmem:[#allocation29_spill] sm:$0xff] %v3318_v34  ;;  %5582 = vst [vmem:[#allocation30_spill] sm:$0xff] %v3320_v35  ;;  %v894_v41 = vmul.f32 %v3320_v35, %v3280_v12  ;;  %v910_v43 = vmul.f32 %v3320_v35, %v3296_v23  ;;  %v926_v47 = vmul.f32 %v3320_v35, %v3314_v32 }
 0x100   : > { %v942_v1 = vmul.f32 %v3320_v35, %v3308_v29 }
 0x101   : > { %v3356_v51 = vadd.f32 %v894_v41, %v521_v40  ;;  %v3358_v52 = vadd.f32 %v910_v43, %v537_v42  ;;  %v3388_v40 = vmul.f32 %v3248_v53, %v3312_v31  ;;  %v3390_v41 = vadd.f32 %v926_v47, %v553_v4 }
 0x102   : > { %v3348_v48 = vpop.permute.xlu1 %471  ;;  %v3350_v49 = vpop.permute.xlu0 %792  ;;  %v3404_v37 = vadd.f32 %v942_v1, %v569_v5  ;;  %v3412_v47 = vmul.f32 %v3254_v56, %v3284_v14  ;;  %v525_v4 = vmul.f32 %v3254_v56, %v3278_v10 }
 0x103   : > { %5589 = vst [vmem:[#allocation37_spill] sm:$0xff] %v3348_v48  ;;  %5590 = vst [vmem:[#allocation38_spill] sm:$0xff] %v3350_v49  ;;  %v896_v9 = vmul.f32 %v3350_v49, %v3280_v12  ;;  %v912_v15 = vmul.f32 %v3350_v49, %v3296_v23 }
 0x104   : > { %5593 = vst [vmem:[#allocation41_spill] sm:$0xff] %v3388_v40  ;;  %5594 = vst [vmem:[#allocation42_spill] sm:$0xff] %v3390_v41 }
 0x105   : > { %v3396_v59 = vadd.f32 %v896_v9, %v523_v8  ;;  %v3398_v62 = vadd.f32 %v912_v15, %v539_v11  ;;  %5598 = vst [vmem:[#allocation46_spill] sm:$0xff] %v3404_v37  ;;  %5600 = vst [vmem:[#allocation48_spill] sm:$0xff] %v3412_v47  ;;  %v541_v8 = vmul.f32 %v3254_v56, %v3294_v22 }
 0x106   : > { %v3392_v42 = vpop.permute.xlu1 %788  ;;  %v3394_v43 = vpop.permute.xlu0 %800  ;;  %v3428_v15 = vmul.f32 %v3252_v55, %v3300_v25  ;;  %v3440_v37 = vmul.f32 %v3254_v56, %v3312_v31 }
 0x107   : > { %5595 = vst [vmem:[#allocation43_spill] sm:$0xff] %v3392_v42  ;;  %5596 = vst [vmem:[#allocation44_spill] sm:$0xff] %v3394_v43  ;;  %v895_v9 = vmul.f32 %v3392_v42, %v3280_v12  ;;  %v898_v1 = vmul.f32 %v3394_v43, %v3280_v12  ;;  %v911_v5 = vmul.f32 %v3392_v42, %v3296_v23 }
 0x108   : > { %v914_v11 = vmul.f32 %v3394_v43, %v3296_v23  ;;  %5601 = vst [vmem:[#allocation49_spill] sm:$0xff] %v3428_v15  ;;  %5604 = vst [vmem:[#allocation52_spill] sm:$0xff] %v3440_v37  ;;  %v540_v37 = vmul.f32 %v3256_v57, %v3294_v22  ;;  %v547_v15 = vmul.f32 %v3269_v0, %v3294_v22 }
 0x109   : > { %v3446_v29 = vadd.f32 %v895_v9, %v522_v20  ;;  %v3448_v27 = vadd.f32 %v898_v1, %v525_v4  ;;  %v3450_v41 = vadd.f32 %v911_v5, %v538_v21  ;;  %v3472_v9 = vmul.f32 %v3252_v55, %v3306_v28 }
 0x10a   : > { %v3442_v38 = vpop.permute.xlu1 %796  ;;  %v3444_v30 = vpop.permute.xlu0 %808  ;;  %v3452_v40 = vadd.f32 %v914_v11, %v541_v8  ;;  %v3476_v1 = vmul.f32 %v3254_v56, %v3306_v28  ;;  %v3480_v5 = vmul.f32 %v3250_v54, %v3328_v39  ;;  %v3484_v11 = vmul.f32 %v3248_v53, %v3328_v39 }
 0x10b   : > { %5605 = vst [vmem:[#allocation53_spill] sm:$0xff] %v3442_v38  ;;  %5606 = vst [vmem:[#allocation54_spill] sm:$0xff] %v3444_v30  ;;  %v897_v20 = vmul.f32 %v3442_v38, %v3280_v12  ;;  %v900_v21 = vmul.f32 %v3444_v30, %v3280_v12  ;;  %v913_v4 = vmul.f32 %v3442_v38, %v3296_v23 }
 0x10c   : > { %v916_v8 = vmul.f32 %v3444_v30, %v3296_v23  ;;  %5607 = vst [vmem:[#allocation55_spill] sm:$0xff] %v3472_v9  ;;  %5608 = vst [vmem:[#allocation56_spill] sm:$0xff] %v3476_v1  ;;  %v526_v54 = vmul.f32 %v3260_v60, %v3278_v10  ;;  %v542_v53 = vmul.f32 %v3260_v60, %v3294_v22 }
 0x10d   : > { %5609 = vst [vmem:[#allocation57_spill] sm:$0xff] %v3480_v5  ;;  %5610 = vst [vmem:[#allocation58_spill] sm:$0xff] %v3484_v11  ;;  %v3490_v30 = vadd.f32 %v897_v20, %v524_v33  ;;  %v3492_v47 = vadd.f32 %v900_v21, %v527_v44  ;;  %v3494_v9 = vadd.f32 %v913_v4, %v540_v37 }
 0x10e   : > { %v3486_v2 = vpop.permute.xlu1 %804  ;;  %v3488_v38 = vpop.permute.xlu0 %816  ;;  %v3496_v50 = vadd.f32 %v916_v8, %v543_v45  ;;  %v529_v5 = vmul.f32 %v3262_v61, %v3278_v10  ;;  %v545_v11 = vmul.f32 %v3262_v61, %v3294_v22  ;;  %v3516_v20 = vmul.f32 %v3256_v57, %v3284_v14 }
 0x10f   : > { %5611 = vst [vmem:[#allocation59_spill] sm:$0xff] %v3486_v2  ;;  %5612 = vst [vmem:[#allocation60_spill] sm:$0xff] %v3488_v38  ;;  %v899_v33 = vmul.f32 %v3486_v2, %v3280_v12  ;;  %v902_v37 = vmul.f32 %v3488_v38, %v3280_v12  ;;  %v915_v44 = vmul.f32 %v3486_v2, %v3296_v23 }
 0x110   : > { %v918_v45 = vmul.f32 %v3488_v38, %v3296_v23  ;;  %5613 = vst [vmem:[#allocation61_spill] sm:$0xff] %v3516_v20  ;;  %v3520_v21 = vmul.f32 %v3258_v58, %v3284_v14  ;;  %v3524_v4 = vmul.f32 %v3256_v57, %v3300_v25  ;;  %v3528_v8 = vmul.f32 %v3258_v58, %v3300_v25 }
 0x111   : > { %v3534_v38 = vadd.f32 %v899_v33, %v526_v54  ;;  %v3536_v19 = vadd.f32 %v902_v37, %v529_v5  ;;  %v3538_v20 = vadd.f32 %v915_v44, %v542_v53  ;;  %v3560_v33 = vmul.f32 %v3256_v57, %v3312_v31 }
 0x112   : > { %5614 = vst [vmem:[#allocation62_spill] sm:$0xff] %v3520_v21  ;;  %5615 = vst [vmem:[#allocation63_spill] sm:$0xff] %v3524_v4  ;;  %v3530_v1 = vpop.permute.xlu1 %812  ;;  %v3532_v2 = vpop.permute.xlu0 %824  ;;  %v3540_v32 = vadd.f32 %v918_v45, %v545_v11  ;;  %v528_v21 = vmul.f32 %v3267_v63, %v3278_v10  ;;  %v531_v4 = vmul.f32 %v3269_v0, %v3278_v10 }
 0x113   : > { %5616 = vst [vmem:[#allocation64_spill] sm:$0xff] %v3528_v8  ;;  %5617 = vst [vmem:[#allocation65_spill] sm:$0xff] %v3530_v1  ;;  %v544_v8 = vmul.f32 %v3267_v63, %v3294_v22  ;;  %v901_v54 = vmul.f32 %v3530_v1, %v3280_v12  ;;  %v904_v53 = vmul.f32 %v3532_v2, %v3280_v12 }
 0x114   : > { %5618 = vst [vmem:[#allocation66_spill] sm:$0xff] %v3532_v2  ;;  %5619 = vst [vmem:[#allocation67_spill] sm:$0xff] %v3540_v32  ;;  %v917_v5 = vmul.f32 %v3530_v1, %v3296_v23  ;;  %v920_v11 = vmul.f32 %v3532_v2, %v3296_v23  ;;  %v3564_v37 = vmul.f32 %v3258_v58, %v3312_v31 }
 0x115   : > { %5620 = vst [vmem:[#allocation68_spill] sm:$0xff] %v3560_v33  ;;  %v3568_v44 = vmul.f32 %v3256_v57, %v3306_v28  ;;  %v3572_v45 = vmul.f32 %v3258_v58, %v3306_v28  ;;  %v3578_v2 = vadd.f32 %v901_v54, %v528_v21  ;;  %v3580_v36 = vadd.f32 %v904_v53, %v531_v4 }
 0x116   : > { %5621 = vst [vmem:[#allocation69_spill] sm:$0xff] %v3564_v37  ;;  %v3574_v1 = vpop.permute.xlu1 %820  ;;  %v3576_v43 = vpop.permute.xlu0 %832  ;;  %v3582_v33 = vadd.f32 %v917_v5, %v544_v8  ;;  %v3584_v42 = vadd.f32 %v920_v11, %v547_v15  ;;  %v530_v37 = vmul.f32 %v3274_v6, %v3278_v10  ;;  %v549_v32 = vmul.f32 %v3276_v7, %v3294_v22 }
 0x117   : > { %5622 = vst [vmem:[#allocation70_spill] sm:$0xff] %v3568_v44  ;;  %5623 = vst [vmem:[#allocation71_spill] sm:$0xff] %v3572_v45  ;;  %v533_v44 = vmul.f32 %v3276_v7, %v3278_v10  ;;  %v546_v45 = vmul.f32 %v3274_v6, %v3294_v22  ;;  %v903_v21 = vmul.f32 %v3574_v1, %v3280_v12 }
 0x118   : > { %5624 = vst [vmem:[#allocation72_spill] sm:$0xff] %v3574_v1  ;;  %5625 = vst [vmem:[#allocation73_spill] sm:$0xff] %v3576_v43  ;;  %v906_v4 = vmul.f32 %v3576_v43, %v3280_v12  ;;  %v919_v15 = vmul.f32 %v3574_v1, %v3296_v23  ;;  %v922_v8 = vmul.f32 %v3576_v43, %v3296_v23 }
 0x119   : > { %5626 = vst [vmem:[#allocation74_spill] sm:$0xff] %v3580_v36  ;;  %5627 = vst [vmem:[#allocation75_spill] sm:$0xff] %v3582_v33  ;;  %v3604_v54 = vmul.f32 %v3260_v60, %v3284_v14  ;;  %v3608_v53 = vmul.f32 %v3262_v61, %v3284_v14  ;;  %v3612_v5 = vmul.f32 %v3260_v60, %v3300_v25 }
 0x11a   : > { %5628 = vst [vmem:[#allocation76_spill] sm:$0xff] %v3584_v42  ;;  %v3616_v11 = vmul.f32 %v3252_v55, %v3328_v39  ;;  %v3618_v1 = vpop.permute.xlu1 %828  ;;  %v3620_v42 = vpop.permute.xlu0 %840  ;;  %v3622_v43 = vadd.f32 %v903_v21, %v530_v37  ;;  %v3624_v33 = vadd.f32 %v906_v4, %v533_v44  ;;  %v3628_v36 = vadd.f32 %v922_v8, %v549_v32 }
 0x11b   : > { %5629 = vst [vmem:[#allocation77_spill] sm:$0xff] %v3604_v54  ;;  %5630 = vst [vmem:[#allocation78_spill] sm:$0xff] %v3608_v53  ;;  %v3626_v54 = vadd.f32 %v919_v15, %v546_v45  ;;  %v532_v53 = vmul.f32 %v3286_v16, %v3278_v10  ;;  %v548_v55 = vmul.f32 %v3286_v16, %v3294_v22 }
 0x11c   : > { %5631 = vst [vmem:[#allocation79_spill] sm:$0xff] %v3612_v5  ;;  %5632 = vst [vmem:[#allocation80_spill] sm:$0xff] %v3616_v11  ;;  %v535_v5 = vmul.f32 %v3288_v17, %v3278_v10  ;;  %v551_v11 = vmul.f32 %v3288_v17, %v3294_v22  ;;  %v905_v37 = vmul.f32 %v3618_v1, %v3280_v12 }
 0x11d   : > { %5633 = vst [vmem:[#allocation81_spill] sm:$0xff] %v3618_v1  ;;  %5634 = vst [vmem:[#allocation82_spill] sm:$0xff] %v3620_v42  ;;  %v908_v44 = vmul.f32 %v3620_v42, %v3280_v12  ;;  %v921_v32 = vmul.f32 %v3618_v1, %v3296_v23  ;;  %v924_v45 = vmul.f32 %v3620_v42, %v3296_v23 }
 0x11e   : > { %5635 = vst [vmem:[#allocation83_spill] sm:$0xff] %v3624_v33  ;;  %5636 = vst [vmem:[#allocation84_spill] sm:$0xff] %v3626_v54  ;;  %v3648_v21 = vmul.f32 %v3262_v61, %v3300_v25  ;;  %v3652_v4 = vmul.f32 %v3260_v60, %v3312_v31  ;;  %v3656_v15 = vmul.f32 %v3262_v61, %v3312_v31  ;;  %v3662_v1 = vpop.permute.xlu1 %836 }
 0x11f   : > { %5637 = vst [vmem:[#allocation85_spill] sm:$0xff] %v3628_v36  ;;  %v3660_v8 = vmul.f32 %v3260_v60, %v3306_v28  ;;  %5642 = vst [vmem:[#allocation90_spill] sm:$0xff] %v3662_v1  ;;  %v3664_v36 = vpop.permute.xlu0 %1157  ;;  %v3666_v42 = vadd.f32 %v905_v37, %v532_v53  ;;  %v3668_v54 = vadd.f32 %v908_v44, %v535_v5 }
 0x120   : > { %5638 = vst [vmem:[#allocation86_spill] sm:$0xff] %v3648_v21  ;;  %5639 = vst [vmem:[#allocation87_spill] sm:$0xff] %v3652_v4  ;;  %v3670_v21 = vadd.f32 %v921_v32, %v548_v55  ;;  %v3672_v33 = vadd.f32 %v924_v45, %v551_v11  ;;  %v534_v4 = vmul.f32 %v3318_v34, %v3278_v10 }
 0x121   : > { %5640 = vst [vmem:[#allocation88_spill] sm:$0xff] %v3656_v15  ;;  %5641 = vst [vmem:[#allocation89_spill] sm:$0xff] %v3660_v8  ;;  %v550_v15 = vmul.f32 %v3318_v34, %v3294_v22  ;;  %v3680_v8 = vmul.f32 %v3262_v61, %v3306_v28  ;;  %v3684_v53 = vmul.f32 %v3256_v57, %v3328_v39 }
 0x122   : > { %5643 = vst [vmem:[#allocation91_spill] sm:$0xff] %v3664_v36  ;;  %v1267_v55 = vmul.f32 %v3664_v36, %v3282_v13  ;;  %v907_v5 = vmul.f32 %v3662_v1, %v3280_v12  ;;  %v1283_v11 = vmul.f32 %v3664_v36, %v3298_v24  ;;  %v923_v37 = vmul.f32 %v3662_v1, %v3296_v23 }
 0x123   : > { %5644 = vst [vmem:[#allocation92_spill] sm:$0xff] %v3680_v8  ;;  %5645 = vst [vmem:[#allocation93_spill] sm:$0xff] %v3684_v53  ;;  %v3696_v44 = vmul.f32 %v3267_v63, %v3284_v14  ;;  %v3700_v32 = vmul.f32 %v3269_v0, %v3284_v14  ;;  %v3704_v45 = vmul.f32 %v3254_v56, %v3328_v39  ;;  %v3710_v53 = vpop.permute.xlu1 %844  ;;  %v3712_v61 = vpop.permute.xlu0 %1165 }
 0x124   : > { %v3708_v57 = vmul.f32 %v3258_v58, %v3328_v39  ;;  %5650 = vst [vmem:[#allocation98_spill] sm:$0xff] %v3710_v53  ;;  %v3715_v8 = vadd.f32 %v1267_v55, %v3356_v51  ;;  %v3717_v1 = vadd.f32 %v907_v5, %v534_v4  ;;  %v3726_v56 = vmul.f32 %v3267_v63, %v3300_v25 }
 0x125   : > { %5646 = vst [vmem:[#allocation94_spill] sm:$0xff] %v3696_v44  ;;  %5647 = vst [vmem:[#allocation95_spill] sm:$0xff] %v3700_v32  ;;  %v3720_v44 = vadd.f32 %v1283_v11, %v3358_v52  ;;  %v3722_v32 = vadd.f32 %v923_v37, %v550_v15  ;;  %v3730_v58 = vmul.f32 %v3269_v0, %v3300_v25 }
 0x126   : > { %5648 = vst [vmem:[#allocation96_spill] sm:$0xff] %v3704_v45  ;;  %5649 = vst [vmem:[#allocation97_spill] sm:$0xff] %v3708_v57  ;;  %v536_v57 = vmul.f32 %v3348_v48, %v3278_v10  ;;  %v552_v51 = vmul.f32 %v3348_v48, %v3294_v22  ;;  %v1269_v52 = vmul.f32 %v3712_v61, %v3282_v13 }
 0x127   : > { %5651 = vst [vmem:[#allocation99_spill] sm:$0xff] %v3715_v8  ;;  %5652 = vst [vmem:[#allocation100_spill] sm:$0xff] %v3720_v44  ;;  %v909_v4 = vmul.f32 %v3710_v53, %v3280_v12  ;;  %v1285_v15 = vmul.f32 %v3712_v61, %v3298_v24  ;;  %v925_v55 = vmul.f32 %v3710_v53, %v3296_v23  ;;  %v3760_v11 = vpop.permute.xlu1 %1161  ;;  %v3762_v37 = vpop.permute.xlu0 %1173 }
 0x128   : > { %v3746_v5 = vmul.f32 %v3267_v63, %v3312_v31  ;;  %v3750_v10 = vmul.f32 %v3269_v0, %v3312_v31  ;;  %v3754_v22 = vmul.f32 %v3267_v63, %v3306_v28  ;;  %v3758_v12 = vmul.f32 %v3269_v0, %v3306_v28 }
 0x129   : > { %v3765_v23 = vadd.f32 %v1269_v52, %v3396_v59  ;;  %v3767_v44 = vadd.f32 %v909_v4, %v536_v57  ;;  %v3770_v45 = vadd.f32 %v1285_v15, %v3398_v62  ;;  %v3772_v8 = vadd.f32 %v925_v55, %v552_v51 }
 0x12a   : > { %5653 = vst [vmem:[#allocation101_spill] sm:$0xff] %v3746_v5  ;;  %5654 = vst [vmem:[#allocation102_spill] sm:$0xff] %v3750_v10  ;;  %v3776_v63 = vmul.f32 %v3274_v6, %v3284_v14  ;;  %v3780_v0 = vmul.f32 %v3276_v7, %v3284_v14  ;;  %v3788_v57 = vmul.f32 %v3260_v60, %v3328_v39 }
 0x12b   : > { %5655 = vst [vmem:[#allocation103_spill] sm:$0xff] %v3754_v22  ;;  %5656 = vst [vmem:[#allocation104_spill] sm:$0xff] %v3758_v12  ;;  %v3784_v12 = vmul.f32 %v3274_v6, %v3300_v25  ;;  %v1268_v59 = vmul.f32 %v3760_v11, %v3282_v13  ;;  %v1271_v62 = vmul.f32 %v3762_v37, %v3282_v13  ;;  %v3814_v60 = vpop.permute.xlu1 %1169 }
 0x12c   : > { %5657 = vst [vmem:[#allocation105_spill] sm:$0xff] %v3765_v23  ;;  %5658 = vst [vmem:[#allocation106_spill] sm:$0xff] %v3770_v45  ;;  %v1284_v51 = vmul.f32 %v3760_v11, %v3298_v24  ;;  %v1287_v52 = vmul.f32 %v3762_v37, %v3298_v24  ;;  %v3800_v4 = vmul.f32 %v3276_v7, %v3300_v25 }
 0x12d   : > { %5659 = vst [vmem:[#allocation107_spill] sm:$0xff] %v3788_v57  ;;  %v3804_v15 = vmul.f32 %v3274_v6, %v3312_v31  ;;  %v3808_v55 = vmul.f32 %v3276_v7, %v3312_v31  ;;  %v3812_v45 = vmul.f32 %v3274_v6, %v3306_v28  ;;  %5663 = vst [vmem:[#allocation111_spill] sm:$0xff] %v3814_v60  ;;  %v3816_v57 = vpop.permute.xlu0 %1181 }
 0x12e   : > { %5664 = vst [vmem:[#allocation112_spill] sm:$0xff] %v3816_v57  ;;  %v3819_v23 = vadd.f32 %v1268_v59, %v3446_v29  ;;  %v3822_v39 = vadd.f32 %v1271_v62, %v3448_v27  ;;  %v3825_v22 = vadd.f32 %v1284_v51, %v3450_v41  ;;  %v3828_v10 = vadd.f32 %v1287_v52, %v3452_v40 }
 0x12f   : > { %5660 = vst [vmem:[#allocation108_spill] sm:$0xff] %v3804_v15  ;;  %5661 = vst [vmem:[#allocation109_spill] sm:$0xff] %v3808_v55  ;;  %v3832_v6 = vmul.f32 %v3286_v16, %v3284_v14  ;;  %v3840_v29 = vmul.f32 %v3286_v16, %v3300_v25  ;;  %v3844_v27 = vmul.f32 %v3276_v7, %v3306_v28 }
 0x130   : > { %5662 = vst [vmem:[#allocation110_spill] sm:$0xff] %v3812_v45  ;;  %5665 = vst [vmem:[#allocation113_spill] sm:$0xff] %v3819_v23  ;;  %v3836_v45 = vmul.f32 %v3288_v17, %v3284_v14  ;;  %v1270_v40 = vmul.f32 %v3814_v60, %v3282_v13  ;;  %v1273_v41 = vmul.f32 %v3816_v57, %v3282_v13 }
 0x131   : > { %5666 = vst [vmem:[#allocation114_spill] sm:$0xff] %v3822_v39  ;;  %5667 = vst [vmem:[#allocation115_spill] sm:$0xff] %v3825_v22  ;;  %v1286_v59 = vmul.f32 %v3814_v60, %v3298_v24  ;;  %v1289_v62 = vmul.f32 %v3816_v57, %v3298_v24  ;;  %v862_v51 = vmul.f32 %v3320_v35, %v3290_v18  ;;  %v3866_v22 = vpop.permute.xlu1 %1177  ;;  %v3868_v39 = vpop.permute.xlu0 %1189 }
 0x132   : > { %5668 = vst [vmem:[#allocation116_spill] sm:$0xff] %v3828_v10  ;;  %5669 = vst [vmem:[#allocation117_spill] sm:$0xff] %v3836_v45  ;;  %v878_v52 = vmul.f32 %v3320_v35, %v3302_v26  ;;  %v3860_v10 = vmul.f32 %v3288_v17, %v3300_v25  ;;  %v3864_v7 = vmul.f32 %v3286_v16, %v3312_v31 }
 0x133   : > { %5670 = vst [vmem:[#allocation118_spill] sm:$0xff] %v3840_v29  ;;  %5671 = vst [vmem:[#allocation119_spill] sm:$0xff] %v3844_v27  ;;  %v3871_v23 = vadd.f32 %v1270_v40, %v3490_v30  ;;  %v3874_v27 = vadd.f32 %v1273_v41, %v3492_v47  ;;  %v3877_v35 = vadd.f32 %v1286_v59, %v3494_v9 }
 0x134   : > { %5672 = vst [vmem:[#allocation120_spill] sm:$0xff] %v3860_v10  ;;  %5673 = vst [vmem:[#allocation121_spill] sm:$0xff] %v3864_v7  ;;  %v3880_v55 = vadd.f32 %v1289_v62, %v3496_v50  ;;  %v3884_v15 = vmul.f32 %v3318_v34, %v3284_v14  ;;  %v3888_v7 = vmul.f32 %v3288_v17, %v3312_v31  ;;  %v5723_v10 = vld [vmem:[#allocation40_spill] sm:$0xff] }
 0x135   : > { %5674 = vst [vmem:[#allocation122_spill] sm:$0xff] %v3871_v23  ;;  %5675 = vst [vmem:[#allocation123_spill] sm:$0xff] %v3874_v27  ;;  %v3892_v30 = vmul.f32 %v3286_v16, %v3306_v28  ;;  %v3896_v47 = vmul.f32 %v3288_v17, %v3306_v28  ;;  %v1272_v50 = vmul.f32 %v3866_v22, %v3282_v13  ;;  %v3918_v16 = vpop.permute.xlu0 %1197 }
 0x136   : > { %5676 = vst [vmem:[#allocation124_spill] sm:$0xff] %v3877_v35  ;;  %5677 = vst [vmem:[#allocation125_spill] sm:$0xff] %v3880_v55  ;;  %v1275_v9 = vmul.f32 %v3868_v39, %v3282_v13  ;;  %v1288_v40 = vmul.f32 %v3866_v22, %v3298_v24  ;;  %v1291_v41 = vmul.f32 %v3868_v39, %v3298_v24  ;;  %v3916_v35 = vpop.permute.xlu1 %1185 }
 0x137   : > { %5678 = vst [vmem:[#allocation126_spill] sm:$0xff] %v3884_v15  ;;  %5679 = vst [vmem:[#allocation127_spill] sm:$0xff] %v3888_v7  ;;  %v990_v59 = vadd.f32 %v862_v51, %v3344_v46  ;;  %v864_v62 = vmul.f32 %v3350_v49, %v3290_v18  ;;  %v3910_v55 = vadd.f32 %v878_v52, %v3368_v3  ;;  %v5688_v51 = vld [vmem:[#allocation67_spill] sm:$0xff]  ;;  %v5722_v15 = vld [vmem:[#allocation54_spill] sm:$0xff] }
 0x138   : > { %5680 = vst [vmem:[#allocation128_spill] sm:$0xff] %v3892_v30  ;;  %5681 = vst [vmem:[#allocation129_spill] sm:$0xff] %v3896_v47  ;;  %v3914_v17 = vmul.f32 %v3318_v34, %v3300_v25  ;;  %v3921_v27 = vadd.f32 %v1272_v50, %v3534_v38  ;;  %v3924_v23 = vadd.f32 %v1275_v9, %v3536_v19  ;;  %v5699_v30 = vld [vmem:[#allocation74_spill] sm:$0xff] }
 0x139   : > { %5682 = vst [vmem:[#allocation130_spill] sm:$0xff] %v3910_v55  ;;  %5684 = vst [vmem:[#allocation132_spill] sm:$0xff] %v3918_v16  ;;  %v3927_v46 = vadd.f32 %v1288_v40, %v3538_v20  ;;  %v3930_v3 = vadd.f32 %v1291_v41, %v5688_v51  ;;  %v3934_v52 = vmul.f32 %v3348_v48, %v3284_v14  ;;  %v5693_v40 = vld [vmem:[#allocation43_spill] sm:$0xff] }
 0x13a   : > { %5683 = vst [vmem:[#allocation131_spill] sm:$0xff] %v3914_v17  ;;  %5685 = vst [vmem:[#allocation133_spill] sm:$0xff] %v3921_v27  ;;  %v880_v47 = vmul.f32 %v3350_v49, %v3302_v26  ;;  %v3940_v38 = vmul.f32 %v3318_v34, %v3312_v31  ;;  %v3944_v19 = vmul.f32 %v3318_v34, %v3306_v28  ;;  %v5694_v51 = vld [vmem:[#allocation47_spill] sm:$0xff]  ;;  %v3965_v27 = vpop.permute.xlu1 %1193  ;;  %v3967_v28 = vpop.permute.xlu0 %1205 }
 0x13b   : > { %5686 = vst [vmem:[#allocation134_spill] sm:$0xff] %v3924_v23  ;;  %5687 = vst [vmem:[#allocation135_spill] sm:$0xff] %v3927_v46  ;;  %v1274_v20 = vmul.f32 %v3916_v35, %v3282_v13  ;;  %v1277_v50 = vmul.f32 %v3918_v16, %v3282_v13  ;;  %v1290_v14 = vmul.f32 %v3916_v35, %v3298_v24  ;;  %v5695_v46 = vld [vmem:[#allocation44_spill] sm:$0xff]  ;;  %v5707_v17 = vld [vmem:[#allocation27_spill] sm:$0xff] }
 0x13c   : > { %5689 = vst [vmem:[#allocation67_spill] sm:$0xff] %v3930_v3  ;;  %5690 = vst [vmem:[#allocation136_spill] sm:$0xff] %v3934_v52  ;;  %v1293_v9 = vmul.f32 %v3918_v16, %v3298_v24  ;;  %v863_v41 = vmul.f32 %v5693_v40, %v3290_v18  ;;  %v3957_v3 = vadd.f32 %v864_v62, %v5694_v51  ;;  %v5703_v51 = vld [vmem:[#allocation76_spill] sm:$0xff]  ;;  %v5736_v16 = vld [vmem:[#allocation63_spill] sm:$0xff] }
 0x13d   : > { %5691 = vst [vmem:[#allocation137_spill] sm:$0xff] %v3940_v38  ;;  %5692 = vst [vmem:[#allocation138_spill] sm:$0xff] %v3944_v19  ;;  %v866_v34 = vmul.f32 %v5695_v46, %v3290_v18  ;;  %v3963_v23 = vmul.f32 %v3348_v48, %v3300_v25  ;;  %v3970_v19 = vadd.f32 %v1274_v20, %v3578_v2  ;;  %v5701_v38 = vld [vmem:[#allocation75_spill] sm:$0xff] }
 0x13e   : > { %5697 = vst [vmem:[#allocation139_spill] sm:$0xff] %v3967_v28  ;;  %v3973_v7 = vadd.f32 %v1277_v50, %v5699_v30  ;;  %v3976_v62 = vadd.f32 %v1290_v14, %v5701_v38  ;;  %v3979_v5 = vadd.f32 %v1293_v9, %v5703_v51  ;;  %v879_v25 = vmul.f32 %v5693_v40, %v3302_v26  ;;  %v5710_v14 = vld [vmem:[#allocation39_spill] sm:$0xff]  ;;  %v5711_v51 = vld [vmem:[#allocation48_spill] sm:$0xff] }
 0x13f   : > { %5696 = vst [vmem:[#allocation47_spill] sm:$0xff] %v3963_v23  ;;  %5698 = vst [vmem:[#allocation140_spill] sm:$0xff] %v3970_v19  ;;  %v5705_v23 = vld [vmem:[#allocation49_spill] sm:$0xff]  ;;  %v3988_v55 = vmul.f32 %v3350_v49, %v5707_v17  ;;  %v3992_v2 = vmul.f32 %v3348_v48, %v3312_v31  ;;  %v1276_v30 = vmul.f32 %v3965_v27, %v3282_v13  ;;  %v5715_v48 = vld [vmem:[#allocation83_spill] sm:$0xff] }
 0x140   : > { %5700 = vst [vmem:[#allocation74_spill] sm:$0xff] %v3973_v7  ;;  %5702 = vst [vmem:[#allocation75_spill] sm:$0xff] %v3976_v62  ;;  %v3984_v52 = vadd.f32 %v880_v47, %v5705_v23  ;;  %v1279_v38 = vmul.f32 %v3967_v28, %v3282_v13  ;;  %v1292_v20 = vmul.f32 %v3965_v27, %v3298_v24  ;;  %v5709_v47 = vld [vmem:[#allocation22_spill] sm:$0xff]  ;;  %v4010_v62 = vpop.permute.xlu1 %1201  ;;  %v4012_v7 = vpop.permute.xlu0 %1213 }
 0x141   : > { %5704 = vst [vmem:[#allocation76_spill] sm:$0xff] %v3979_v5  ;;  %5708 = vst [vmem:[#allocation27_spill] sm:$0xff] %v3992_v2  ;;  %v1295_v23 = vmul.f32 %v3967_v28, %v3298_v24  ;;  %v1235_v50 = vmul.f32 %v3664_v36, %v5709_v47  ;;  %v991_v9 = vadd.f32 %v863_v41, %v5710_v14  ;;  %v5717_v2 = vld [vmem:[#allocation84_spill] sm:$0xff]  ;;  %v5719_v41 = vld [vmem:[#allocation85_spill] sm:$0xff] }
 0x142   : > { %5706 = vst [vmem:[#allocation49_spill] sm:$0xff] %v3984_v52  ;;  %v4006_v31 = vadd.f32 %v866_v34, %v5711_v51  ;;  %v882_v5 = vmul.f32 %v5695_v46, %v3302_v26  ;;  %5712 = vst [vmem:[#allocation22_spill] sm:$0xff] %v4010_v62  ;;  %v4015_v19 = vadd.f32 %v1276_v30, %v3622_v43  ;;  %v5721_v34 = vld [vmem:[#allocation53_spill] sm:$0xff] }
 0x143   : > { %5713 = vst [vmem:[#allocation39_spill] sm:$0xff] %v4012_v7  ;;  %v4018_v49 = vadd.f32 %v1279_v38, %v5715_v48  ;;  %v4021_v52 = vadd.f32 %v1292_v20, %v5717_v2  ;;  %v4024_v14 = vadd.f32 %v1295_v23, %v5719_v41  ;;  %v865_v51 = vmul.f32 %v5721_v34, %v3290_v18  ;;  %v5725_v23 = vld [vmem:[#allocation59_spill] sm:$0xff] }
 0x144   : > { %5714 = vst [vmem:[#allocation48_spill] sm:$0xff] %v4015_v19  ;;  %v868_v28 = vmul.f32 %v5722_v15, %v3290_v18  ;;  %v4031_v53 = vadd.f32 %v879_v25, %v5723_v10  ;;  %v881_v43 = vmul.f32 %v5721_v34, %v3302_v26  ;;  %v884_v48 = vmul.f32 %v5722_v15, %v3302_v26  ;;  %v5726_v25 = vld [vmem:[#allocation50_spill] sm:$0xff]  ;;  %v5730_v19 = vld [vmem:[#allocation60_spill] sm:$0xff] }
 0x145   : > { %5716 = vst [vmem:[#allocation83_spill] sm:$0xff] %v4018_v49  ;;  %5718 = vst [vmem:[#allocation84_spill] sm:$0xff] %v4021_v52  ;;  %v1278_v2 = vmul.f32 %v4010_v62, %v3282_v13  ;;  %v1281_v30 = vmul.f32 %v4012_v7, %v3282_v13  ;;  %v1294_v38 = vmul.f32 %v4010_v62, %v3298_v24  ;;  %v4050_v52 = vpop.permute.xlu1 %1209  ;;  %v4052_v49 = vpop.permute.xlu0 %1498 }
 0x146   : > { %5720 = vst [vmem:[#allocation85_spill] sm:$0xff] %v4024_v14  ;;  %5724 = vst [vmem:[#allocation40_spill] sm:$0xff] %v4031_v53  ;;  %v1363_v20 = vadd.f32 %v1235_v50, %v990_v59  ;;  %v867_v10 = vmul.f32 %v5725_v23, %v3290_v18  ;;  %v4046_v41 = vadd.f32 %v882_v5, %v5726_v25  ;;  %v5734_v25 = vld [vmem:[#allocation61_spill] sm:$0xff] }
 0x147   : > { %v1297_v14 = vmul.f32 %v4012_v7, %v3298_v24  ;;  %5728 = vst [vmem:[#allocation141_spill] sm:$0xff] %v4050_v52  ;;  %5729 = vst [vmem:[#allocation142_spill] sm:$0xff] %v4052_v49  ;;  %v870_v53 = vmul.f32 %v5730_v19, %v3290_v18  ;;  %v4057_v15 = vadd.f32 %v1278_v2, %v3666_v42  ;;  %v5735_v7 = vld [vmem:[#allocation62_spill] sm:$0xff]  ;;  %v5738_v42 = vld [vmem:[#allocation64_spill] sm:$0xff] }
 0x148   : > { %5727 = vst [vmem:[#allocation50_spill] sm:$0xff] %v4046_v41  ;;  %v4060_v59 = vadd.f32 %v1281_v30, %v3668_v54  ;;  %v4063_v50 = vadd.f32 %v1294_v38, %v3670_v21  ;;  %v1576_v5 = vadd.f32 %v4052_v49, %v1363_v20  ;;  %v993_v41 = vadd.f32 %v865_v51, %v5734_v25  ;;  %v5744_v38 = vld [vmem:[#allocation78_spill] sm:$0xff] }
 0x149   : > { %5731 = vst [vmem:[#allocation143_spill] sm:$0xff] %v4057_v15  ;;  %v4068_v62 = vadd.f32 %v868_v28, %v5735_v7  ;;  %v883_v29 = vmul.f32 %v5725_v23, %v3302_v26  ;;  %v4073_v45 = vadd.f32 %v881_v43, %v5736_v16  ;;  %v4076_v2 = vadd.f32 %v884_v48, %v5738_v42  ;;  %v5740_v28 = vld [vmem:[#allocation77_spill] sm:$0xff]  ;;  %v4090_v43 = vpop.permute.xlu1 %1217  ;;  %v4092_v48 = vpop.permute.xlu0 %1506 }
 0x14a   : > { %5732 = vst [vmem:[#allocation144_spill] sm:$0xff] %v4060_v59  ;;  %5733 = vst [vmem:[#allocation145_spill] sm:$0xff] %v4063_v50  ;;  %v886_v54 = vmul.f32 %v5730_v19, %v3302_v26  ;;  %v1280_v21 = vmul.f32 %v4050_v52, %v3282_v13  ;;  %1833 = vperm.xlu0 %3032, %v1576_v5   ;;  %v1236_v7 = vmul.f32 %v3760_v11, %v5709_v47  ;;  %v5749_v50 = vld [vmem:[#allocation79_spill] sm:$0xff] }
 0x14b   : > { %5737 = vst [vmem:[#allocation61_spill] sm:$0xff] %v4073_v45  ;;  %5739 = vst [vmem:[#allocation62_spill] sm:$0xff] %v4076_v2  ;;  %v995_v51 = vadd.f32 %v867_v10, %v5740_v28  ;;  %v1296_v30 = vmul.f32 %v4050_v52, %v3298_v24  ;;  %v4088_v16 = vadd.f32 %v1297_v14, %v3672_v33  ;;  %v5746_v10 = vld [vmem:[#allocation28_spill] sm:$0xff]  ;;  %v5747_v28 = vld [vmem:[#allocation65_spill] sm:$0xff] }
 0x14c   : > { %5742 = vst [vmem:[#allocation64_spill] sm:$0xff] %v4090_v43  ;;  %5743 = vst [vmem:[#allocation77_spill] sm:$0xff] %v4092_v48  ;;  %v4095_v20 = vadd.f32 %v870_v53, %v5744_v38  ;;  %v4098_v5 = vadd.f32 %v1280_v21, %v3717_v1  ;;  %v927_v25 = vmul.f32 %v5693_v40, %v5707_v17  ;;  %v5748_v14 = vld [vmem:[#allocation66_spill] sm:$0xff]  ;;  %v5760_v2 = vld [vmem:[#allocation95_spill] sm:$0xff] }
 0x14d   : > { %5741 = vst [vmem:[#allocation63_spill] sm:$0xff] %v4088_v16  ;;  %v1299_v42 = vmul.f32 %v3664_v36, %v5746_v10  ;;  %v869_v33 = vmul.f32 %v5747_v28, %v3290_v18  ;;  %v872_v16 = vmul.f32 %v5748_v14, %v3290_v18  ;;  %v4109_v59 = vadd.f32 %v883_v29, %v5749_v50  ;;  %v5751_v21 = vld [vmem:[#allocation86_spill] sm:$0xff] }
 0x14e   : > { %5745 = vst [vmem:[#allocation78_spill] sm:$0xff] %v4098_v5  ;;  %v885_v53 = vmul.f32 %v5747_v28, %v3302_v26  ;;  %v1237_v1 = vmul.f32 %v3712_v61, %v5709_v47  ;;  %v4116_v38 = vadd.f32 %v886_v54, %v5751_v21  ;;  %v1282_v5 = vmul.f32 %v4090_v43, %v3282_v13  ;;  %v4131_v54 = vpop.permute.xlu0 %1514 }
 0x14f   : > { %5750 = vst [vmem:[#allocation28_spill] sm:$0xff] %v4109_v59  ;;  %v4121_v15 = vadd.f32 %v1296_v30, %v3722_v32  ;;  %v1364_v40 = vadd.f32 %v1236_v7, %v991_v9  ;;  %v1238_v29 = vmul.f32 %v3814_v60, %v5709_v47  ;;  %v1298_v50 = vmul.f32 %v4090_v43, %v3298_v24  ;;  %v4129_v59 = vpop.permute.xlu1 %1502  ;;  %v5756_v9 = vld [vmem:[#allocation41_spill] sm:$0xff]  ;;  %v5757_v30 = vld [vmem:[#allocation42_spill] sm:$0xff] }
 0x150   : > { %5752 = vst [vmem:[#allocation65_spill] sm:$0xff] %v4116_v38  ;;  %v1300_v49 = vmul.f32 %v3760_v11, %v5746_v10  ;;  %5754 = vst [vmem:[#allocation86_spill] sm:$0xff] %v4131_v54  ;;  %v888_v13 = vmul.f32 %v5748_v14, %v3302_v26  ;;  %v4136_v32 = vadd.f32 %v1282_v5, %v3767_v44  ;;  %v5761_v5 = vld [vmem:[#allocation72_spill] sm:$0xff] }
 0x151   : > { %5753 = vst [vmem:[#allocation79_spill] sm:$0xff] %v4121_v15  ;;  %v1055_v7 = vadd.f32 %v927_v25, %v5756_v9  ;;  %v4140_v21 = vadd.f32 %v1299_v42, %v5757_v30  ;;  %v1577_v24 = vadd.f32 %v4129_v59, %v1364_v40  ;;  %v5759_v15 = vld [vmem:[#allocation94_spill] sm:$0xff]  ;;  %v4145_v45 = vadd.f32 %v872_v16, %v5760_v2  ;;  %v5762_v42 = vld [vmem:[#allocation73_spill] sm:$0xff] }
 0x152   : > { %5755 = vst [vmem:[#allocation146_spill] sm:$0xff] %v4136_v32  ;;  %v997_v38 = vadd.f32 %v869_v33, %v5759_v15  ;;  %v4148_v19 = vadd.f32 %v885_v53, %v3726_v56  ;;  %v1240_v14 = vmul.f32 %v3866_v22, %v5709_v47  ;;  %v1239_v44 = vmul.f32 %v3762_v37, %v5709_v47  ;;  %v4166_v53 = vpop.permute.xlu0 %1522  ;;  %v5781_v32 = vld [vmem:[#allocation23_spill] sm:$0xff] }
 0x153   : > { %5758 = vst [vmem:[#allocation41_spill] sm:$0xff] %v4140_v21  ;;  %v871_v25 = vmul.f32 %v5761_v5, %v3290_v18  ;;  %v874_v40 = vmul.f32 %v5762_v42, %v3290_v18  ;;  %1836 = vperm.xlu1 %3033, %v1577_v24   ;;  %v1366_v15 = vadd.f32 %v1238_v29, %v993_v41  ;;  %v4164_v33 = vpop.permute.xlu1 %1510  ;;  %5766 = vst [vmem:[#allocation147_spill] sm:$0xff] %v4166_v53  ;;  %v5767_v21 = vld [vmem:[#allocation51_spill] sm:$0xff] }
 0x154   : > { %v1365_v2 = vadd.f32 %v1237_v1, %v3957_v3  ;;  %v4160_v16 = vadd.f32 %v1298_v50, %v3772_v8  ;;  %v4162_v56 = vadd.f32 %v1300_v49, %v1055_v7  ;;  %5765 = vst [vmem:[#allocation95_spill] sm:$0xff] %v4164_v33  ;;  %v887_v9 = vmul.f32 %v5761_v5, %v3302_v26 }
 0x155   : > { %v929_v30 = vmul.f32 %v5721_v34, %v5707_v17  ;;  %v1056_v41 = vadd.f32 %v3988_v55, %v5767_v21  ;;  %v1301_v3 = vmul.f32 %v3712_v61, %v5746_v10  ;;  %v1579_v8 = vadd.f32 %v4164_v33, %v1366_v15  ;;  %v5768_v15 = vld [vmem:[#allocation68_spill] sm:$0xff] }
 0x156   : > { %5763 = vst [vmem:[#allocation42_spill] sm:$0xff] %v4160_v16  ;;  %5764 = vst [vmem:[#allocation94_spill] sm:$0xff] %v4162_v56  ;;  %v1578_v49 = vadd.f32 %v4092_v48, %v1365_v2  ;;  %v4179_v1 = vadd.f32 %v888_v13, %v3730_v58  ;;  %v890_v29 = vmul.f32 %v5762_v42, %v3302_v26 }
 0x157   : > { %v1368_v50 = vadd.f32 %v1240_v14, %v995_v51  ;;  %v1367_v7 = vadd.f32 %v1239_v44, %v4006_v31  ;;  %v1241_v24 = vmul.f32 %v3816_v57, %v5709_v47  ;;  %v999_v55 = vadd.f32 %v871_v25, %v3776_v63  ;;  %1842 = vperm.xlu0 %3032, %v1579_v8   ;;  %v4192_v13 = vpop.permute.xlu1 %1518  ;;  %v4194_v51 = vpop.permute.xlu0 %1530  ;;  %v5772_v8 = vld [vmem:[#allocation81_spill] sm:$0xff] }
 0x158   : > { %1839 = vperm.xlu1 %3033, %v1578_v49   ;;  %v1242_v21 = vmul.f32 %v3916_v35, %v5709_v47  ;;  %v1057_v2 = vadd.f32 %v929_v30, %v5768_v15  ;;  %v1302_v58 = vmul.f32 %v3814_v60, %v5746_v10  ;;  %5769 = vst [vmem:[#allocation51_spill] sm:$0xff] %v4192_v13  ;;  %5770 = vst [vmem:[#allocation68_spill] sm:$0xff] %v4194_v51  ;;  %v5773_v15 = vld [vmem:[#allocation82_spill] sm:$0xff] }
 0x159   : > { %v4197_v31 = vadd.f32 %v874_v40, %v3780_v0  ;;  %v4200_v14 = vadd.f32 %v887_v9, %v3784_v12  ;;  %v4202_v63 = vadd.f32 %v1301_v3, %v1056_v41  ;;  %v931_v44 = vmul.f32 %v5725_v23, %v5707_v17  ;;  %v5782_v23 = vld [vmem:[#allocation118_spill] sm:$0xff] }
 0x15a   : > { %v1581_v25 = vadd.f32 %v4192_v13, %v1368_v50  ;;  %v1580_v30 = vadd.f32 %v4131_v54, %v1367_v7  ;;  %v873_v49 = vmul.f32 %v5772_v8, %v3290_v18  ;;  %v876_v56 = vmul.f32 %v5773_v15, %v3290_v18 }
 0x15b   : > { %5771 = vst [vmem:[#allocation148_spill] sm:$0xff] %v4202_v63  ;;  %v1369_v0 = vadd.f32 %v1241_v24, %v4068_v62  ;;  %v1243_v12 = vmul.f32 %v3868_v39, %v5709_v47  ;;  %v889_v40 = vmul.f32 %v5772_v8, %v3302_v26  ;;  %v4218_v9 = vadd.f32 %v890_v29, %v3800_v4  ;;  %v4224_v7 = vpop.permute.xlu1 %1526  ;;  %v5776_v24 = vld [vmem:[#allocation87_spill] sm:$0xff] }
 0x15c   : > { %1848 = vperm.xlu0 %3032, %v1581_v25   ;;  %1845 = vperm.xlu1 %3033, %v1580_v30   ;;  %v1370_v41 = vadd.f32 %v1242_v21, %v997_v38  ;;  %v1244_v3 = vmul.f32 %v3965_v27, %v5709_v47  ;;  %v4222_v50 = vadd.f32 %v1302_v58, %v1057_v2  ;;  %v5777_v2 = vld [vmem:[#allocation117_spill] sm:$0xff]  ;;  %v4239_v25 = vpop.permute.xlu0 %1538  ;;  %v5779_v30 = vld [vmem:[#allocation132_spill] sm:$0xff] }
 0x15d   : > { %5775 = vst [vmem:[#allocation149_spill] sm:$0xff] %v4224_v7  ;;  %v892_v62 = vmul.f32 %v5773_v15, %v3302_v26  ;;  %v1059_v63 = vadd.f32 %v931_v44, %v5776_v24  ;;  %v1304_v16 = vmul.f32 %v3866_v22, %v5746_v10  ;;  %v930_v4 = vmul.f32 %v5695_v46, %v5707_v17  ;;  %v5780_v24 = vld [vmem:[#allocation90_spill] sm:$0xff] }
 0x15e   : > { %5774 = vst [vmem:[#allocation81_spill] sm:$0xff] %v4222_v50  ;;  %v1583_v38 = vadd.f32 %v4224_v7, %v1370_v41  ;;  %v1582_v29 = vadd.f32 %v4166_v53, %v1369_v0  ;;  %v1001_v21 = vadd.f32 %v873_v49, %v3832_v6  ;;  %v4237_v58 = vadd.f32 %v876_v56, %v5777_v2  ;;  %v5783_v49 = vld [vmem:[#allocation22_spill] sm:$0xff]  ;;  %v5786_v53 = vld [vmem:[#allocation52_spill] sm:$0xff] }
 0x15f   : > { %5778 = vst [vmem:[#allocation87_spill] sm:$0xff] %v4239_v25  ;;  %v1245_v44 = vmul.f32 %v5779_v30, %v5709_v47  ;;  %v875_v50 = vmul.f32 %v5780_v24, %v3290_v18  ;;  %v1251_v46 = vmul.f32 %v3664_v36, %v5781_v32  ;;  %v4248_v41 = vadd.f32 %v889_v40, %v5782_v23  ;;  %v4253_v2 = vpop.permute.xlu1 %1534 }
 0x160   : > { %1854 = vperm.xlu0 %3032, %v1583_v38   ;;  %1851 = vperm.xlu1 %3033, %v1582_v29   ;;  %v1372_v6 = vadd.f32 %v1244_v3, %v999_v55  ;;  %v1371_v56 = vadd.f32 %v1243_v12, %v4095_v20  ;;  %v1246_v0 = vmul.f32 %v5783_v49, %v5709_v47  ;;  %v5787_v20 = vld [vmem:[#allocation98_spill] sm:$0xff]  ;;  %v5788_v3 = vld [vmem:[#allocation120_spill] sm:$0xff] }
 0x161   : > { %5784 = vst [vmem:[#allocation117_spill] sm:$0xff] %v4253_v2  ;;  %v891_v34 = vmul.f32 %v5780_v24, %v3302_v26  ;;  %v4257_v7 = vadd.f32 %v1304_v16, %v1059_v63  ;;  %v1058_v36 = vadd.f32 %v930_v4, %v5786_v53  ;;  %v1303_v23 = vmul.f32 %v3762_v37, %v5746_v10  ;;  %v5790_v16 = vld [vmem:[#allocation139_spill] sm:$0xff] }
 0x162   : > { %v1585_v40 = vadd.f32 %v4253_v2, %v1372_v6  ;;  %v1584_v55 = vadd.f32 %v4194_v51, %v1371_v56  ;;  %v877_v12 = vmul.f32 %v5787_v20, %v3290_v18  ;;  %v4267_v38 = vadd.f32 %v892_v62, %v5788_v3  ;;  %v4280_v62 = vpop.permute.xlu0 %1546  ;;  %v5796_v2 = vld [vmem:[#allocation131_spill] sm:$0xff] }
 0x163   : > { %5785 = vst [vmem:[#allocation132_spill] sm:$0xff] %v4257_v7  ;;  %v1373_v29 = vadd.f32 %v1245_v44, %v4145_v45  ;;  %v1247_v63 = vmul.f32 %v5790_v16, %v5709_v47  ;;  %v1253_v53 = vmul.f32 %v3712_v61, %v5781_v32  ;;  %v893_v4 = vmul.f32 %v5787_v20, %v3302_v26  ;;  %v4282_v45 = vpop.permute.xlu1 %1542  ;;  %v5794_v44 = vld [vmem:[#allocation126_spill] sm:$0xff] }
 0x164   : > { %5789 = vst [vmem:[#allocation23_spill] sm:$0xff] %v4267_v38  ;;  %1860 = vperm.xlu0 %3032, %v1585_v40   ;;  %1857 = vperm.xlu1 %3033, %v1584_v55   ;;  %v1374_v6 = vadd.f32 %v1246_v0, %v1001_v21  ;;  %v1248_v18 = vmul.f32 %v4050_v52, %v5709_v47  ;;  %5792 = vst [vmem:[#allocation52_spill] sm:$0xff] %v4280_v62  ;;  %v5795_v7 = vld [vmem:[#allocation130_spill] sm:$0xff] }
 0x165   : > { %v4278_v56 = vadd.f32 %v1303_v23, %v1058_v36  ;;  %5793 = vst [vmem:[#allocation120_spill] sm:$0xff] %v4282_v45  ;;  %v1003_v3 = vadd.f32 %v875_v50, %v5794_v44  ;;  %v1379_v38 = vadd.f32 %v1251_v46, %v5795_v7  ;;  %v4287_v51 = vadd.f32 %v891_v34, %v5796_v2  ;;  %v5797_v36 = vld [vmem:[#allocation136_spill] sm:$0xff]  ;;  %v5798_v50 = vld [vmem:[#allocation49_spill] sm:$0xff]  ;;  %v5799_v34 = vld [vmem:[#allocation47_spill] sm:$0xff] }
 0x166   : > { %v933_v26 = vmul.f32 %v5747_v28, %v5707_v17  ;;  %v1587_v21 = vadd.f32 %v4282_v45, %v1374_v6  ;;  %v1586_v0 = vadd.f32 %v4239_v25, %v1373_v29  ;;  %v1005_v23 = vadd.f32 %v877_v12, %v5797_v36  ;;  %v5801_v12 = vld [vmem:[#allocation39_spill] sm:$0xff]  ;;  %v5807_v45 = vld [vmem:[#allocation69_spill] sm:$0xff] }
 0x167   : > { %5791 = vst [vmem:[#allocation118_spill] sm:$0xff] %v4278_v56  ;;  %v1252_v40 = vmul.f32 %v3760_v11, %v5781_v32  ;;  %v1375_v55 = vadd.f32 %v1247_v63, %v4197_v31  ;;  %v1381_v44 = vadd.f32 %v1253_v53, %v5798_v50  ;;  %v1255_v46 = vmul.f32 %v3762_v37, %v5781_v32  ;;  %v4307_v36 = vpop.permute.xlu1 %1550  ;;  %v5803_v31 = vld [vmem:[#allocation101_spill] sm:$0xff]  ;;  %v5804_v50 = vld [vmem:[#allocation54_spill] sm:$0xff]  ;;  %v4321_v56 = vpop.permute.xlu0 %1554 }
 0x168   : > { %v4301_v7 = vadd.f32 %v893_v4, %v5799_v34  ;;  %1866 = vperm.xlu0 %3032, %v1587_v21   ;;  %1863 = vperm.xlu1 %3033, %v1586_v0   ;;  %v1376_v2 = vadd.f32 %v1248_v18, %v1003_v3  ;;  %v1250_v29 = vmul.f32 %v4090_v43, %v5709_v47  ;;  %v5805_v0 = vld [vmem:[#allocation40_spill] sm:$0xff] }
 0x169   : > { %v1249_v6 = vmul.f32 %v5801_v12, %v5709_v47  ;;  %5802 = vst [vmem:[#allocation130_spill] sm:$0xff] %v4307_v36  ;;  %v1061_v63 = vadd.f32 %v933_v26, %v5803_v31  ;;  %v1306_v53 = vmul.f32 %v3916_v35, %v5746_v10  ;;  %v932_v4 = vmul.f32 %v5804_v50, %v5707_v17 }
 0x16a   : > { %5800 = vst [vmem:[#allocation126_spill] sm:$0xff] %v4301_v7  ;;  %v1305_v21 = vmul.f32 %v3816_v57, %v5746_v10  ;;  %v1589_v18 = vadd.f32 %v4307_v36, %v1376_v2  ;;  %v1588_v3 = vadd.f32 %v4280_v62, %v1375_v55  ;;  %v1380_v34 = vadd.f32 %v1252_v40, %v5805_v0 }
 0x16b   : > { %v1254_v47 = vmul.f32 %v3814_v60, %v5781_v32  ;;  %v1256_v26 = vmul.f32 %v3866_v22, %v5781_v32  ;;  %v1257_v31 = vmul.f32 %v3816_v57, %v5781_v32  ;;  %v4327_v7 = vadd.f32 %v1306_v53, %v1061_v63  ;;  %v4333_v0 = vpop.permute.xlu1 %1558  ;;  %v5809_v63 = vld [vmem:[#allocation60_spill] sm:$0xff] }
 0x16c   : > { %v1060_v25 = vadd.f32 %v932_v4, %v5807_v45  ;;  %1872 = vperm.xlu0 %3032, %v1589_v18   ;;  %1869 = vperm.xlu1 %3033, %v1588_v3   ;;  %v1378_v55 = vadd.f32 %v1250_v29, %v1005_v23  ;;  %v1377_v40 = vadd.f32 %v1249_v6, %v4237_v58  ;;  %v5810_v29 = vld [vmem:[#allocation61_spill] sm:$0xff]  ;;  %v5811_v4 = vld [vmem:[#allocation50_spill] sm:$0xff]  ;;  %v5815_v57 = vld [vmem:[#allocation28_spill] sm:$0xff] }
 0x16d   : > { %5806 = vst [vmem:[#allocation131_spill] sm:$0xff] %v4327_v7  ;;  %v935_v2 = vmul.f32 %v5761_v5, %v5707_v17  ;;  %v1308_v62 = vmul.f32 %v3965_v27, %v5746_v10  ;;  %v934_v53 = vmul.f32 %v5809_v63, %v5707_v17  ;;  %v1307_v45 = vmul.f32 %v3868_v39, %v5746_v10  ;;  %v5812_v3 = vld [vmem:[#allocation62_spill] sm:$0xff]  ;;  %v5814_v5 = vld [vmem:[#allocation88_spill] sm:$0xff] }
 0x16e   : > { %v4335_v36 = vadd.f32 %v1305_v21, %v1060_v25  ;;  %v1591_v23 = vadd.f32 %v4333_v0, %v1378_v55  ;;  %v1590_v58 = vadd.f32 %v4321_v56, %v1377_v40  ;;  %v1382_v6 = vadd.f32 %v1254_v47, %v5810_v29 }
 0x16f   : > { %v1383_v18 = vadd.f32 %v1255_v46, %v5811_v4  ;;  %v1385_v25 = vadd.f32 %v1257_v31, %v5812_v3  ;;  %v1259_v21 = vmul.f32 %v3868_v39, %v5781_v32  ;;  %v1062_v63 = vadd.f32 %v934_v53, %v5814_v5  ;;  %v5822_v4 = vld [vmem:[#allocation102_spill] sm:$0xff] }
 0x170   : > { %5808 = vst [vmem:[#allocation136_spill] sm:$0xff] %v4335_v36  ;;  %v5813_v36 = vld [vmem:[#allocation108_spill] sm:$0xff]  ;;  %1878 = vperm.xlu0 %3032, %v1591_v23   ;;  %1875 = vperm.xlu1 %3033, %v1590_v58   ;;  %v1384_v50 = vadd.f32 %v1256_v26, %v5815_v57  ;;  %v1258_v55 = vmul.f32 %v3916_v35, %v5781_v32  ;;  %v5819_v26 = vld [vmem:[#allocation66_spill] sm:$0xff]  ;;  %v5821_v58 = vld [vmem:[#allocation121_spill] sm:$0xff] }
 0x171   : > { %v1063_v7 = vadd.f32 %v935_v2, %v5813_v36  ;;  %v1261_v47 = vmul.f32 %v5779_v30, %v5781_v32  ;;  %v4359_v31 = vadd.f32 %v1307_v45, %v1062_v63  ;;  %v937_v40 = vmul.f32 %v5772_v8, %v5707_v17  ;;  %v5818_v2 = vld [vmem:[#allocation142_spill] sm:$0xff] }
 0x172   : > { %v1310_v5 = vmul.f32 %v5783_v49, %v5746_v10  ;;  %v1593_v36 = vadd.f32 %v4129_v59, %v1380_v34  ;;  %v1592_v57 = vadd.f32 %v5818_v2, %v1379_v38  ;;  %v936_v53 = vmul.f32 %v5819_v26, %v5707_v17 }
 0x173   : > { %v4357_v46 = vadd.f32 %v1308_v62, %v1063_v7  ;;  %5817 = vst [vmem:[#allocation47_spill] sm:$0xff] %v4359_v31  ;;  %v1309_v23 = vmul.f32 %v5779_v30, %v5746_v10  ;;  %v1260_v62 = vmul.f32 %v3965_v27, %v5781_v32  ;;  %v5820_v7 = vld [vmem:[#allocation65_spill] sm:$0xff]  ;;  %v1263_v45 = vmul.f32 %v5790_v16, %v5781_v32 }
 0x174   : > { %v1387_v63 = vadd.f32 %v1259_v21, %v5820_v7  ;;  %v1065_v29 = vadd.f32 %v937_v40, %v5821_v58  ;;  %1884 = vperm.xlu0 %3032, %v1593_v36   ;;  %1881 = vperm.xlu1 %3033, %v1592_v57   ;;  %v1386_v38 = vadd.f32 %v1258_v55, %v4148_v19 }
 0x175   : > { %5816 = vst [vmem:[#allocation49_spill] sm:$0xff] %v4357_v46  ;;  %v4379_v34 = vadd.f32 %v1261_v47, %v4179_v1  ;;  %v1064_v3 = vadd.f32 %v936_v53, %v5822_v4  ;;  %v1594_v31 = vadd.f32 %v4092_v48, %v1381_v44  ;;  %v939_v21 = vmul.f32 %v5780_v24, %v5707_v17 }
 0x176   : > { %v4383_v46 = vadd.f32 %v1310_v5, %v1065_v29  ;;  %v1312_v7 = vmul.f32 %v4050_v52, %v5746_v10  ;;  %v1595_v40 = vadd.f32 %v4164_v33, %v1382_v6  ;;  %v938_v19 = vmul.f32 %v5762_v42, %v5707_v17  ;;  %v5825_v5 = vld [vmem:[#allocation137_spill] sm:$0xff] }
 0x177   : > { %v4390_v36 = vadd.f32 %v1309_v23, %v1064_v3  ;;  %v1311_v1 = vmul.f32 %v5790_v16, %v5746_v10  ;;  %v1388_v44 = vadd.f32 %v1260_v62, %v4200_v14  ;;  %v1262_v55 = vmul.f32 %v5783_v49, %v5781_v32  ;;  %v5826_v23 = vld [vmem:[#allocation109_spill] sm:$0xff] }
 0x178   : > { %5823 = vst [vmem:[#allocation101_spill] sm:$0xff] %v4383_v46  ;;  %v4400_v47 = vadd.f32 %v1263_v45, %v4218_v9  ;;  %v1067_v57 = vadd.f32 %v939_v21, %v5825_v5  ;;  %1890 = vperm.xlu0 %3032, %v1595_v40   ;;  %1887 = vperm.xlu1 %3033, %v1594_v31   ;;  %v5829_v21 = vld [vmem:[#allocation147_spill] sm:$0xff] }
 0x179   : > { %5824 = vst [vmem:[#allocation40_spill] sm:$0xff] %v4390_v36  ;;  %v1264_v6 = vmul.f32 %v4050_v52, %v5781_v32  ;;  %v4407_v53 = vmul.f32 %v5801_v12, %v5781_v32  ;;  %v1066_v58 = vadd.f32 %v938_v19, %v5826_v23  ;;  %v1596_v14 = vadd.f32 %v4131_v54, %v1383_v18  ;;  %v5831_v19 = vld [vmem:[#allocation25_spill] sm:$0xff]  ;;  %v5832_v5 = vld [vmem:[#allocation43_spill] sm:$0xff]  ;;  %v5833_v23 = vld [vmem:[#allocation26_spill] sm:$0xff] }
 0x17a   : > { %v4411_v62 = vadd.f32 %v1312_v7, %v1067_v57  ;;  %v941_v9 = vmul.f32 %v5787_v20, %v5707_v17  ;;  %v1314_v45 = vmul.f32 %v4090_v43, %v5746_v10  ;;  %v1597_v31 = vadd.f32 %v4192_v13, %v1384_v50  ;;  %v5830_v7 = vld [vmem:[#allocation27_spill] sm:$0xff]  ;;  %v5834_v50 = vld [vmem:[#allocation149_spill] sm:$0xff] }
 0x17b   : > { %v4418_v29 = vadd.f32 %v1311_v1, %v1066_v58  ;;  %v940_v4 = vmul.f32 %v5773_v15, %v5707_v17  ;;  %v1313_v3 = vmul.f32 %v5801_v12, %v5746_v10  ;;  %v1598_v18 = vadd.f32 %v5829_v21, %v1385_v25  ;;  %v5835_v58 = vld [vmem:[#allocation127_spill] sm:$0xff]  ;;  %v5838_v25 = vld [vmem:[#allocation45_spill] sm:$0xff] }
 0x17c   : > { %5827 = vst [vmem:[#allocation69_spill] sm:$0xff] %v4411_v62  ;;  %v1069_v40 = vadd.f32 %v941_v9, %v5830_v7  ;;  %v943_v57 = vmul.f32 %v5832_v5, %v5831_v19  ;;  %v1316_v62 = vmul.f32 %v3760_v11, %v5833_v23  ;;  %1896 = vperm.xlu0 %3032, %v1597_v31   ;;  %v5836_v17 = vld [vmem:[#allocation91_spill] sm:$0xff]  ;;  %v5839_v9 = vld [vmem:[#allocation53_spill] sm:$0xff] }
 0x17d   : > { %5828 = vst [vmem:[#allocation61_spill] sm:$0xff] %v4418_v29  ;;  %1893 = vperm.xlu1 %3033, %v1596_v14   ;;  %v1599_v1 = vadd.f32 %v5834_v50, %v1386_v38  ;;  %v1068_v29 = vadd.f32 %v940_v4, %v5835_v58  ;;  %v1315_v36 = vmul.f32 %v5836_v17, %v5833_v23  ;;  %v5841_v14 = vld [vmem:[#allocation46_spill] sm:$0xff] }
 0x17e   : > { %v4434_v10 = vadd.f32 %v1314_v45, %v1069_v40  ;;  %v1071_v46 = vadd.f32 %v943_v57, %v5838_v25  ;;  %v945_v7 = vmul.f32 %v5839_v9, %v5831_v19  ;;  %v1318_v21 = vmul.f32 %v3814_v60, %v5833_v23  ;;  %v5843_v38 = vld [vmem:[#allocation38_spill] sm:$0xff] }
 0x17f   : > { %v4441_v13 = vadd.f32 %v1313_v3, %v1068_v29  ;;  %v4444_v31 = vadd.f32 %v1315_v36, %v5841_v14  ;;  %v944_v4 = vmul.f32 %v5843_v38, %v5831_v19  ;;  %v1317_v45 = vmul.f32 %v3712_v61, %v5833_v23  ;;  %v5845_v58 = vld [vmem:[#allocation70_spill] sm:$0xff]  ;;  %v5847_v29 = vld [vmem:[#allocation68_spill] sm:$0xff]  ;;  %v5848_v14 = vld [vmem:[#allocation55_spill] sm:$0xff] }
 0x180   : > { %5837 = vst [vmem:[#allocation50_spill] sm:$0xff] %v4434_v10  ;;  %v1390_v40 = vadd.f32 %v1262_v55, %v4248_v41  ;;  %v4451_v57 = vadd.f32 %v1316_v62, %v1071_v46  ;;  %v1073_v25 = vadd.f32 %v945_v7, %v5845_v58  ;;  %v5846_v10 = vld [vmem:[#allocation59_spill] sm:$0xff]  ;;  %1902 = vperm.xlu0 %3032, %v1599_v1   ;;  %v5851_v41 = vld [vmem:[#allocation89_spill] sm:$0xff]  ;;  %v5853_v1 = vld [vmem:[#allocation44_spill] sm:$0xff] }
 0x181   : > { %5840 = vst [vmem:[#allocation62_spill] sm:$0xff] %v4441_v13  ;;  %5842 = vst [vmem:[#allocation108_spill] sm:$0xff] %v4444_v31  ;;  %v947_v50 = vmul.f32 %v5846_v10, %v5831_v19  ;;  %1899 = vperm.xlu1 %3033, %v1598_v18   ;;  %v1600_v36 = vadd.f32 %v5847_v29, %v1387_v63  ;;  %v1392_v3 = vadd.f32 %v1264_v6, %v4287_v51  ;;  %v5849_v13 = vld [vmem:[#allocation117_spill] sm:$0xff] }
 0x182   : > { %5844 = vst [vmem:[#allocation88_spill] sm:$0xff] %v4451_v57  ;;  %v1072_v31 = vadd.f32 %v944_v4, %v5848_v14  ;;  %v1601_v54 = vadd.f32 %v5849_v13, %v1388_v44  ;;  %v4460_v60 = vadd.f32 %v1318_v21, %v1073_v25  ;;  %v1320_v55 = vmul.f32 %v3866_v22, %v5833_v23  ;;  %v5858_v25 = vld [vmem:[#allocation103_spill] sm:$0xff] }
 0x183   : > { %v1075_v46 = vadd.f32 %v947_v50, %v5851_v41  ;;  %v946_v18 = vmul.f32 %v5853_v1, %v5831_v19  ;;  %v1319_v63 = vmul.f32 %v3762_v37, %v5833_v23  ;;  %v949_v51 = vmul.f32 %v5747_v28, %v5831_v19  ;;  %v5855_v50 = vld [vmem:[#allocation54_spill] sm:$0xff]  ;;  %v5859_v41 = vld [vmem:[#allocation120_spill] sm:$0xff] }
 0x184   : > { %5850 = vst [vmem:[#allocation28_spill] sm:$0xff] %v4460_v60  ;;  %v4465_v62 = vadd.f32 %v1317_v45, %v1072_v31  ;;  %v1266_v44 = vmul.f32 %v4090_v43, %v5781_v32  ;;  %v1322_v21 = vmul.f32 %v3916_v35, %v5833_v23  ;;  %v948_v7 = vmul.f32 %v5855_v50, %v5831_v19  ;;  %v5856_v31 = vld [vmem:[#allocation87_spill] sm:$0xff]  ;;  %v5857_v45 = vld [vmem:[#allocation56_spill] sm:$0xff] }
 0x185   : > { %v4475_v6 = vadd.f32 %v1320_v55, %v1075_v46  ;;  %1908 = vperm.xlu0 %3032, %v1601_v54   ;;  %1905 = vperm.xlu1 %3033, %v1600_v36   ;;  %v1602_v4 = vadd.f32 %v5856_v31, %v4379_v34  ;;  %v1074_v58 = vadd.f32 %v946_v18, %v5857_v45  ;;  %v5860_v32 = vld [vmem:[#allocation71_spill] sm:$0xff]  ;;  %v5861_v55 = vld [vmem:[#allocation112_spill] sm:$0xff] }
 0x186   : > { %5852 = vst [vmem:[#allocation142_spill] sm:$0xff] %v4465_v62  ;;  %v1077_v14 = vadd.f32 %v949_v51, %v5858_v25  ;;  %v1603_v62 = vadd.f32 %v5859_v41, %v1390_v40  ;;  %v1076_v46 = vadd.f32 %v948_v7, %v5860_v32  ;;  %v5862_v60 = vld [vmem:[#allocation72_spill] sm:$0xff]  ;;  %v1324_v34 = vmul.f32 %v3965_v27, %v5833_v23  ;;  %v5867_v40 = vld [vmem:[#allocation110_spill] sm:$0xff] }
 0x187   : > { %5854 = vst [vmem:[#allocation66_spill] sm:$0xff] %v4475_v6  ;;  %v1321_v6 = vmul.f32 %v5861_v55, %v5833_v23  ;;  %v951_v57 = vmul.f32 %v5862_v60, %v5831_v19  ;;  %v4491_v13 = vadd.f32 %v1319_v63, %v1074_v58  ;;  %v5865_v36 = vld [vmem:[#allocation60_spill] sm:$0xff]  ;;  %v1323_v45 = vmul.f32 %v3868_v39, %v5833_v23  ;;  %v5869_v58 = vld [vmem:[#allocation23_spill] sm:$0xff] }
 0x188   : > { %v4493_v54 = vadd.f32 %v1322_v21, %v1077_v14  ;;  %v950_v18 = vmul.f32 %v5865_v36, %v5831_v19  ;;  %v953_v25 = vmul.f32 %v5772_v8, %v5831_v19  ;;  %v5868_v63 = vld [vmem:[#allocation52_spill] sm:$0xff]  ;;  %v1393_v14 = vadd.f32 %v4407_v53, %v5869_v58  ;;  %v5878_v58 = vld [vmem:[#allocation138_spill] sm:$0xff] }
 0x189   : > { %5863 = vst [vmem:[#allocation65_spill] sm:$0xff] %v4491_v13  ;;  %v4499_v51 = vadd.f32 %v1321_v6, %v1076_v46  ;;  %v1079_v7 = vadd.f32 %v951_v57, %v5867_v40  ;;  %1914 = vperm.xlu0 %3032, %v1603_v62   ;;  %1911 = vperm.xlu1 %3033, %v1602_v4   ;;  %v5870_v32 = vld [vmem:[#allocation92_spill] sm:$0xff]  ;;  %v5871_v6 = vld [vmem:[#allocation130_spill] sm:$0xff] }
 0x18a   : > { %5864 = vst [vmem:[#allocation121_spill] sm:$0xff] %v4493_v54  ;;  %v1604_v21 = vadd.f32 %v5868_v63, %v4400_v47  ;;  %v1078_v54 = vadd.f32 %v950_v18, %v5870_v32  ;;  %v1605_v46 = vadd.f32 %v5871_v6, %v1392_v3  ;;  %v5873_v57 = vld [vmem:[#allocation128_spill] sm:$0xff]  ;;  %v1326_v13 = vmul.f32 %v5783_v49, %v5833_v23  ;;  %v5875_v4 = vld [vmem:[#allocation126_spill] sm:$0xff] }
 0x18b   : > { %5866 = vst [vmem:[#allocation102_spill] sm:$0xff] %v4499_v51  ;;  %v4512_v51 = vadd.f32 %v1324_v34, %v1079_v7  ;;  %v1081_v40 = vadd.f32 %v953_v25, %v5873_v57  ;;  %v952_v62 = vmul.f32 %v5819_v26, %v5831_v19  ;;  %v1325_v47 = vmul.f32 %v5779_v30, %v5833_v23 }
 0x18c   : > { %v4517_v31 = vadd.f32 %v1323_v45, %v1078_v54  ;;  %v955_v53 = vmul.f32 %v5780_v24, %v5831_v19  ;;  %v1394_v3 = vadd.f32 %v1266_v44, %v5875_v4  ;;  %v1328_v18 = vmul.f32 %v4050_v52, %v5833_v23  ;;  %v5877_v45 = vld [vmem:[#allocation104_spill] sm:$0xff]  ;;  %v5881_v4 = vld [vmem:[#allocation37_spill] sm:$0xff] }
 0x18d   : > { %5872 = vst [vmem:[#allocation137_spill] sm:$0xff] %v4512_v51  ;;  %v4526_v34 = vadd.f32 %v1326_v13, %v1081_v40  ;;  %v954_v54 = vmul.f32 %v5762_v42, %v5831_v19  ;;  %1920 = vperm.xlu0 %3032, %v1605_v46   ;;  %1917 = vperm.xlu1 %3033, %v1604_v21   ;;  %v5880_v40 = vld [vmem:[#allocation24_spill] sm:$0xff]  ;;  %v5914_v42 = vld [vmem:[#allocation133_spill] sm:$0xff] }
 0x18e   : > { %5874 = vst [vmem:[#allocation109_spill] sm:$0xff] %v4517_v31  ;;  %v1606_v7 = vadd.f32 %v4321_v56, %v1393_v14  ;;  %v1080_v25 = vadd.f32 %v952_v62, %v5877_v45  ;;  %v1083_v32 = vadd.f32 %v955_v53, %v5878_v58  ;;  %v1607_v57 = vadd.f32 %v4333_v0, %v1394_v3  ;;  %v5879_v31 = vld [vmem:[#allocation119_spill] sm:$0xff]  ;;  %v5887_v45 = vld [vmem:[#allocation34_spill] sm:$0xff] }
 0x18f   : > { %5876 = vst [vmem:[#allocation27_spill] sm:$0xff] %v4526_v34  ;;  %v1082_v44 = vadd.f32 %v954_v54, %v5879_v31  ;;  %v1327_v13 = vmul.f32 %v5790_v16, %v5833_v23  ;;  %v584_v34 = vmul.f32 %v5881_v4, %v5880_v40  ;;  %v957_v21 = vmul.f32 %v5787_v20, %v5831_v19  ;;  %v5885_v3 = vld [vmem:[#allocation35_spill] sm:$0xff]  ;;  %v5886_v54 = vld [vmem:[#allocation30_spill] sm:$0xff]  ;;  %v5894_v20 = vld [vmem:[#allocation113_spill] sm:$0xff] }
 0x190   : > { %v4541_v51 = vadd.f32 %v1325_v47, %v1080_v25  ;;  %v4543_v46 = vadd.f32 %v1328_v18, %v1083_v32  ;;  %v1330_v14 = vmul.f32 %v4090_v43, %v5833_v23  ;;  %v956_v31 = vmul.f32 %v5773_v15, %v5831_v19  ;;  %v5888_v25 = vld [vmem:[#allocation16_spill] sm:$0xff]  ;;  %v5889_v32 = vld [vmem:[#allocation14_spill] sm:$0xff] }
 0x191   : > { %v4549_v62 = vadd.f32 %v1327_v13, %v1082_v44  ;;  %v1329_v53 = vmul.f32 %v5801_v12, %v5833_v23  ;;  %v958_v47 = vmul.f32 %v5886_v54, %v5885_v3  ;;  %1926 = vperm.xlu0 %3032, %v1607_v57   ;;  %1923 = vperm.xlu1 %3033, %v1606_v7   ;;  %v5890_v44 = vld [vmem:[#allocation99_spill] sm:$0xff]  ;;  %v5893_v23 = vld [vmem:[#allocation36_spill] sm:$0xff] }
 0x192   : > { %5882 = vst [vmem:[#allocation25_spill] sm:$0xff] %v4541_v51  ;;  %5883 = vst [vmem:[#allocation43_spill] sm:$0xff] %v4543_v46  ;;  %v1085_v18 = vadd.f32 %v957_v21, %v584_v34  ;;  %v592_v58 = vmul.f32 %v5888_v25, %v5887_v45  ;;  %v593_v40 = vmul.f32 %v5889_v32, %v5887_v45  ;;  %v5892_v46 = vld [vmem:[#allocation57_spill] sm:$0xff] }
 0x193   : > { %5884 = vst [vmem:[#allocation26_spill] sm:$0xff] %v4549_v62  ;;  %v1608_v13 = vadd.f32 %v5818_v2, %v5890_v44  ;;  %v5891_v62 = vld [vmem:[#allocation129_spill] sm:$0xff]  ;;  %v1086_v51 = vadd.f32 %v958_v47, %v5892_v46  ;;  %v1331_v43 = vmul.f32 %v5836_v17, %v5893_v23  ;;  %v1609_v7 = vadd.f32 %v4129_v59, %v5894_v20  ;;  %v5898_v20 = vld [vmem:[#allocation58_spill] sm:$0xff] }
 0x194   : > { %v1084_v19 = vadd.f32 %v956_v31, %v5891_v62  ;;  %v4569_v34 = vadd.f32 %v1330_v14, %v1085_v18  ;;  %v959_v57 = vmul.f32 %v5832_v5, %v5885_v3  ;;  %v1332_v21 = vmul.f32 %v3760_v11, %v5893_v23  ;;  %v5899_v47 = vld [vmem:[#allocation17_spill] sm:$0xff] }
 0x195   : > { %v4577_v44 = vadd.f32 %v1331_v43, %v1086_v51  ;;  %v960_v46 = vmul.f32 %v5843_v38, %v5885_v3  ;;  %v1333_v62 = vmul.f32 %v3712_v61, %v5893_v23  ;;  %1932 = vperm.xlu0 %3032, %v1609_v7   ;;  %1929 = vperm.xlu1 %3033, %v1608_v13   ;;  %v5901_v51 = vld [vmem:[#allocation105_spill] sm:$0xff] }
 0x196   : > { %5895 = vst [vmem:[#allocation127_spill] sm:$0xff] %v4569_v34  ;;  %v4575_v4 = vadd.f32 %v1329_v53, %v1084_v19  ;;  %v1087_v14 = vadd.f32 %v959_v57, %v5898_v20  ;;  %v961_v31 = vmul.f32 %v5839_v9, %v5885_v3  ;;  %v595_v18 = vmul.f32 %v5899_v47, %v5887_v45  ;;  %v5900_v53 = vld [vmem:[#allocation122_spill] sm:$0xff]  ;;  %v5903_v34 = vld [vmem:[#allocation111_spill] sm:$0xff]  ;;  %v5905_v57 = vld [vmem:[#allocation93_spill] sm:$0xff] }
 0x197   : > { %5897 = vst [vmem:[#allocation45_spill] sm:$0xff] %v4577_v44  ;;  %v1611_v43 = vadd.f32 %v4164_v33, %v5900_v53  ;;  %v1610_v19 = vadd.f32 %v4092_v48, %v5901_v51  ;;  %v5902_v44 = vld [vmem:[#allocation80_spill] sm:$0xff]  ;;  %v1334_v7 = vmul.f32 %v5903_v34, %v5893_v23  ;;  %v962_v12 = vmul.f32 %v5853_v1, %v5885_v3  ;;  %v5909_v51 = vld [vmem:[#allocation18_spill] sm:$0xff]  ;;  %v5913_v33 = vld [vmem:[#allocation97_spill] sm:$0xff] }
 0x198   : > { %5896 = vst [vmem:[#allocation91_spill] sm:$0xff] %v4575_v4  ;;  %v1088_v4 = vadd.f32 %v960_v46, %v5902_v44  ;;  %v4595_v13 = vadd.f32 %v1332_v21, %v1087_v14  ;;  %v1089_v20 = vadd.f32 %v961_v31, %v5905_v57  ;;  %v1335_v15 = vmul.f32 %v3762_v37, %v5893_v23  ;;  %v5908_v14 = vld [vmem:[#allocation96_spill] sm:$0xff] }
 0x199   : > { %v963_v53 = vmul.f32 %v5846_v10, %v5885_v3  ;;  %v1336_v44 = vmul.f32 %v3866_v22, %v5893_v23  ;;  %v964_v21 = vmul.f32 %v5855_v50, %v5885_v3  ;;  %1938 = vperm.xlu0 %3032, %v1611_v43   ;;  %1935 = vperm.xlu1 %3033, %v1610_v19   ;;  %v5915_v43 = vld [vmem:[#allocation51_spill] sm:$0xff] }
 0x19a   : > { %5904 = vst [vmem:[#allocation53_spill] sm:$0xff] %v4595_v13  ;;  %v4602_v52 = vadd.f32 %v1333_v62, %v1088_v4  ;;  %v4610_v46 = vadd.f32 %v1334_v7, %v1089_v20  ;;  %v1090_v31 = vadd.f32 %v962_v12, %v5908_v14  ;;  %v594_v57 = vmul.f32 %v5909_v51, %v5887_v45  ;;  %v5910_v4 = vld [vmem:[#allocation114_spill] sm:$0xff]  ;;  %v5912_v13 = vld [vmem:[#allocation107_spill] sm:$0xff] }
 0x19b   : > { %v5911_v62 = vld [vmem:[#allocation86_spill] sm:$0xff]  ;;  %v1091_v24 = vadd.f32 %v963_v53, %v5912_v13  ;;  %v1092_v16 = vadd.f32 %v964_v21, %v5913_v33  ;;  %v1337_v48 = vmul.f32 %v5861_v55, %v5893_v23  ;;  %v1613_v19 = vadd.f32 %v5915_v43, %v5914_v42  ;;  %v5919_v53 = vld [vmem:[#allocation31_spill] sm:$0xff]  ;;  %v5920_v21 = vld [vmem:[#allocation8_spill] sm:$0xff] }
 0x19c   : > { %5906 = vst [vmem:[#allocation46_spill] sm:$0xff] %v4602_v52  ;;  %5907 = vst [vmem:[#allocation38_spill] sm:$0xff] %v4610_v46  ;;  %v1612_v52 = vadd.f32 %v5911_v62, %v5910_v4  ;;  %v4623_v7 = vadd.f32 %v1335_v15, %v1090_v31  ;;  %v965_v12 = vmul.f32 %v5747_v28, %v5885_v3  ;;  %v5932_v62 = vld [vmem:[#allocation48_spill] sm:$0xff] }
 0x19d   : > { %v1338_v20 = vmul.f32 %v3916_v35, %v5893_v23  ;;  %v4629_v14 = vadd.f32 %v1336_v44, %v1091_v24  ;;  %v4631_v4 = vadd.f32 %v1337_v48, %v1092_v16  ;;  %v966_v33 = vmul.f32 %v5865_v36, %v5885_v3  ;;  %1944 = vperm.xlu0 %3032, %v1613_v19   ;;  %v5922_v24 = vld [vmem:[#allocation149_spill] sm:$0xff]  ;;  %v5923_v48 = vld [vmem:[#allocation123_spill] sm:$0xff] }
 0x19e   : > { %5916 = vst [vmem:[#allocation70_spill] sm:$0xff] %v4623_v7  ;;  %v1339_v13 = vmul.f32 %v3868_v39, %v5893_v23  ;;  %1941 = vperm.xlu1 %3033, %v1612_v52   ;;  %v1093_v42 = vadd.f32 %v965_v12, %v592_v58  ;;  %v967_v15 = vmul.f32 %v5862_v60, %v5885_v3  ;;  %v5921_v7 = vld [vmem:[#allocation140_spill] sm:$0xff]  ;;  %v5924_v16 = vld [vmem:[#allocation147_spill] sm:$0xff] }
 0x19f   : > { %5917 = vst [vmem:[#allocation59_spill] sm:$0xff] %v4629_v14  ;;  %5918 = vst [vmem:[#allocation68_spill] sm:$0xff] %v4631_v4  ;;  %v601_v31 = vmul.f32 %v5920_v21, %v5919_v53  ;;  %v1615_v44 = vadd.f32 %v5922_v24, %v5921_v7  ;;  %v1614_v4 = vadd.f32 %v5924_v16, %v5923_v48  ;;  %v5927_v7 = vld [vmem:[#allocation20_spill] sm:$0xff]  ;;  %v5929_v48 = vld [vmem:[#allocation134_spill] sm:$0xff] }
 0x1a0   : > { %v1094_v14 = vadd.f32 %v966_v33, %v593_v40  ;;  %v1340_v46 = vmul.f32 %v3965_v27, %v5893_v23  ;;  %v4647_v43 = vadd.f32 %v1338_v20, %v1093_v42  ;;  %v1095_v52 = vadd.f32 %v967_v15, %v594_v57  ;;  %v5928_v42 = vld [vmem:[#allocation7_spill] sm:$0xff]  ;;  %v5931_v24 = vld [vmem:[#allocation33_spill] sm:$0xff] }
 0x1a1   : > { %v968_v58 = vmul.f32 %v5819_v26, %v5885_v3  ;;  %v1341_v19 = vmul.f32 %v5779_v30, %v5893_v23  ;;  %v596_v21 = vmul.f32 %v5927_v7, %v5887_v45  ;;  %v969_v40 = vmul.f32 %v5772_v8, %v5885_v3  ;;  %1950 = vperm.xlu0 %3032, %v1615_v44  }
 0x1a2   : > { %5925 = vst [vmem:[#allocation55_spill] sm:$0xff] %v4647_v43  ;;  %v4653_v12 = vadd.f32 %v1339_v13, %v1094_v14  ;;  %v1342_v33 = vmul.f32 %v5783_v49, %v5893_v23  ;;  %1947 = vperm.xlu1 %3033, %v1614_v4   ;;  %v4661_v57 = vadd.f32 %v1340_v46, %v1095_v52  ;;  %v5933_v49 = vld [vmem:[#allocation117_spill] sm:$0xff] }
 0x1a3   : > { %v1096_v20 = vadd.f32 %v968_v58, %v595_v18  ;;  %v602_v15 = vmul.f32 %v5928_v42, %v5919_v53  ;;  %v1616_v14 = vadd.f32 %v5847_v29, %v5929_v48  ;;  %v1097_v13 = vadd.f32 %v969_v40, %v596_v21  ;;  %v5934_v21 = vld [vmem:[#allocation9_spill] sm:$0xff]  ;;  %v5935_v40 = vld [vmem:[#allocation143_spill] sm:$0xff] }
 0x1a4   : > { %5926 = vst [vmem:[#allocation89_spill] sm:$0xff] %v4653_v12  ;;  %v5930_v12 = vld [vmem:[#allocation32_spill] sm:$0xff]  ;;  %v1347_v16 = vmul.f32 %v5836_v17, %v5931_v24  ;;  %v1617_v44 = vadd.f32 %v5933_v49, %v5932_v62  ;;  %v1348_v46 = vmul.f32 %v3760_v11, %v5931_v24  ;;  %v5937_v11 = vld [vmem:[#allocation87_spill] sm:$0xff] }
 0x1a5   : > { %v974_v43 = vmul.f32 %v5886_v54, %v5930_v12  ;;  %v4673_v4 = vadd.f32 %v1341_v19, %v1096_v20  ;;  %v975_v18 = vmul.f32 %v5832_v5, %v5930_v12  ;;  %v4679_v52 = vadd.f32 %v1342_v33, %v1097_v13  ;;  %v5936_v20 = vld [vmem:[#allocation74_spill] sm:$0xff]  ;;  %v5940_v48 = vld [vmem:[#allocation11_spill] sm:$0xff] }
 0x1a6   : > { %v603_v54 = vmul.f32 %v5934_v21, %v5919_v53  ;;  %v976_v17 = vmul.f32 %v5843_v38, %v5930_v12  ;;  %1956 = vperm.xlu0 %3032, %v1617_v44   ;;  %1953 = vperm.xlu1 %3033, %v1616_v14   ;;  %v1349_v19 = vmul.f32 %v3712_v61, %v5931_v24  ;;  %v5942_v13 = vld [vmem:[#allocation10_spill] sm:$0xff] }
 0x1a7   : > { %v1102_v58 = vadd.f32 %v974_v43, %v601_v31  ;;  %v1103_v62 = vadd.f32 %v975_v18, %v602_v15  ;;  %v1619_v5 = vadd.f32 %v5859_v41, %v5935_v40  ;;  %v1618_v33 = vadd.f32 %v5937_v11, %v5936_v20  ;;  %v5947_v40 = vld [vmem:[#allocation12_spill] sm:$0xff] }
 0x1a8   : > { %v1104_v43 = vadd.f32 %v976_v17, %v603_v54  ;;  %v604_v38 = vmul.f32 %v5940_v48, %v5919_v53  ;;  %v977_v15 = vmul.f32 %v5839_v9, %v5930_v12  ;;  %v1350_v61 = vmul.f32 %v5903_v34, %v5931_v24  ;;  %v5944_v9 = vld [vmem:[#allocation83_spill] sm:$0xff]  ;;  %v5945_v17 = vld [vmem:[#allocation13_spill] sm:$0xff] }
 0x1a9   : > { %v4691_v42 = vadd.f32 %v1347_v16, %v1102_v58  ;;  %v4693_v31 = vadd.f32 %v1348_v46, %v1103_v62  ;;  %v605_v44 = vmul.f32 %v5942_v13, %v5919_v53  ;;  %v978_v16 = vmul.f32 %v5853_v1, %v5930_v12  ;;  %v5943_v46 = vld [vmem:[#allocation78_spill] sm:$0xff]  ;;  %v5950_v13 = vld [vmem:[#allocation144_spill] sm:$0xff] }
 0x1aa   : > { %v4701_v14 = vadd.f32 %v1349_v19, %v1104_v43  ;;  %v1351_v18 = vmul.f32 %v3762_v37, %v5931_v24  ;;  %1962 = vperm.xlu0 %3032, %v1619_v5   ;;  %1959 = vperm.xlu1 %3033, %v1618_v33   ;;  %v1621_v58 = vadd.f32 %v5871_v6, %v5943_v46 }
 0x1ab   : > { %5938 = vst [vmem:[#allocation44_spill] sm:$0xff] %v4691_v42  ;;  %5939 = vst [vmem:[#allocation54_spill] sm:$0xff] %v4693_v31  ;;  %v1620_v21 = vadd.f32 %v5868_v63, %v5944_v9  ;;  %v1105_v34 = vadd.f32 %v977_v15, %v604_v38  ;;  %v1106_v54 = vadd.f32 %v978_v16, %v605_v44  ;;  %v6035_v42 = vld [vmem:[#allocation26_spill] sm:$0xff] }
 0x1ac   : > { %5941 = vst [vmem:[#allocation56_spill] sm:$0xff] %v4701_v14  ;;  %v606_v62 = vmul.f32 %v5945_v17, %v5919_v53  ;;  %v979_v19 = vmul.f32 %v5846_v10, %v5930_v12  ;;  %v1352_v1 = vmul.f32 %v3866_v22, %v5931_v24  ;;  %v607_v5 = vmul.f32 %v5947_v40, %v5919_v53  ;;  %v5958_v40 = vld [vmem:[#allocation73_spill] sm:$0xff] }
 0x1ad   : > { %v4719_v37 = vadd.f32 %v1350_v61, %v1105_v34  ;;  %v980_v20 = vmul.f32 %v5855_v50, %v5930_v12  ;;  %v1353_v33 = vmul.f32 %v5861_v55, %v5931_v24  ;;  %v4727_v43 = vadd.f32 %v1351_v18, %v1106_v54  ;;  %v5949_v61 = vld [vmem:[#allocation146_spill] sm:$0xff] }
 0x1ae   : > { %v1107_v48 = vadd.f32 %v979_v19, %v606_v62  ;;  %v608_v10 = vmul.f32 %v5888_v25, %v5919_v53  ;;  %v981_v22 = vmul.f32 %v5747_v28, %v5930_v12  ;;  %1968 = vperm.xlu0 %3032, %v1621_v58   ;;  %1965 = vperm.xlu1 %3033, %v1620_v21   ;;  %v5957_v19 = vld [vmem:[#allocation19_spill] sm:$0xff] }
 0x1af   : > { %5946 = vst [vmem:[#allocation103_spill] sm:$0xff] %v4719_v37  ;;  %5948 = vst [vmem:[#allocation120_spill] sm:$0xff] %v4727_v43  ;;  %v1108_v38 = vadd.f32 %v980_v20, %v607_v5  ;;  %v1354_v15 = vmul.f32 %v3916_v35, %v5931_v24  ;;  %v1623_v50 = vadd.f32 %v4333_v0, %v5949_v61  ;;  %v5959_v20 = vld [vmem:[#allocation106_spill] sm:$0xff]  ;;  %v5963_v61 = vld [vmem:[#allocation124_spill] sm:$0xff] }
 0x1b0   : > { %v1622_v55 = vadd.f32 %v4321_v56, %v5950_v13  ;;  %v4739_v44 = vadd.f32 %v1352_v1, %v1107_v48  ;;  %v1109_v16 = vadd.f32 %v981_v22, %v608_v10  ;;  %v609_v28 = vmul.f32 %v5889_v32, %v5919_v53  ;;  %v5954_v32 = vld [vmem:[#allocation100_spill] sm:$0xff]  ;;  %v5962_v10 = vld [vmem:[#allocation139_spill] sm:$0xff]  ;;  %v6029_v43 = vld [vmem:[#allocation102_spill] sm:$0xff] }
 0x1b1   : > { %v4741_v18 = vadd.f32 %v1353_v33, %v1108_v38  ;;  %v982_v25 = vmul.f32 %v5865_v36, %v5930_v12  ;;  %v1355_v35 = vmul.f32 %v3868_v39, %v5931_v24  ;;  %v610_v58 = vmul.f32 %v5909_v51, %v5919_v53  ;;  %v5960_v33 = vld [vmem:[#allocation77_spill] sm:$0xff] }
 0x1b2   : > { %5951 = vst [vmem:[#allocation71_spill] sm:$0xff] %v4739_v44  ;;  %v4749_v46 = vadd.f32 %v1354_v15, %v1109_v16  ;;  %v983_v9 = vmul.f32 %v5862_v60, %v5930_v12  ;;  %v1356_v21 = vmul.f32 %v3965_v27, %v5931_v24  ;;  %1974 = vperm.xlu0 %3032, %v1623_v50   ;;  %v5955_v60 = vld [vmem:[#allocation115_spill] sm:$0xff]  ;;  %v5966_v16 = vld [vmem:[#allocation22_spill] sm:$0xff] }
 0x1b3   : > { %5952 = vst [vmem:[#allocation112_spill] sm:$0xff] %v4741_v18  ;;  %1971 = vperm.xlu1 %3033, %v1622_v55   ;;  %v1624_v34 = vadd.f32 %v5818_v2, %v5954_v32  ;;  %v1110_v36 = vadd.f32 %v982_v25, %v609_v28  ;;  %v611_v39 = vmul.f32 %v5899_v47, %v5919_v53  ;;  %v5964_v50 = vld [vmem:[#allocation95_spill] sm:$0xff]  ;;  %v5967_v25 = vld [vmem:[#allocation29_spill] sm:$0xff] }
 0x1b4   : > { %5953 = vst [vmem:[#allocation72_spill] sm:$0xff] %v4749_v46  ;;  %v1111_v54 = vadd.f32 %v983_v9, %v610_v58  ;;  %v984_v17 = vmul.f32 %v5819_v26, %v5930_v12  ;;  %v1357_v51 = vmul.f32 %v5779_v30, %v5931_v24  ;;  %v1625_v62 = vadd.f32 %v4129_v59, %v5955_v60  ;;  %v5970_v32 = vld [vmem:[#allocation141_spill] sm:$0xff] }
 0x1b5   : > { %v4767_v27 = vadd.f32 %v1355_v35, %v1110_v36  ;;  %v597_v1 = vmul.f32 %v5957_v19, %v5887_v45  ;;  %v970_v5 = vmul.f32 %v5958_v40, %v5885_v3  ;;  %v1626_v47 = vadd.f32 %v5960_v33, %v5959_v20  ;;  %v6027_v18 = vld [vmem:[#allocation65_spill] sm:$0xff] }
 0x1b6   : > { %v4775_v48 = vadd.f32 %v1356_v21, %v1111_v54  ;;  %v1112_v26 = vadd.f32 %v984_v17, %v611_v39  ;;  %v1343_v30 = vmul.f32 %v5962_v10, %v5893_v23  ;;  %1980 = vperm.xlu0 %3032, %v1625_v62   ;;  %v612_v38 = vmul.f32 %v5927_v7, %v5919_v53  ;;  %v5969_v21 = vld [vmem:[#allocation90_spill] sm:$0xff]  ;;  %v5971_v39 = vld [vmem:[#allocation116_spill] sm:$0xff] }
 0x1b7   : > { %5956 = vst [vmem:[#allocation60_spill] sm:$0xff] %v4767_v27  ;;  %1977 = vperm.xlu1 %3033, %v1624_v34   ;;  %v1098_v22 = vadd.f32 %v970_v5, %v597_v1  ;;  %v985_v15 = vmul.f32 %v5772_v8, %v5930_v12  ;;  %v1627_v13 = vadd.f32 %v5964_v50, %v5963_v61  ;;  %v5972_v17 = vld [vmem:[#allocation86_spill] sm:$0xff]  ;;  %v5974_v5 = vld [vmem:[#allocation21_spill] sm:$0xff] }
 0x1b8   : > { %5961 = vst [vmem:[#allocation110_spill] sm:$0xff] %v4775_v48  ;;  %v4785_v55 = vadd.f32 %v1357_v51, %v1112_v26  ;;  %v1358_v28 = vmul.f32 %v5966_v16, %v5931_v24  ;;  %v598_v35 = vmul.f32 %v5967_v25, %v5887_v45  ;;  %v971_v7 = vmul.f32 %v5969_v21, %v5885_v3  ;;  %v5981_v16 = vld [vmem:[#allocation147_spill] sm:$0xff]  ;;  %v6026_v27 = vld [vmem:[#allocation66_spill] sm:$0xff] }
 0x1b9   : > { %v4791_v58 = vadd.f32 %v1343_v30, %v1098_v22  ;;  %v1113_v9 = vadd.f32 %v985_v15, %v612_v38  ;;  %v1344_v8 = vmul.f32 %v5970_v32, %v5893_v23  ;;  %v613_v34 = vmul.f32 %v5957_v19, %v5919_v53  ;;  %v5975_v19 = vld [vmem:[#allocation82_spill] sm:$0xff]  ;;  %v5977_v22 = vld [vmem:[#allocation135_spill] sm:$0xff] }
 0x1ba   : > { %5965 = vst [vmem:[#allocation52_spill] sm:$0xff] %v4785_v55  ;;  %v986_v36 = vmul.f32 %v5958_v40, %v5930_v12  ;;  %v1359_v54 = vmul.f32 %v5962_v10, %v5931_v24  ;;  %1986 = vperm.xlu0 %3032, %v1627_v13   ;;  %v1628_v51 = vadd.f32 %v5972_v17, %v5971_v39  ;;  %v5976_v40 = vld [vmem:[#allocation39_spill] sm:$0xff]  ;;  %v5980_v13 = vld [vmem:[#allocation125_spill] sm:$0xff] }
 0x1bb   : > { %5968 = vst [vmem:[#allocation23_spill] sm:$0xff] %v4791_v58  ;;  %1983 = vperm.xlu1 %3033, %v1626_v47   ;;  %v4805_v60 = vadd.f32 %v1358_v28, %v1113_v9  ;;  %v1099_v62 = vadd.f32 %v971_v7, %v598_v35  ;;  %v599_v20 = vmul.f32 %v5974_v5, %v5887_v45  ;;  %v5978_v10 = vld [vmem:[#allocation51_spill] sm:$0xff] }
 0x1bc   : > { %v1114_v1 = vadd.f32 %v986_v36, %v613_v34  ;;  %v972_v26 = vmul.f32 %v5975_v19, %v5885_v3  ;;  %v1345_v30 = vmul.f32 %v5976_v40, %v5893_v23  ;;  %v1629_v38 = vadd.f32 %v5978_v10, %v5977_v22 }
 0x1bd   : > { %5973 = vst [vmem:[#allocation92_spill] sm:$0xff] %v4805_v60  ;;  %v4815_v47 = vadd.f32 %v1344_v8, %v1099_v62  ;;  %v614_v15 = vmul.f32 %v5967_v25, %v5919_v53  ;;  %v987_v61 = vmul.f32 %v5969_v21, %v5930_v12  ;;  %v1630_v28 = vadd.f32 %v5981_v16, %v5980_v13  ;;  %v5983_v8 = vld [vmem:[#allocation37_spill] sm:$0xff]  ;;  %v5984_v25 = vld [vmem:[#allocation98_spill] sm:$0xff]  ;;  %v5985_v62 = vld [vmem:[#allocation75_spill] sm:$0xff] }
 0x1be   : > { %v4823_v35 = vadd.f32 %v1359_v54, %v1114_v1  ;;  %v1100_v9 = vadd.f32 %v972_v26, %v599_v20  ;;  %v1360_v7 = vmul.f32 %v5970_v32, %v5931_v24  ;;  %1992 = vperm.xlu0 %3032, %v1629_v38   ;;  %v600_v36 = vmul.f32 %v5983_v8, %v5887_v45  ;;  %v5986_v21 = vld [vmem:[#allocation149_spill] sm:$0xff]  ;;  %v5988_v54 = vld [vmem:[#allocation64_spill] sm:$0xff]  ;;  %v5992_v13 = vld [vmem:[#allocation67_spill] sm:$0xff] }
 0x1bf   : > { %5979 = vst [vmem:[#allocation130_spill] sm:$0xff] %v4815_v47  ;;  %1989 = vperm.xlu1 %3033, %v1628_v51   ;;  %v1115_v34 = vadd.f32 %v987_v61, %v614_v15  ;;  %v973_v39 = vmul.f32 %v5984_v25, %v5885_v3  ;;  %v1631_v22 = vadd.f32 %v5986_v21, %v5985_v62  ;;  %v5991_v61 = vld [vmem:[#allocation84_spill] sm:$0xff] }
 0x1c0   : > { %5982 = vst [vmem:[#allocation128_spill] sm:$0xff] %v4823_v35  ;;  %v4833_v47 = vadd.f32 %v1345_v30, %v1100_v9  ;;  %v1346_v1 = vmul.f32 %v5988_v54, %v5893_v23  ;;  %v615_v32 = vmul.f32 %v5974_v5, %v5919_v53  ;;  %v988_v45 = vmul.f32 %v5975_v19, %v5930_v12  ;;  %v6024_v35 = vld [vmem:[#allocation28_spill] sm:$0xff] }
 0x1c1   : > { %v4839_v20 = vadd.f32 %v1360_v7, %v1115_v34  ;;  %v1101_v51 = vadd.f32 %v973_v39, %v600_v36  ;;  %v1361_v3 = vmul.f32 %v5976_v40, %v5931_v24  ;;  %v616_v26 = vmul.f32 %v5983_v8, %v5919_v53  ;;  %v5997_v34 = vld [vmem:[#allocation79_spill] sm:$0xff]  ;;  %v5998_v36 = vld [vmem:[#allocation85_spill] sm:$0xff]  ;;  %v5999_v39 = vld [vmem:[#allocation42_spill] sm:$0xff] }
 0x1c2   : > { %5987 = vst [vmem:[#allocation126_spill] sm:$0xff] %v4833_v47  ;;  %v989_v30 = vmul.f32 %v5984_v25, %v5930_v12  ;;  %v1362_v23 = vmul.f32 %v5988_v54, %v5931_v24  ;;  %1998 = vperm.xlu0 %3032, %v1631_v22   ;;  %v1116_v38 = vadd.f32 %v988_v45, %v615_v32  ;;  %v5995_v12 = vld [vmem:[#allocation145_spill] sm:$0xff]  ;;  %v6000_v22 = vld [vmem:[#allocation63_spill] sm:$0xff] }
 0x1c3   : > { %5989 = vst [vmem:[#allocation104_spill] sm:$0xff] %v4839_v20  ;;  %1995 = vperm.xlu1 %3033, %v1630_v28   ;;  %v4851_v5 = vadd.f32 %v1346_v1, %v1101_v51  ;;  %v1633_v19 = vadd.f32 %v5933_v49, %v5991_v61  ;;  %v1632_v40 = vadd.f32 %v5847_v29, %v5992_v13  ;;  %v5996_v28 = vld [vmem:[#allocation76_spill] sm:$0xff]  ;;  %v6001_v1 = vld [vmem:[#allocation94_spill] sm:$0xff]  ;;  %v6002_v51 = vld [vmem:[#allocation41_spill] sm:$0xff] }
 0x1c4   : > { %v1117_v15 = vadd.f32 %v989_v30, %v616_v26  ;;  %v4857_v9 = vadd.f32 %v1361_v3, %v1116_v38  ;;  %v1635_v24 = vadd.f32 %v5859_v41, %v5995_v12  ;;  %v1634_v7 = vadd.f32 %v5937_v11, %v5996_v28  ;;  %v6003_v30 = vld [vmem:[#allocation81_spill] sm:$0xff]  ;;  %v6004_v38 = vld [vmem:[#allocation148_spill] sm:$0xff]  ;;  %v6006_v12 = vld [vmem:[#allocation118_spill] sm:$0xff] }
 0x1c5   : > { %5990 = vst [vmem:[#allocation138_spill] sm:$0xff] %v4851_v5  ;;  %v1637_v8 = vadd.f32 %v5871_v6, %v5997_v34  ;;  %v1636_v25 = vadd.f32 %v5868_v63, %v5998_v36  ;;  %v1639_v62 = vadd.f32 %v4333_v0, %v5999_v39  ;;  %v1638_v54 = vadd.f32 %v4321_v56, %v6000_v22  ;;  %v6005_v13 = vld [vmem:[#allocation132_spill] sm:$0xff]  ;;  %v6007_v34 = vld [vmem:[#allocation131_spill] sm:$0xff]  ;;  %v6009_v22 = vld [vmem:[#allocation49_spill] sm:$0xff] }
 0x1c6   : > { %5993 = vst [vmem:[#allocation119_spill] sm:$0xff] %v4857_v9  ;;  %v4859_v53 = vadd.f32 %v1362_v23, %v1117_v15  ;;  %2004 = vperm.xlu0 %3032, %v1633_v19   ;;  %v1641_v32 = vadd.f32 %v4129_v59, %v6001_v1  ;;  %v1640_v45 = vadd.f32 %v5818_v2, %v6002_v51  ;;  %v6008_v36 = vld [vmem:[#allocation136_spill] sm:$0xff]  ;;  %v6010_v1 = vld [vmem:[#allocation47_spill] sm:$0xff] }
 0x1c7   : > { %2001 = vperm.xlu1 %3033, %v1632_v40   ;;  %v1643_v23 = vadd.f32 %v5964_v50, %v6003_v30  ;;  %v1642_v15 = vadd.f32 %v5960_v33, %v6004_v38  ;;  %v1645_v40 = vadd.f32 %v5978_v10, %v6005_v13  ;;  %v6011_v30 = vld [vmem:[#allocation101_spill] sm:$0xff]  ;;  %v6012_v38 = vld [vmem:[#allocation40_spill] sm:$0xff]  ;;  %v1659_v60 = vadd.f32 %v5964_v50, %v6024_v35 }
 0x1c8   : > { %5994 = vst [vmem:[#allocation24_spill] sm:$0xff] %v4859_v53  ;;  %v1661_v46 = vadd.f32 %v5978_v10, %v6026_v27 }
 0x1c9   : > { %v4877_v3 = vpop.permute.xlu0 %1833 }
 0x1ca   : > { %2010 = vperm.xlu0 %3032, %v1635_v24   ;;  %v1644_v24 = vadd.f32 %v5972_v17, %v6006_v12  ;;  %v6013_v12 = vld [vmem:[#allocation69_spill] sm:$0xff] }
 0x1cb   : > { %2007 = vperm.xlu1 %3033, %v1634_v7  }
 0x1ce   : > { %2016 = vperm.xlu0 %3032, %v1637_v8   ;;  %v1647_v8 = vadd.f32 %v5986_v21, %v6007_v34  ;;  %v6014_v34 = vld [vmem:[#allocation61_spill] sm:$0xff] }
 0x1cf   : > { %2013 = vperm.xlu1 %3033, %v1636_v25   ;;  %v1646_v25 = vadd.f32 %v5981_v16, %v6008_v36 }
 0x1d2   : > { %2022 = vperm.xlu0 %3032, %v1639_v62   ;;  %v4879_v26 = vpop.permute.xlu1 %1836 }
 0x1d3   : > { %2019 = vperm.xlu1 %3033, %v1638_v54   ;;  %v1649_v54 = vadd.f32 %v5933_v49, %v6009_v22  ;;  %v6016_v22 = vlaneseq }
 0x1d6   : > { %2028 = vperm.xlu0 %3032, %v1641_v32   ;;  %v4887_v19 = vpop.permute.xlu0 %1842  ;;  %v1648_v32 = vadd.f32 %v5847_v29, %v6010_v1  ;;  %v6017_v1 = vld [vmem:[#allocation50_spill] sm:$0xff] }
 0x1d7   : > { %2025 = vperm.xlu1 %3033, %v1640_v45   ;;  %v4885_v61 = vpop.permute.xlu1 %1839 }
 0x1da   : > { %2034 = vperm.xlu0 %3032, %v1643_v23   ;;  %v1651_v23 = vadd.f32 %v5859_v41, %v6011_v30  ;;  %v6018_v30 = vld [vmem:[#allocation62_spill] sm:$0xff] }
 0x1db   : > { %2031 = vperm.xlu1 %3033, %v1642_v15   ;;  %v4893_v28 = vpop.permute.xlu1 %1845  ;;  %v4895_v7 = vpop.permute.xlu0 %1848  ;;  %v1650_v15 = vadd.f32 %v5937_v11, %v6012_v38 }
 0x1de   : > { %2040 = vperm.xlu0 %3032, %v1645_v40  }
 0x1df   : > { %2037 = vperm.xlu1 %3033, %v1644_v24   ;;  %v4901_v39 = vpop.permute.xlu1 %1851  ;;  %v4903_v62 = vpop.permute.xlu0 %1854  ;;  %v1653_v24 = vadd.f32 %v5871_v6, %v6013_v12 }
 0x1e2   : > { %2046 = vperm.xlu0 %3032, %v1647_v8   ;;  %v1652_v8 = vadd.f32 %v5868_v63, %v6014_v34  ;;  %v6021_v34 = vld [vmem:[#allocation88_spill] sm:$0xff] }
 0x1e3   : > { %2043 = vperm.xlu1 %3033, %v1646_v25   ;;  %v4909_v51 = vpop.permute.xlu1 %1857  ;;  %v4911_v45 = vpop.permute.xlu0 %1860 }
 0x1e6   : > { %2052 = vperm.xlu0 %3032, %v1649_v54   ;;  %v4930_v54 = vand.u32 127, %v6016_v22  ;;  %v6022_v22 = vld [vmem:[#allocation108_spill] sm:$0xff] }
 0x1e7   : > { %2049 = vperm.xlu1 %3033, %v1648_v32   ;;  %v4917_v13 = vpop.permute.xlu1 %1863  ;;  %v4919_v40 = vpop.permute.xlu0 %1866  ;;  %v1655_v32 = vadd.f32 %v4333_v0, %v6017_v1  ;;  %v1656_v53 = vadd.f32 %v5818_v2, %v6022_v22  ;;  %v6023_v1 = vld [vmem:[#allocation15_spill] sm:$0xff] }
 0x1e8   : > { %v2222_v38 = vadd.s32 4294967288, %v4930_v54  ;;  %v4948_v9 = vsub.s32 %v4930_v54, %v6023_v1  ;;  %v2236_v5 = vadd.s32 4294967272, %v4930_v54 }
 0x1ea   : > { %2058 = vperm.xlu0 %3032, %v1651_v23   ;;  %v1654_v23 = vadd.f32 %v4321_v56, %v6018_v30  ;;  %v4951_v30 = vsub.s32 %v2222_v38, %v6023_v1  ;;  %v6025_v38 = vld [vmem:[#allocation142_spill] sm:$0xff]  ;;  %v4965_v55 = vsub.s32 %v2236_v5, %v6023_v1  ;;  %v2257_v5 = vadd.s32 4294967248, %v4930_v54 }
 0x1eb   : > { %2055 = vperm.xlu1 %3033, %v1650_v15   ;;  %v4925_v36 = vpop.permute.xlu1 %1869  ;;  %v4927_v25 = vpop.permute.xlu0 %1872  ;;  %v1658_v58 = vadd.f32 %v5960_v33, %v6025_v38 }
 0x1ec   : > { %6015 = vst [vmem:[#allocation35_spill] sm:$0xff] %v4927_v25 }
 0x1ee   : > { %2064 = vperm.xlu0 %3032, %v1653_v24   ;;  %v2229_v24 = vadd.s32 4294967280, %v4930_v54 }
 0x1ef   : > { %2061 = vperm.xlu1 %3033, %v1652_v8   ;;  %v4937_v15 = vpop.permute.xlu1 %1875  ;;  %v4939_v12 = vpop.permute.xlu0 %1878  ;;  %v1657_v8 = vadd.f32 %v4129_v59, %v6021_v34 }
 0x1f0   : > { %6019 = vst [vmem:[#allocation30_spill] sm:$0xff] %v4937_v15  ;;  %6020 = vst [vmem:[#allocation34_spill] sm:$0xff] %v4939_v12  ;;  %v4958_v22 = vsub.s32 %v2229_v24, %v6023_v1  ;;  %v6031_v12 = vld [vmem:[#allocation109_spill] sm:$0xff] }
 0x1f1   : > { %v6033_v15 = vld [vmem:[#allocation25_spill] sm:$0xff] }
 0x1f2   : > { %2070 = vperm.xlu0 %3032, %v1655_v32  }
 0x1f3   : > { %2067 = vperm.xlu1 %3033, %v1654_v23   ;;  %v1882_v20 = vpop.permute.xlu1 %1881  ;;  %v1885_v32 = vpop.permute.xlu0 %1884  ;;  %v2243_v23 = vadd.s32 4294967264, %v4930_v54 }
 0x1f4   : > { %v2330_v34 = vrot.slane %v1882_v20, %v4948_v9  ;;  %v2334_v47 = vrot.slane %v1885_v32, %v4951_v30 }
 0x1f5   : > { %v4970_v24 = vsub.s32 %v2243_v23, %v6023_v1 }
 0x1f6   : > { %2076 = vperm.xlu0 %3032, %v1657_v8   ;;  %v2335_v35 = vsel %vm2227_vm1, %v2334_v47, %v2330_v34  ;;  %v2271_v47 = vadd.s32 4294967232, %v4930_v54 }
 0x1f7   : > { %2073 = vperm.xlu1 %3033, %v1656_v53   ;;  %v2250_v53 = vadd.s32 4294967256, %v4930_v54  ;;  %v1888_v8 = vpop.permute.xlu1 %1887  ;;  %v1891_v48 = vpop.permute.xlu0 %1890 }
 0x1f8   : > { %v2339_v20 = vrot.slane %v1888_v8, %v4958_v22  ;;  %v2344_v32 = vrot.slane %v1891_v48, %v4965_v55  ;;  %v1660_v8 = vadd.f32 %v5972_v17, %v6027_v18  ;;  %v4989_v18 = vsub.s32 %v2257_v5, %v6023_v1 }
 0x1f9   : > { %v5002_v5 = vsub.s32 %v2271_v47, %v6023_v1  ;;  %v2292_v47 = vadd.s32 4294967208, %v4930_v54 }
 0x1fa   : > { %2082 = vperm.xlu0 %3032, %v1659_v60   ;;  %v2340_v38 = vsel %vm2234_vm2, %v2339_v20, %v2335_v35  ;;  %v2264_v60 = vadd.s32 4294967240, %v4930_v54  ;;  %v6028_v20 = vld [vmem:[#allocation121_spill] sm:$0xff] }
 0x1fb   : > { %2079 = vperm.xlu1 %3033, %v1658_v58   ;;  %v4981_v58 = vsub.s32 %v2250_v53, %v6023_v1  ;;  %v1897_v44 = vpop.permute.xlu0 %1896  ;;  %v2345_v27 = vsel %vm2241_vm3, %v2344_v32, %v2340_v38  ;;  %v1663_v35 = vadd.f32 %v5986_v21, %v6028_v20 }
 0x1fc   : > { %v1894_v23 = vpop.permute.xlu1 %1893 }
 0x1fd   : > { %v2349_v48 = vrot.slane %v1894_v23, %v4970_v24  ;;  %v2354_v34 = vrot.slane %v1897_v44, %v4981_v58  ;;  %v1662_v23 = vadd.f32 %v5981_v16, %v6029_v43 }
 0x1fe   : > { %2088 = vperm.xlu0 %3032, %v1661_v46   ;;  %v4997_v46 = vsub.s32 %v2264_v60, %v6023_v1  ;;  %v2285_v60 = vadd.s32 4294967216, %v4930_v54 }
 0x1ff   : > { %2085 = vperm.xlu1 %3033, %v1660_v8   ;;  %v2350_v53 = vsel %vm2248_vm4, %v2349_v48, %v2345_v27  ;;  %v2278_v8 = vadd.s32 4294967224, %v4930_v54  ;;  %v1903_v32 = vpop.permute.xlu0 %1902  ;;  %v6030_v27 = vld [vmem:[#allocation137_spill] sm:$0xff] }
 0x200   : > { %v1900_v37 = vpop.permute.xlu1 %1899  ;;  %v2355_v38 = vsel %vm2255_vm5, %v2354_v34, %v2350_v53  ;;  %v2364_v43 = vrot.slane %v1903_v32, %v4997_v46  ;;  %v1665_v20 = vadd.f32 %v5933_v49, %v6030_v27  ;;  %v2299_v53 = vadd.s32 4294967200, %v4930_v54 }
 0x201   : > { %v2359_v44 = vrot.slane %v1900_v37, %v4989_v18  ;;  %v1664_v37 = vadd.f32 %v5847_v29, %v6031_v12  ;;  %v5021_v12 = vsub.s32 %v2285_v60, %v6023_v1 }
 0x202   : > { %2094 = vperm.xlu0 %3032, %v1663_v35   ;;  %v5013_v35 = vsub.s32 %v2278_v8, %v6023_v1  ;;  %v5034_v60 = vsub.s32 %v2299_v53, %v6023_v1 }
 0x203   : > { %2091 = vperm.xlu1 %3033, %v1662_v23   ;;  %v2360_v48 = vsel %vm2262_vm6, %v2359_v44, %v2355_v38  ;;  %v6032_v38 = vld [vmem:[#allocation27_spill] sm:$0xff] }
 0x204   : > { %v1906_v23 = vpop.permute.xlu1 %1905  ;;  %v1909_v14 = vpop.permute.xlu0 %1908  ;;  %v2365_v32 = vsel %vm2269_vm7, %v2364_v43, %v2360_v48  ;;  %v1667_v27 = vadd.f32 %v5859_v41, %v6032_v38  ;;  %v2313_v48 = vadd.s32 4294967184, %v4930_v54  ;;  %v6034_v38 = vld [vmem:[#allocation43_spill] sm:$0xff] }
 0x205   : > { %v2369_v34 = vrot.slane %v1906_v23, %v5002_v5  ;;  %v2374_v44 = vrot.slane %v1909_v14, %v5013_v35  ;;  %v1666_v23 = vadd.f32 %v5937_v11, %v6033_v15  ;;  %v1669_v25 = vadd.f32 %v5871_v6, %v6034_v38  ;;  %v6037_v38 = vld [vmem:[#allocation91_spill] sm:$0xff] }
 0x206   : > { %2100 = vperm.xlu0 %3032, %v1665_v20   ;;  %v5029_v20 = vsub.s32 %v2292_v47, %v6023_v1 }
 0x207   : > { %2097 = vperm.xlu1 %3033, %v1664_v37   ;;  %v2370_v8 = vsel %vm2276_vm8, %v2369_v34, %v2365_v32  ;;  %v2306_v37 = vadd.s32 4294967192, %v4930_v54  ;;  %v2320_v34 = vadd.s32 4294967176, %v4930_v54  ;;  %v5050_v54 = vsub.s32 %v2313_v48, %v6023_v1 }
 0x208   : > { %v1912_v31 = vpop.permute.xlu1 %1911  ;;  %v1915_v43 = vpop.permute.xlu0 %1914  ;;  %v2375_v15 = vsel %vm2283_vm9, %v2374_v44, %v2370_v8 }
 0x209   : > { %v2379_v14 = vrot.slane %v1912_v31, %v5021_v12  ;;  %v2384_v47 = vrot.slane %v1915_v43, %v5029_v20  ;;  %v1668_v31 = vadd.f32 %v5868_v63, %v6035_v42  ;;  %v5055_v42 = vsub.s32 %v2320_v34, %v6023_v1 }
 0x20a   : > { %2106 = vperm.xlu0 %3032, %v1667_v27   ;;  %v5046_v27 = vsub.s32 %v2306_v37, %v6023_v1  ;;  %v2226_v34 = vrot.slane %v4879_v26, %v4951_v30 }
 0x20b   : > { %2103 = vperm.xlu1 %3033, %v1666_v23   ;;  %v2380_v32 = vsel %vm2290_vm10, %v2379_v14, %v2375_v15  ;;  %v6036_v14 = vld [vmem:[#allocation127_spill] sm:$0xff] }
 0x20c   : > { %v1918_v53 = vpop.permute.xlu1 %1917  ;;  %v1921_v23 = vpop.permute.xlu0 %1920  ;;  %v2385_v8 = vsel %vm5558_vm11, %v2384_v47, %v2380_v32  ;;  %v1671_v15 = vadd.f32 %v4333_v0, %v6036_v14 }
 0x20d   : > { %v2389_v44 = vrot.slane %v1918_v53, %v5034_v60  ;;  %v2394_v43 = vrot.slane %v1921_v23, %v5046_v27  ;;  %v6038_v23 = vld [vmem:[#allocation45_spill] sm:$0xff] }
 0x20e   : > { %2112 = vperm.xlu0 %3032, %v1669_v25   ;;  %v1670_v25 = vadd.f32 %v4321_v56, %v6037_v38  ;;  %v2233_v38 = vrot.slane %v4885_v61, %v4958_v22  ;;  %v2240_v61 = vrot.slane %v4887_v19, %v4965_v55 }
 0x20f   : > { %2109 = vperm.xlu1 %3033, %v1668_v31   ;;  %v2390_v37 = vsel %vm2304_vm12, %v2389_v44, %v2385_v8  ;;  %v1672_v44 = vadd.f32 %v5818_v2, %v6038_v23  ;;  %v6039_v8 = vld [vmem:[#allocation53_spill] sm:$0xff] }
 0x210   : > { %v1924_v31 = vpop.permute.xlu1 %1923  ;;  %v1927_v53 = vpop.permute.xlu0 %1926  ;;  %v2395_v1 = vsel %vm2311_vm13, %v2394_v43, %v2390_v37  ;;  %v1673_v14 = vadd.f32 %v4129_v59, %v6039_v8  ;;  %v2221_v43 = vrot.slane %v4877_v3, %v4948_v9  ;;  %v2247_v8 = vrot.slane %v4893_v28, %v4970_v24 }
 0x211   : > { %v2399_v48 = vrot.slane %v1924_v31, %v5050_v54  ;;  %v2404_v47 = vrot.slane %v1927_v53, %v5055_v42  ;;  %v6040_v53 = vld [vmem:[#allocation46_spill] sm:$0xff] }
 0x212   : > { %2118 = vperm.xlu0 %3032, %v1671_v15  }
 0x213   : > { %2115 = vperm.xlu1 %3033, %v1670_v25   ;;  %v2400_v32 = vsel %vm2318_vm14, %v2399_v48, %v2395_v1  ;;  %v1674_v48 = vadd.f32 %v5960_v33, %v6040_v53  ;;  %v2228_v1 = vsel %vm2227_vm1, %v2226_v34, %v2221_v43  ;;  %v6042_v34 = vld [vmem:[#allocation70_spill] sm:$0xff] }
 0x214   : > { %v5075_v15 = vsel %vm2325_vm15, %v2404_v47, %v2400_v32  ;;  %v1930_v25 = vpop.permute.xlu1 %1929  ;;  %v1933_v31 = vpop.permute.xlu0 %1932  ;;  %v6041_v32 = vld [vmem:[#allocation38_spill] sm:$0xff]  ;;  %v2235_v3 = vsel %vm2234_vm2, %v2233_v38, %v2228_v1  ;;  %v1676_v19 = vadd.f32 %v5972_v17, %v6042_v34  ;;  %v2261_v1 = vrot.slane %v4901_v39, %v4989_v18 }
 0x215   : > { %v2409_v26 = vrot.slane %v1930_v25, %v4948_v9  ;;  %v2413_v37 = vrot.slane %v1933_v31, %v4951_v30  ;;  %v1675_v23 = vadd.f32 %v5964_v50, %v6041_v32  ;;  %v2242_v43 = vsel %vm2241_vm3, %v2240_v61, %v2235_v3 }
 0x216   : > { %2124 = vperm.xlu0 %3032, %v1673_v14   ;;  %v2249_v53 = vsel %vm2248_vm4, %v2247_v8, %v2242_v43  ;;  %v2268_v8 = vrot.slane %v4903_v62, %v4997_v46  ;;  %v2275_v34 = vrot.slane %v4909_v51, %v5002_v5  ;;  %v6046_v62 = vld [vmem:[#allocation89_spill] sm:$0xff] }
 0x217   : > { %2121 = vperm.xlu1 %3033, %v1672_v44   ;;  %v2414_v47 = vsel %vm2227_vm1, %v2413_v37, %v2409_v26  ;;  %v2254_v26 = vrot.slane %v4895_v7, %v4981_v58  ;;  %v6043_v37 = vld [vmem:[#allocation59_spill] sm:$0xff]  ;;  %v6044_v7 = vld [vmem:[#allocation68_spill] sm:$0xff] }
 0x218   : > { %v1936_v44 = vpop.permute.xlu1 %1935  ;;  %v1939_v14 = vpop.permute.xlu0 %1938  ;;  %v1677_v28 = vadd.f32 %v5978_v10, %v6043_v37 }
 0x219   : > { %v2418_v25 = vrot.slane %v1936_v44, %v4958_v22  ;;  %v2423_v31 = vrot.slane %v1939_v14, %v4965_v55  ;;  %v2256_v3 = vsel %vm2255_vm5, %v2254_v26, %v2249_v53  ;;  %v6045_v14 = vld [vmem:[#allocation55_spill] sm:$0xff] }
 0x21a   : > { %2130 = vperm.xlu0 %3032, %v1675_v23  }
 0x21b   : > { %2127 = vperm.xlu1 %3033, %v1674_v48   ;;  %v2419_v38 = vsel %vm2234_vm2, %v2418_v25, %v2414_v47  ;;  %v1678_v47 = vadd.f32 %v5981_v16, %v6044_v7  ;;  %v1679_v25 = vadd.f32 %v5986_v21, %v6045_v14 }
 0x21c   : > { %v2424_v48 = vsel %vm2241_vm3, %v2423_v31, %v2419_v38  ;;  %v1945_v23 = vpop.permute.xlu0 %1944  ;;  %v2263_v31 = vsel %vm2262_vm6, %v2261_v1, %v2256_v3  ;;  %v2282_v1 = vrot.slane %v4911_v45, %v5013_v35  ;;  %v1682_v45 = vadd.f32 %v5937_v11, %v4673_v4 }
 0x21d   : > { %v1942_v32 = vpop.permute.xlu1 %1941  ;;  %v2433_v61 = vrot.slane %v1945_v23, %v4981_v58  ;;  %v2270_v53 = vsel %vm2269_vm7, %v2268_v8, %v2263_v31  ;;  %v2289_v23 = vrot.slane %v4917_v13, %v5021_v12  ;;  %v2296_v8 = vrot.slane %v4919_v40, %v5029_v20  ;;  %v6047_v40 = vld [vmem:[#allocation44_spill] sm:$0xff] }
 0x21e   : > { %v2428_v44 = vrot.slane %v1942_v32, %v4970_v24  ;;  %2136 = vperm.xlu0 %3032, %v1677_v28   ;;  %v1680_v28 = vadd.f32 %v5847_v29, %v6046_v62  ;;  %v2277_v32 = vsel %vm2276_vm8, %v2275_v34, %v2270_v53  ;;  %v6049_v62 = vld [vmem:[#allocation54_spill] sm:$0xff] }
 0x21f   : > { %2133 = vperm.xlu1 %3033, %v1676_v19  }
 0x220   : > { %v2429_v39 = vsel %vm2248_vm4, %v2428_v44, %v2424_v48  ;;  %v1951_v38 = vpop.permute.xlu0 %1950  ;;  %v1681_v48 = vadd.f32 %v5933_v49, %v4661_v57  ;;  %v2284_v57 = vsel %vm2283_vm9, %v2282_v1, %v2277_v32  ;;  %v6050_v1 = vld [vmem:[#allocation30_spill] sm:$0xff] }
 0x221   : > { %v2434_v19 = vsel %vm2255_vm5, %v2433_v61, %v2429_v39  ;;  %v1948_v43 = vpop.permute.xlu1 %1947  ;;  %v2443_v26 = vrot.slane %v1951_v38, %v4997_v46  ;;  %v1683_v39 = vadd.f32 %v5859_v41, %v4679_v52  ;;  %v2291_v14 = vsel %vm2290_vm10, %v2289_v23, %v2284_v57  ;;  %v6053_v57 = vld [vmem:[#allocation103_spill] sm:$0xff] }
 0x222   : > { %v2438_v37 = vrot.slane %v1948_v43, %v4989_v18  ;;  %2142 = vperm.xlu0 %3032, %v1679_v25   ;;  %v2303_v25 = vrot.slane %v4925_v36, %v5034_v60  ;;  %v1688_v38 = vadd.f32 %v5818_v2, %v6047_v40  ;;  %v2298_v52 = vsel %vm5558_vm11, %v2296_v8, %v2291_v14 }
 0x223   : > { %2139 = vperm.xlu1 %3033, %v1678_v47   ;;  %v1691_v8 = vadd.f32 %v5964_v50, %v6053_v57 }
 0x224   : > { %v2439_v51 = vsel %vm2262_vm6, %v2438_v37, %v2434_v19  ;;  %v6048_v37 = vld [vmem:[#allocation35_spill] sm:$0xff]  ;;  %v2305_v53 = vsel %vm2304_vm12, %v2303_v25, %v2298_v52 }
 0x225   : > { %v2444_v44 = vsel %vm2269_vm7, %v2443_v26, %v2439_v51  ;;  %v1954_v61 = vpop.permute.xlu1 %1953  ;;  %v1957_v7 = vpop.permute.xlu0 %1956  ;;  %v2310_v26 = vrot.slane %v6048_v37, %v5046_v27  ;;  %v2317_v51 = vrot.slane %v6050_v1, %v5050_v54 }
 0x226   : > { %v2448_v47 = vrot.slane %v1954_v61, %v5002_v5  ;;  %v2453_v3 = vrot.slane %v1957_v7, %v5013_v35  ;;  %2148 = vperm.xlu0 %3032, %v1681_v48   ;;  %v6051_v61 = vld [vmem:[#allocation56_spill] sm:$0xff] }
 0x227   : > { %2145 = vperm.xlu1 %3033, %v1680_v28   ;;  %v1689_v28 = vadd.f32 %v4129_v59, %v6049_v62  ;;  %v1690_v7 = vadd.f32 %v5960_v33, %v6051_v61  ;;  %v2312_v59 = vsel %vm2311_vm13, %v2310_v26, %v2305_v53 }
 0x228   : > { %v2449_v13 = vsel %vm2276_vm8, %v2448_v47, %v2444_v44  ;;  %v6052_v47 = vld [vmem:[#allocation34_spill] sm:$0xff] }
 0x229   : > { %v2454_v31 = vsel %vm2283_vm9, %v2453_v3, %v2449_v13  ;;  %v1960_v34 = vpop.permute.xlu1 %1959  ;;  %v1963_v19 = vpop.permute.xlu0 %1962  ;;  %v2324_v3 = vrot.slane %v6052_v47, %v5055_v42  ;;  %v2319_v13 = vsel %vm2318_vm14, %v2317_v51, %v2312_v59 }
 0x22a   : > { %v2458_v4 = vrot.slane %v1960_v34, %v5021_v12  ;;  %v2463_v43 = vrot.slane %v1963_v19, %v5029_v20  ;;  %2154 = vperm.xlu0 %3032, %v1683_v39  }
 0x22b   : > { %2151 = vperm.xlu1 %3033, %v1682_v45   ;;  %v2326_v34 = vsel %vm2325_vm15, %v2324_v3, %v2319_v13 }
 0x22c   : > { %v2459_v36 = vsel %vm2290_vm10, %v2458_v4, %v2454_v31  ;;  %v6054_v4 = vld [vmem:[#allocation120_spill] sm:$0xff] }
 0x22d   : > { %v2464_v48 = vsel %vm5558_vm11, %v2463_v43, %v2459_v36  ;;  %v1966_v32 = vpop.permute.xlu1 %1965  ;;  %v1969_v23 = vpop.permute.xlu0 %1968  ;;  %vm2882_vm11 = vcmask 1042434   ;;  %v1692_v50 = vadd.f32 %v5972_v17, %v6054_v4  ;;  %v6055_v43 = vld [vmem:[#allocation71_spill] sm:$0xff]  ;;  %v6056_v17 = vld [vmem:[#allocation112_spill] sm:$0xff] }
 0x22e   : > { %v2468_v2 = vrot.slane %v1966_v32, %v5034_v60  ;;  %v2473_v44 = vrot.slane %v1969_v23, %v5046_v27  ;;  %2172 = vperm.xlu0 %3032, %v1689_v28   ;;  %v1693_v40 = vadd.f32 %v5978_v10, %v6055_v43  ;;  %v1694_v1 = vadd.f32 %v5981_v16, %v6056_v17  ;;  %v6057_v10 = vld [vmem:[#allocation72_spill] sm:$0xff] }
 0x22f   : > { %2169 = vperm.xlu1 %3033, %v1688_v38   ;;  %v2881_v38 = vsel %vm2880_vm0, %v5075_v15, %v2326_v34  ;;  %v1695_v15 = vadd.f32 %v5986_v21, %v6057_v10  ;;  %vm2884_vm0 = vcmask 1043459  }
 0x230   : > { %v2469_v45 = vsel %vm2304_vm12, %v2468_v2, %v2464_v48 }
 0x231   : > { %v2474_v39 = vsel %vm2311_vm13, %v2473_v44, %v2469_v45  ;;  %v1975_v25 = vpop.permute.xlu0 %1974  ;;  %v6058_v44 = vld [vmem:[#allocation60_spill] sm:$0xff] }
 0x232   : > { %v1972_v14 = vpop.permute.xlu1 %1971  ;;  %v2483_v33 = vrot.slane %v1975_v25, %v5055_v42  ;;  %2178 = vperm.xlu0 %3032, %v1691_v8   ;;  %v1696_v61 = vadd.f32 %v5847_v29, %v6058_v44  ;;  %v6060_v8 = vld [vmem:[#allocation52_spill] sm:$0xff] }
 0x233   : > { %v2478_v31 = vrot.slane %v1972_v14, %v5050_v54  ;;  %2175 = vperm.xlu1 %3033, %v1690_v7   ;;  %v6059_v7 = vld [vmem:[#allocation110_spill] sm:$0xff]  ;;  %v1698_v13 = vadd.f32 %v5937_v11, %v6060_v8 }
 0x234   : > { %v1697_v59 = vadd.f32 %v5933_v49, %v6059_v7 }
 0x235   : > { %v2479_v19 = vsel %vm2318_vm14, %v2478_v31, %v2474_v39  ;;  %v1981_v26 = vpop.permute.xlu0 %1980  ;;  %v6061_v39 = vld [vmem:[#allocation23_spill] sm:$0xff] }
 0x236   : > { %v2484_v52 = vsel %vm2325_vm15, %v2483_v33, %v2479_v19  ;;  %v1978_v37 = vpop.permute.xlu1 %1977  ;;  %v2492_v28 = vrot.slane %v1981_v26, %v4951_v30  ;;  %2184 = vperm.xlu0 %3032, %v1693_v40   ;;  %v1684_v29 = vadd.f32 %v5868_v63, %v6061_v39  ;;  %v6062_v19 = vld [vmem:[#allocation92_spill] sm:$0xff] }
 0x237   : > { %v5184_v36 = vsel %vm2882_vm11, %v2484_v52, %v2881_v38  ;;  %v2488_v62 = vrot.slane %v1978_v37, %v4948_v9  ;;  %2181 = vperm.xlu1 %3033, %v1692_v50   ;;  %v1699_v4 = vadd.f32 %v5859_v41, %v6062_v19  ;;  %v6063_v50 = vld [vmem:[#allocation130_spill] sm:$0xff]  ;;  %vm6068_vm11 = vcmask 786112  }
 0x238   : > { %v1685_v11 = vadd.f32 %v5871_v6, %v6063_v50 }
 0x239   : > { %v2493_v53 = vsel %vm2227_vm1, %v2492_v28, %v2488_v62  ;;  %v1987_v48 = vpop.permute.xlu0 %1986  ;;  %v6064_v62 = vld [vmem:[#allocation128_spill] sm:$0xff] }
 0x23a   : > { %v1984_v51 = vpop.permute.xlu1 %1983  ;;  %v2502_v23 = vrot.slane %v1987_v48, %v4965_v55  ;;  %2190 = vperm.xlu0 %3032, %v1695_v15   ;;  %v1700_v28 = vadd.f32 %v5868_v63, %v6064_v62 }
 0x23b   : > { %v2497_v32 = vrot.slane %v1984_v51, %v4958_v22  ;;  %2187 = vperm.xlu1 %3033, %v1694_v1  }
 0x23d   : > { %v2498_v2 = vsel %vm2234_vm2, %v2497_v32, %v2493_v53  ;;  %v1993_v21 = vpop.permute.xlu0 %1992  ;;  %v6065_v53 = vld [vmem:[#allocation126_spill] sm:$0xff]  ;;  %v6066_v32 = vld [vmem:[#allocation104_spill] sm:$0xff] }
 0x23e   : > { %v2503_v16 = vsel %vm2241_vm3, %v2502_v23, %v2498_v2  ;;  %v1990_v47 = vpop.permute.xlu1 %1989  ;;  %v2512_v45 = vrot.slane %v1993_v21, %v4981_v58  ;;  %2196 = vperm.xlu0 %3032, %v1697_v59   ;;  %v1686_v41 = vadd.f32 %v4321_v56, %v6065_v53  ;;  %v1701_v23 = vadd.f32 %v5871_v6, %v6066_v32  ;;  %v6067_v2 = vld [vmem:[#allocation138_spill] sm:$0xff]  ;;  %v6069_v21 = vld [vmem:[#allocation119_spill] sm:$0xff] }
 0x23f   : > { %v2507_v3 = vrot.slane %v1990_v47, %v4970_v24  ;;  %2193 = vperm.xlu1 %3033, %v1696_v61   ;;  %v1687_v63 = vadd.f32 %v4333_v0, %v6067_v2 }
 0x241   : > { %v2508_v57 = vsel %vm2248_vm4, %v2507_v3, %v2503_v16  ;;  %v1999_v25 = vpop.permute.xlu0 %1998  ;;  %v1702_v3 = vadd.f32 %v4321_v56, %v6069_v21 }
 0x242   : > { %v2513_v49 = vsel %vm2255_vm5, %v2512_v45, %v2508_v57  ;;  %v1996_v14 = vpop.permute.xlu1 %1995  ;;  %v2522_v33 = vrot.slane %v1999_v25, %v4997_v46  ;;  %2157 = vperm.xlu0 %3032, %v1684_v29   ;;  %v6070_v45 = vld [vmem:[#allocation24_spill] sm:$0xff] }
 0x243   : > { %v2517_v31 = vrot.slane %v1996_v14, %v4989_v18  ;;  %2199 = vperm.xlu1 %3033, %v1698_v13   ;;  %v1703_v6 = vadd.f32 %v4333_v0, %v6070_v45 }
 0x245   : > { %v2518_v34 = vsel %vm2262_vm6, %v2517_v31, %v2513_v49  ;;  %v2005_v38 = vpop.permute.xlu0 %2004 }
 0x246   : > { %v2523_v43 = vsel %vm2269_vm7, %v2522_v33, %v2518_v34  ;;  %v2002_v40 = vpop.permute.xlu1 %2001  ;;  %v2532_v37 = vrot.slane %v2005_v38, %v5013_v35  ;;  %2160 = vperm.xlu0 %3032, %v1685_v11  }
 0x247   : > { %v2527_v52 = vrot.slane %v2002_v40, %v5002_v5  ;;  %2202 = vperm.xlu1 %3033, %v1699_v4  }
 0x249   : > { %v2528_v26 = vsel %vm2276_vm8, %v2527_v52, %v2523_v43  ;;  %v2011_v10 = vpop.permute.xlu0 %2010 }
 0x24a   : > { %v2533_v17 = vsel %vm2283_vm9, %v2532_v37, %v2528_v26  ;;  %v2008_v1 = vpop.permute.xlu1 %2007  ;;  %v2542_v51 = vrot.slane %v2011_v10, %v5029_v20  ;;  %2163 = vperm.xlu0 %3032, %v1686_v41  }
 0x24b   : > { %v2537_v15 = vrot.slane %v2008_v1, %v5021_v12  ;;  %2205 = vperm.xlu1 %3033, %v1700_v28  }
 0x24d   : > { %v2538_v48 = vsel %vm2290_vm10, %v2537_v15, %v2533_v17  ;;  %v2017_v7 = vpop.permute.xlu0 %2016 }
 0x24e   : > { %v2543_v44 = vsel %vm6068_vm11, %v2542_v51, %v2538_v48  ;;  %v2014_v61 = vpop.permute.xlu1 %2013  ;;  %v2552_v16 = vrot.slane %v2017_v7, %v5046_v27  ;;  %2166 = vperm.xlu0 %3032, %v1687_v63  }
 0x24f   : > { %v2547_v59 = vrot.slane %v2014_v61, %v5034_v60  ;;  %2208 = vperm.xlu1 %3033, %v1701_v23  }
 0x251   : > { %v2548_v47 = vsel %vm2304_vm12, %v2547_v59, %v2543_v44  ;;  %v2023_v13 = vpop.permute.xlu0 %2022 }
 0x252   : > { %v2553_v57 = vsel %vm2311_vm13, %v2552_v16, %v2548_v47  ;;  %v2020_v8 = vpop.permute.xlu1 %2019  ;;  %v2562_v29 = vrot.slane %v2023_v13, %v5055_v42  ;;  %2214 = vperm.xlu0 %3032, %v1703_v6  }
 0x253   : > { %v2557_v39 = vrot.slane %v2020_v8, %v5050_v54  ;;  %2211 = vperm.xlu1 %3033, %v1702_v3  }
 0x255   : > { %v2558_v49 = vsel %vm2318_vm14, %v2557_v39, %v2553_v57  ;;  %v2029_v56 = vpop.permute.xlu0 %2028 }
 0x256   : > { %v2563_v14 = vsel %vm2325_vm15, %v2562_v29, %v2558_v49  ;;  %v2026_v25 = vpop.permute.xlu1 %2025  ;;  %v2571_v33 = vrot.slane %v2029_v56, %v4951_v30 }
 0x257   : > { %v2885_v31 = vsel %vm2884_vm0, %v2563_v14, %v5184_v36  ;;  %v2567_v0 = vrot.slane %v2026_v25, %v4948_v9  ;;  %vm2886_vm0 = vcmask 1044484  }
 0x259   : > { %v2572_v34 = vsel %vm2227_vm1, %v2571_v33, %v2567_v0  ;;  %v2035_v4 = vpop.permute.xlu0 %2034 }
 0x25a   : > { %v2032_v19 = vpop.permute.xlu1 %2031  ;;  %v2581_v11 = vrot.slane %v2035_v4, %v4965_v55 }
 0x25b   : > { %v2576_v50 = vrot.slane %v2032_v19, %v4958_v22 }
 0x25d   : > { %v2577_v43 = vsel %vm2234_vm2, %v2576_v50, %v2572_v34  ;;  %v2041_v52 = vpop.permute.xlu0 %2040 }
 0x25e   : > { %v2582_v40 = vsel %vm2241_vm3, %v2581_v11, %v2577_v43  ;;  %v2038_v38 = vpop.permute.xlu1 %2037  ;;  %v2591_v37 = vrot.slane %v2041_v52, %v4981_v58 }
 0x25f   : > { %v2586_v36 = vrot.slane %v2038_v38, %v4970_v24 }
 0x261   : > { %v2587_v26 = vsel %vm2248_vm4, %v2586_v36, %v2582_v40  ;;  %v2047_v53 = vpop.permute.xlu0 %2046 }
 0x262   : > { %v2592_v62 = vsel %vm2255_vm5, %v2591_v37, %v2587_v26  ;;  %v2044_v28 = vpop.permute.xlu1 %2043  ;;  %v2601_v17 = vrot.slane %v2047_v53, %v4997_v46 }
 0x263   : > { %v2596_v41 = vrot.slane %v2044_v28, %v4989_v18 }
 0x265   : > { %v2597_v1 = vsel %vm2262_vm6, %v2596_v41, %v2592_v62  ;;  %v2053_v51 = vpop.permute.xlu0 %2052 }
 0x266   : > { %v2602_v10 = vsel %vm2269_vm7, %v2601_v17, %v2597_v1  ;;  %v2050_v15 = vpop.permute.xlu1 %2049  ;;  %v2611_v32 = vrot.slane %v2053_v51, %v5013_v35 }
 0x267   : > { %v2606_v48 = vrot.slane %v2050_v15, %v5002_v5 }
 0x269   : > { %v2607_v23 = vsel %vm2276_vm8, %v2606_v48, %v2602_v10  ;;  %v2059_v44 = vpop.permute.xlu0 %2058 }
 0x26a   : > { %v2612_v2 = vsel %vm2283_vm9, %v2611_v32, %v2607_v23  ;;  %v2056_v63 = vpop.permute.xlu1 %2055  ;;  %v2621_v7 = vrot.slane %v2059_v44, %v5029_v20 }
 0x26b   : > { %v2616_v61 = vrot.slane %v2056_v63, %v5021_v12 }
 0x26d   : > { %v2617_v59 = vsel %vm2290_vm10, %v2616_v61, %v2612_v2  ;;  %v2065_v21 = vpop.permute.xlu0 %2064 }
 0x26e   : > { %v2622_v16 = vsel %vm6068_vm11, %v2621_v7, %v2617_v59  ;;  %v2062_v47 = vpop.permute.xlu1 %2061  ;;  %v2631_v45 = vrot.slane %v2065_v21, %v5046_v27 }
 0x26f   : > { %v2626_v3 = vrot.slane %v2062_v47, %v5034_v60 }
 0x271   : > { %v2627_v6 = vsel %vm2304_vm12, %v2626_v3, %v2622_v16  ;;  %v2071_v13 = vpop.permute.xlu0 %2070 }
 0x272   : > { %v2632_v57 = vsel %vm2311_vm13, %v2631_v45, %v2627_v6  ;;  %v2068_v8 = vpop.permute.xlu1 %2067  ;;  %v2641_v29 = vrot.slane %v2071_v13, %v5055_v42 }
 0x273   : > { %v2636_v39 = vrot.slane %v2068_v8, %v5050_v54 }
 0x275   : > { %v2637_v49 = vsel %vm2318_vm14, %v2636_v39, %v2632_v57  ;;  %v2077_v56 = vpop.permute.xlu0 %2076 }
 0x276   : > { %v2642_v14 = vsel %vm2325_vm15, %v2641_v29, %v2637_v49  ;;  %v2074_v25 = vpop.permute.xlu1 %2073  ;;  %v2650_v34 = vrot.slane %v2077_v56, %v4951_v30 }
 0x277   : > { %v2887_v0 = vsel %vm2886_vm0, %v2642_v14, %v2885_v31  ;;  %v2646_v33 = vrot.slane %v2074_v25, %v4948_v9  ;;  %vm2888_vm0 = vcmask 1045509  }
 0x279   : > { %v2651_v19 = vsel %vm2227_vm1, %v2650_v34, %v2646_v33  ;;  %v2083_v50 = vpop.permute.xlu0 %2082 }
 0x27a   : > { %v2080_v4 = vpop.permute.xlu1 %2079  ;;  %v2660_v43 = vrot.slane %v2083_v50, %v4965_v55 }
 0x27b   : > { %v2655_v11 = vrot.slane %v2080_v4, %v4958_v22 }
 0x27d   : > { %v2656_v40 = vsel %vm2234_vm2, %v2655_v11, %v2651_v19  ;;  %v2089_v36 = vpop.permute.xlu0 %2088 }
 0x27e   : > { %v2661_v38 = vsel %vm2241_vm3, %v2660_v43, %v2656_v40  ;;  %v2086_v52 = vpop.permute.xlu1 %2085  ;;  %v2670_v37 = vrot.slane %v2089_v36, %v4981_v58 }
 0x27f   : > { %v2665_v31 = vrot.slane %v2086_v52, %v4970_v24 }
 0x281   : > { %v2666_v26 = vsel %vm2248_vm4, %v2665_v31, %v2661_v38  ;;  %v2095_v53 = vpop.permute.xlu0 %2094 }
 0x282   : > { %v2671_v62 = vsel %vm2255_vm5, %v2670_v37, %v2666_v26  ;;  %v2092_v28 = vpop.permute.xlu1 %2091  ;;  %v2680_v17 = vrot.slane %v2095_v53, %v4997_v46 }
 0x283   : > { %v2675_v41 = vrot.slane %v2092_v28, %v4989_v18 }
 0x285   : > { %v2676_v1 = vsel %vm2262_vm6, %v2675_v41, %v2671_v62  ;;  %v2101_v51 = vpop.permute.xlu0 %2100 }
 0x286   : > { %v2681_v10 = vsel %vm2269_vm7, %v2680_v17, %v2676_v1  ;;  %v2098_v15 = vpop.permute.xlu1 %2097  ;;  %v2690_v32 = vrot.slane %v2101_v51, %v5013_v35 }
 0x287   : > { %v2685_v48 = vrot.slane %v2098_v15, %v5002_v5 }
 0x289   : > { %v2686_v23 = vsel %vm2276_vm8, %v2685_v48, %v2681_v10  ;;  %v2107_v44 = vpop.permute.xlu0 %2106 }
 0x28a   : > { %v2691_v2 = vsel %vm2283_vm9, %v2690_v32, %v2686_v23  ;;  %v2104_v63 = vpop.permute.xlu1 %2103  ;;  %v2700_v7 = vrot.slane %v2107_v44, %v5029_v20 }
 0x28b   : > { %v2695_v61 = vrot.slane %v2104_v63, %v5021_v12 }
 0x28d   : > { %v2696_v59 = vsel %vm2290_vm10, %v2695_v61, %v2691_v2  ;;  %v2113_v21 = vpop.permute.xlu0 %2112 }
 0x28e   : > { %v2701_v16 = vsel %vm6068_vm11, %v2700_v7, %v2696_v59  ;;  %v2110_v47 = vpop.permute.xlu1 %2109  ;;  %v2710_v45 = vrot.slane %v2113_v21, %v5046_v27 }
 0x28f   : > { %v2705_v3 = vrot.slane %v2110_v47, %v5034_v60 }
 0x291   : > { %v2706_v6 = vsel %vm2304_vm12, %v2705_v3, %v2701_v16  ;;  %v2119_v13 = vpop.permute.xlu0 %2118 }
 0x292   : > { %v2711_v57 = vsel %vm2311_vm13, %v2710_v45, %v2706_v6  ;;  %v2116_v8 = vpop.permute.xlu1 %2115  ;;  %v2720_v29 = vrot.slane %v2119_v13, %v5055_v42 }
 0x293   : > { %v2715_v39 = vrot.slane %v2116_v8, %v5050_v54 }
 0x295   : > { %v2716_v49 = vsel %vm2318_vm14, %v2715_v39, %v2711_v57  ;;  %v2125_v56 = vpop.permute.xlu0 %2124 }
 0x296   : > { %v2721_v14 = vsel %vm2325_vm15, %v2720_v29, %v2716_v49  ;;  %v2122_v25 = vpop.permute.xlu1 %2121  ;;  %v2729_v41 = vrot.slane %v2125_v56, %v4951_v30 }
 0x297   : > { %v5308_v33 = vsel %vm2888_vm0, %v2721_v14, %v2887_v0  ;;  %v2725_v0 = vrot.slane %v2122_v25, %v4948_v9 }
 0x299   : > { %v2131_v19 = vpop.permute.xlu0 %2130  ;;  %v2730_v15 = vsel %vm2227_vm1, %v2729_v41, %v2725_v0 }
 0x29a   : > { %v2128_v34 = vpop.permute.xlu1 %2127  ;;  %v2739_v51 = vrot.slane %v2131_v19, %v4965_v55 }
 0x29b   : > { %v2734_v17 = vrot.slane %v2128_v34, %v4958_v22 }
 0x29d   : > { %v2137_v50 = vpop.permute.xlu0 %2136  ;;  %v2735_v48 = vsel %vm2234_vm2, %v2734_v17, %v2730_v15 }
 0x29e   : > { %v2134_v4 = vpop.permute.xlu1 %2133  ;;  %v2740_v7 = vsel %vm2241_vm3, %v2739_v51, %v2735_v48  ;;  %v2749_v59 = vrot.slane %v2137_v50, %v4981_v58 }
 0x29f   : > { %v2744_v32 = vrot.slane %v2134_v4, %v4970_v24 }
 0x2a1   : > { %v2143_v43 = vpop.permute.xlu0 %2142  ;;  %v2745_v16 = vsel %vm2248_vm4, %v2744_v32, %v2740_v7 }
 0x2a2   : > { %v2140_v11 = vpop.permute.xlu1 %2139  ;;  %v2750_v6 = vsel %vm2255_vm5, %v2749_v59, %v2745_v16  ;;  %v2759_v57 = vrot.slane %v2143_v43, %v4997_v46 }
 0x2a3   : > { %v2754_v47 = vrot.slane %v2140_v11, %v4989_v18 }
 0x2a5   : > { %v2149_v38 = vpop.permute.xlu0 %2148  ;;  %v2755_v8 = vsel %vm2262_vm6, %v2754_v47, %v2750_v6 }
 0x2a6   : > { %v2146_v40 = vpop.permute.xlu1 %2145  ;;  %v2760_v25 = vsel %vm2269_vm7, %v2759_v57, %v2755_v8  ;;  %v2769_v56 = vrot.slane %v2149_v38, %v5013_v35 }
 0x2a7   : > { %v2764_v13 = vrot.slane %v2146_v40, %v5002_v5 }
 0x2a9   : > { %v5310_v36 = vpop.permute.xlu0 %2154  ;;  %v2765_v34 = vsel %vm2276_vm8, %v2764_v13, %v2760_v25 }
 0x2aa   : > { %v2152_v52 = vpop.permute.xlu1 %2151  ;;  %v2770_v40 = vsel %vm2283_vm9, %v2769_v56, %v2765_v34 }
 0x2ab   : > { %v2774_v19 = vrot.slane %v2152_v52, %v5021_v12 }
 0x2ad   : > { %v2173_v37 = vpop.permute.xlu0 %2172  ;;  %v2775_v38 = vsel %vm2290_vm10, %v2774_v19, %v2770_v40 }
 0x2ae   : > { %v2170_v31 = vpop.permute.xlu1 %2169  ;;  %v2808_v2 = vrot.slane %v2173_v37, %v4951_v30 }
 0x2af   : > { %v2804_v23 = vrot.slane %v2170_v31, %v4948_v9  ;;  %v2779_v31 = vrot.slane %v5310_v36, %v5029_v20 }
 0x2b1   : > { %v2179_v62 = vpop.permute.xlu0 %2178  ;;  %v2809_v21 = vsel %vm2227_vm1, %v2808_v2, %v2804_v23  ;;  %vm6071_vm1 = vmmov %vm6068_vm11 }
 0x2b2   : > { %v2176_v26 = vpop.permute.xlu1 %2175  ;;  %v2818_v3 = vrot.slane %v2179_v62, %v4965_v55  ;;  %v2780_v41 = vsel %vm6071_vm1, %v2779_v31, %v2775_v38 }
 0x2b3   : > { %v2813_v63 = vrot.slane %v2176_v26, %v4958_v22 }
 0x2b5   : > { %v2185_v53 = vpop.permute.xlu0 %2184  ;;  %v2814_v9 = vsel %vm2234_vm2, %v2813_v63, %v2809_v21  ;;  %vm6072_vm2 = vmmov %vm6071_vm1 }
 0x2b6   : > { %v2182_v28 = vpop.permute.xlu1 %2181  ;;  %v2819_v39 = vsel %vm2241_vm3, %v2818_v3, %v2814_v9  ;;  %v2828_v29 = vrot.slane %v2185_v53, %v4981_v58  ;;  %vm2890_vm3 = vcmask 1046534  }
 0x2b7   : > { %v2823_v30 = vrot.slane %v2182_v28, %v4970_v24 }
 0x2b9   : > { %v2191_v10 = vpop.permute.xlu0 %2190  ;;  %v2824_v55 = vsel %vm2248_vm4, %v2823_v30, %v2819_v39  ;;  %vm2892_vm4 = vcmask 1047559  }
 0x2ba   : > { %v2188_v1 = vpop.permute.xlu1 %2187  ;;  %v2829_v4 = vsel %vm2255_vm5, %v2828_v29, %v2824_v55  ;;  %v2838_v50 = vrot.slane %v2191_v10, %v4997_v46 }
 0x2bb   : > { %v2833_v49 = vrot.slane %v2188_v1, %v4989_v18 }
 0x2bd   : > { %v2197_v61 = vpop.permute.xlu0 %2196  ;;  %v2834_v58 = vsel %vm2262_vm6, %v2833_v49, %v2829_v4 }
 0x2be   : > { %v2194_v44 = vpop.permute.xlu1 %2193  ;;  %v2839_v37 = vsel %vm2269_vm7, %v2838_v50, %v2834_v58  ;;  %v2848_v52 = vrot.slane %v2197_v61, %v5013_v35 }
 0x2bf   : > { %v2843_v11 = vrot.slane %v2194_v44, %v5002_v5 }
 0x2c1   : > { %v2158_v22 = vpop.permute.xlu0 %2157  ;;  %v2844_v46 = vsel %vm2276_vm8, %v2843_v11, %v2839_v37 }
 0x2c2   : > { %v2200_v45 = vpop.permute.xlu1 %2199  ;;  %v2784_v26 = vrot.slane %v2158_v22, %v5034_v60  ;;  %v2849_v1 = vsel %vm2283_vm9, %v2848_v52, %v2844_v46 }
 0x2c3   : > { %v2853_v62 = vrot.slane %v2200_v45, %v5021_v12 }
 0x2c4   : > { %v2785_v10 = vsel %vm2304_vm12, %v2784_v26, %v2780_v41 }
 0x2c5   : > { %v2161_v24 = vpop.permute.xlu0 %2160  ;;  %v2854_v15 = vsel %vm2290_vm10, %v2853_v62, %v2849_v1 }
 0x2c6   : > { %v2203_v14 = vpop.permute.xlu1 %2202  ;;  %v2789_v5 = vrot.slane %v2161_v24, %v5046_v27 }
 0x2c7   : > { %v2858_v28 = vrot.slane %v2203_v14, %v5029_v20 }
 0x2c8   : > { %v2790_v20 = vsel %vm2311_vm13, %v2789_v5, %v2785_v10 }
 0x2c9   : > { %v2164_v18 = vpop.permute.xlu0 %2163  ;;  %v2859_v51 = vsel %vm6072_vm2, %v2858_v28, %v2854_v15 }
 0x2ca   : > { %v2206_v43 = vpop.permute.xlu1 %2205  ;;  %v2794_v53 = vrot.slane %v2164_v18, %v5050_v54 }
 0x2cb   : > { %v2863_v17 = vrot.slane %v2206_v43, %v5034_v60 }
 0x2cc   : > { %v2795_v48 = vsel %vm2318_vm14, %v2794_v53, %v2790_v20 }
 0x2cd   : > { %v2167_v36 = vpop.permute.xlu0 %2166  ;;  %v2864_v60 = vsel %vm2304_vm12, %v2863_v17, %v2859_v51 }
 0x2ce   : > { %v2209_v0 = vpop.permute.xlu1 %2208  ;;  %v2799_v35 = vrot.slane %v2167_v36, %v5055_v42 }
 0x2cf   : > { %v2868_v12 = vrot.slane %v2209_v0, %v5046_v27 }
 0x2d0   : > { %v2800_v2 = vsel %vm2325_vm15, %v2799_v35, %v2795_v48 }
 0x2d1   : > { %v2215_v23 = vpop.permute.xlu0 %2214  ;;  %v2869_v27 = vsel %vm2311_vm13, %v2868_v12, %v2864_v60  ;;  %v2891_v7 = vsel %vm2890_vm3, %v2800_v2, %v5308_v33 }
 0x2d2   : > { %v2212_v32 = vpop.permute.xlu1 %2211  ;;  %v2878_v44 = vrot.slane %v2215_v23, %v5055_v42 }
 0x2d3   : > { %v2873_v63 = vrot.slane %v2212_v32, %v5050_v54 }
 0x2d5   : > { %v2874_v61 = vsel %vm2318_vm14, %v2873_v63, %v2869_v27 }
 0x2d6   : > { %v2879_v59 = vsel %vm2325_vm15, %v2878_v44, %v2874_v61 }
 0x2d7   : > { %v2893_v16 = vsel %vm2892_vm4, %v2879_v59, %v2891_v7 }
 0x2d8   : > { %2895 = vst [vmem:[#allocation4] sm:$0xff] %v2893_v16 }
 0x2d9 PF: > { %p5378_p12 = scmp.eq.s32.totalorder %s2964_s17, 1  ;;  %s3105_s19 = smov [#allocation4]  }
 0x2da   : > { %s2905_s20 = sshll.u32 %s3105_s19, 4  ;;  %s2906_s20 = int_to_ptr.vmem [resolvable:$true] %s2905_s20 }
 0x2db   : > { %s3034_s22 = scalar_lea.vmem %s2906_s20, 128  ;;  %p3041_p2 = scmp.lt.s32.totalorder %s2906_s20, %s2906_s20 }
 0x2dc   : > { %p3035_p13 = scmp.ne.s32.totalorder %s2906_s20, %s3034_s22  ;;  %p3042_p3 = scmp.lt.s32.totalorder %s3034_s22, %s3034_s22 }
 0x2de   : > { %p3036_p0 = pnand %p3035_p13, %p5378_p12  ;;  %p3043_p4 = por %p3042_p3, %p3041_p2 }
 0x2e0   : > { %p3037_p1 = pneg %p3036_p0 }
 0x2e2   : > { %p3044_p5 = pnand %p3043_p4, %p3037_p1 }
 0x2e4   : > { %3047 = shalt.err (!%p3044_p5)
}
 0x2e5   : > { %s3048_s17 = scalar_lea.hbm %s5422_s3, 128 }
 0x2e6   : > { %p3049_p6 = scmp.ne.s32.totalorder %s5422_s3, %s3048_s17  ;;  %p3054_p9 = scmp.lt.u32.totalorder %s3048_s17, %s5422_s3 }
 0x2e8   : > { %p3050_p7 = pnand %p3049_p6, %p5378_p12 }
 0x2ea   : > { %p3051_p8 = pneg %p3050_p7 }
 0x2ec   : > { %p3056_p10 = pnand %p3054_p9, %p3051_p8 }
 0x2ee   : > { %3059 = shalt.err (!%p3056_p10)
}
 0x2ef   : > { %2985 = dma.vmem_to_hbm [thread:$0]  (%p5378_p12), %s2906_s20, 128, %s5422_s3, [#allocation5]  }
 0x2f0   : > { %3081 = dma.done.wait (%p5378_p12), [#allocation5], 128  }
 0x2f1   : > { %3083 = vsyncadd (%p5378_p12), [#allocation5], 4294967168 }
 0x2f2 PF: > { %s14_s16 = sadd.s32 1, %s3102_s16   ;;  %s6074_s12 = smov %s3090_s13 }
 0x2f3   : > { %p11_p11 = scmp.ge.s32.totalorder %s14_s16, 4   ;;  %s6075_s13 = smov %s3162_s21 }
 0x2f4   : > { %s6076_s14 = smov %s3098_s15  ;;  %s6077_s15 = smov %s6079_s18 }
 0x2f5   :  { %13 = sbr.rel (!%p11_p11) target bundleno = 3 (0x3), region = 100 }
 0x2fc   :  { %2918 = vsyncpa [#allocation5], 1 }
 0x2fd   :  { %2920 = vsyncpa [#allocation5 + $0x1], 1 }

</bundles_post_ra>
